<compile_context>
chip_gen: v7x
topology: tpu7x:2x2x1
jax: 0.10.0
libtpu: 0.0.40
codegen_flags: <defaults>
</compile_context>

<pallas_src>
import functools

import numpy as np

import jax
import jax.numpy as jnp
from jax.experimental import pallas as pl
from jax.experimental.pallas import tpu as pltpu

EPS = 1e-5

_VMEM_SPEC = pl.BlockSpec(memory_space=pltpu.MemorySpace.VMEM)


# ----------------------------------------------------------------------------
# Static (numpy) index maps used to pack conv weights into lane-aligned,
# zero-padded matmul weights.  Built once, outside the jitted forward.
# ----------------------------------------------------------------------------
def _conv_pack_idx(K, Cin, Cout, W_in, W_out, stride, row_block, col_block):
    """Gather map of shape (K*row_block, 2*col_block) into a flattened torch
    (Cout, Cin, K, K) weight (index Cout*Cin*K*K == the appended zero).

      rows : kh*row_block + (w_in*Cin + c)        (w_in < W_in)
      cols : dj*col_block + (j_out*Cout + co)     (j_out < W_out)
      kw   = w_in - (stride*j_out + dj)
    """
    ZERO = Cout * Cin * K * K
    rows = np.arange(K * row_block)
    kh = rows // row_block
    rr = rows % row_block
    w_in = rr // Cin
    c = rr % Cin
    row_ok = rr < W_in * Cin

    cols = np.arange(2 * col_block)
    dj = cols // col_block
    lc = cols % col_block
    j = lc // Cout
    co = lc % Cout
    col_ok = lc < W_out * Cout

    kw = w_in[:, None] - (stride * j[None, :] + dj[None, :])
    ok = row_ok[:, None] & col_ok[None, :] & (kw >= 0) & (kw < K)
    flat = ((co[None, :] * Cin + c[:, None]) * K + kh[:, None]) * K \
        + np.clip(kw, 0, K - 1)
    return np.where(ok, flat, ZERO).astype(np.int32)


def _lane_idx(Cout, W_out, col_block):
    """Gather map (2*col_block,) expanding a per-channel vector onto the packed
    output-lane layout (index Cout == the appended zero)."""
    cols = np.arange(2 * col_block)
    lc = cols % col_block
    co = lc % Cout
    ok = lc < W_out * Cout
    return np.where(ok, co, Cout).astype(np.int32)


_IDX_W1 = _conv_pack_idx(K=4, Cin=3, Cout=8, W_in=32, W_out=14, stride=2,
                         row_block=128, col_block=128)      # (512, 256)
_IDX_W2 = _conv_pack_idx(4, 8, 32, 14, 5, 2, 128, 256)      # (512, 512)
_IDX_W3 = _conv_pack_idx(4, 32, 64, 5, 1, 1, 256, 128)      # (1024, 256)
_IDX_C1 = _lane_idx(8, 14, 128)                             # (256,)
_IDX_C2 = _lane_idx(32, 5, 256)                             # (512,)
_IDX_C3 = _lane_idx(64, 1, 128)                             # (256,)


# ----------------------------------------------------------------------------
# One-time parameter packing (outside the jitted forward).
#   - bn1 scale folded into w1, (bn2 scale * pool1/4) into w2, pool2/4 into w3,
#     (bn3 scale+shift * GAP/4) into the fc weight/bias.
# ----------------------------------------------------------------------------
def prepare_params(p, num_classes=10):
    def pack_conv(w_oihw, idx):
        flat = jnp.concatenate([w_oihw.reshape(-1).astype(jnp.float32),
                                jnp.zeros((1,), jnp.float32)])
        return jnp.take(flat, jnp.asarray(idx), axis=0)

    def lane(vec, idx):
        flat = jnp.concatenate([vec.astype(jnp.float32),
                                jnp.zeros((1,), jnp.float32)])
        return jnp.take(flat, jnp.asarray(idx), axis=0)[None, :]

    # BN folds (eval mode, running stats).
    s1 = p['g1'] / jnp.sqrt(p['v1'] + EPS)
    t1 = (p['b1'] - p['m1']) * s1 + p['be1']
    s2 = p['g2'] / jnp.sqrt(p['v2'] + EPS)
    t2 = (p['b2'] - p['m2']) * s2 + p['be2']
    s3 = p['g3'] / jnp.sqrt(p['v3'] + EPS)
    t3 = p['be3'] - p['m3'] * s3                 # conv3: relu BEFORE bn3

    w1s = p['w1'].astype(jnp.float32) * s1[:, None, None, None]
    w2s = p['w2'].astype(jnp.float32) * (0.25 * s2)[:, None, None, None]
    w3s = p['w3'].astype(jnp.float32) * 0.25

    wfc = p['wfc'].astype(jnp.float32)           # (num_classes, 64)
    wfc_fold = (0.25 * s3)[:, None] * wfc.T      # (64, num_classes)
    bfc_fold = p['bfc'].astype(jnp.float32) + wfc @ t3

    wfcp = jnp.zeros((128, 128), jnp.float32).at[:64, :num_classes].set(wfc_fold)
    bfcl = jnp.zeros((1, 128), jnp.float32).at[0, :num_classes].set(bfc_fold)

    return dict(
        w1p=pack_conv(w1s, _IDX_W1), t1=lane(t1, _IDX_C1),
        w2p=pack_conv(w2s, _IDX_W2), t2=lane(t2, _IDX_C2),
        w3p=pack_conv(w3s, _IDX_W3), b3=lane(p['b3'], _IDX_C3),
        wfc=wfcp, bfc=bfcl,
    )


# ----------------------------------------------------------------------------
# The single fused Pallas kernel.
# Activation layouts (all f32, all VMEM):
#   xL : (32N, 128)   row = n*32 + h,  lane = w*3 + c   (96 lanes used)
#   y1 : (16N, 128)   row = n*16 + i1, lane = j1*8 + c  (i1<14, 112 lanes used)
#                     holds the 2x2 pool SUM (1/4 folded into w2)
#   y2 : ( 8N, 256)   row = n*8  + i2, lane = j2*32 + c (i2<5,  160 lanes used)
#                     holds the 2x2 pool SUM (1/4 folded into w3)
# Staging buffers gather the K=4 kernel rows into lanes so each conv is one
# 2-D matmul against the pre-packed weight.
# ----------------------------------------------------------------------------
def _fused_kernel(xL_ref, w1_ref, t1_ref,
                  w2_ref, t2_ref,
                  w3_ref, b3_ref,
                  wfc_ref, bfc_ref,
                  o_ref,
                  st1, st2, st3, y1_ref, y2_ref,
                  *, N, NP, num_classes):
    K = 4

    # -------- stage 1: conv1 -> bn1 -> relu -> (dropout) -> avgpool(2,2) -----
    # st1 rows: (di*N + n)*16 + i1 (i1<14) ; lanes: kh*128 + (w*3+c)
    st1[...] = jnp.zeros_like(st1)
    for kh in range(K):
        for di in range(2):
            for n in range(N):
                st1[pl.ds((di * N + n) * 16, 14), pl.ds(kh * 128, 128)] = (
                    xL_ref[pl.ds(n * 32 + di + kh, 14, 2), :])
    acc1 = jnp.dot(st1[...], w1_ref[...], preferred_element_type=jnp.float32)
    z1 = jnp.maximum(acc1 + t1_ref[...], 0.0)      # conv1+bn1+relu  (32N, 256)
    z1 = z1[:16 * N, :] + z1[16 * N:, :]           # pool rows (di)
    y1_ref[...] = z1[:, :128] + z1[:, 128:]        # pool cols (dj); /4 in w2

    # -------- stage 2: conv2 -> bn2 -> relu -> (dropout) -> avgpool(2,2) -----
    # st2 rows: (di*N + n)*8 + i2 (i2<5) ; lanes: kh*128 + (j1*8+c)
    st2[...] = jnp.zeros_like(st2)
    for kh in range(K):
        for di in range(2):
            for n in range(N):
                st2[pl.ds((di * N + n) * 8, 5), pl.ds(kh * 128, 128)] = (
                    y1_ref[pl.ds(n * 16 + di + kh, 5, 2), :])
    acc2 = jnp.dot(st2[...], w2_ref[...], preferred_element_type=jnp.float32)
    z2 = jnp.maximum(acc2 + t2_ref[...], 0.0)      # conv2+bn2+relu  (16N, 512)
    z2 = z2[:8 * N, :] + z2[8 * N:, :]             # pool rows (di)
    y2_ref[...] = z2[:, :256] + z2[:, 256:]        # pool cols (dj); /4 in w3

    # -------- stage 3 + head: conv3 -> relu -> bn3 -> GAP(2x2) -> fc ----------
    # st3 rows: oi*NP + n ; lanes: kh*256 + (j2*32+c)
    st3[...] = jnp.zeros_like(st3)
    for kh in range(K):
        for oi in range(2):
            for n in range(N):
                st3[pl.ds(oi * NP + n, 1), pl.ds(kh * 256, 256)] = (
                    y2_ref[pl.ds(n * 8 + oi + kh, 1), :])
    acc3 = jnp.dot(st3[...], w3_ref[...], preferred_element_type=jnp.float32)
    z3 = jnp.maximum(acc3 + b3_ref[...], 0.0)      # conv3+bias, ReLU
    z3 = z3[:NP, :] + z3[NP:, :]                   # GAP rows (oi)
    feat = z3[:, :128] + z3[:, 128:]               # GAP cols (oj); bn3 & /4 in fc
    logits = (jnp.dot(feat, wfc_ref[...], preferred_element_type=jnp.float32)
              + bfc_ref[...])
    o_ref[...] = logits[:N, :num_classes]


# ----------------------------------------------------------------------------
# Forward pass wrapper.
# ----------------------------------------------------------------------------
@functools.partial(jax.jit, static_argnames=("num_classes",))
def conv_forward(x_nchw, packed, num_classes=10):
    N, C, H, W = x_nchw.shape
    assert (C, H, W) == (3, 32, 32), "kernel is specialized to 3x32x32 inputs"
    assert num_classes <= 128
    NP = ((N + 7) // 8) * 8

    # Only per-call XLA glue: NCHW -> NHWC -> 2-D (rows=(n,h), lanes=(w,c)), pad
    # the 96 lanes up to 128 so every in-kernel load is full-width.
    x = jnp.transpose(x_nchw, (0, 2, 3, 1)).astype(jnp.float32)
    xL = jnp.pad(x.reshape(N * 32, 32 * 3), ((0, 0), (0, 32)))

    args = (xL, packed['w1p'], packed['t1'],
            packed['w2p'], packed['t2'],
            packed['w3p'], packed['b3'],
            packed['wfc'], packed['bfc'])

    flops = 2 * (32 * N * 512 * 256 + 16 * N * 512 * 512
                 + 2 * NP * 1024 * 256 + NP * 128 * 128)
    bytes_accessed = 4 * (sum(int(a.size) for a in args) + N * num_classes)

    return pl.pallas_call(
        functools.partial(_fused_kernel, N=N, NP=NP, num_classes=num_classes),
        out_shape=jax.ShapeDtypeStruct((N, num_classes), jnp.float32),
        in_specs=[_VMEM_SPEC] * len(args),
        out_specs=_VMEM_SPEC,
        scratch_shapes=[
            pltpu.VMEM((32 * N, 512), jnp.float32),   # st1
            pltpu.VMEM((16 * N, 512), jnp.float32),   # st2
            pltpu.VMEM((2 * NP, 1024), jnp.float32),  # st3
            pltpu.VMEM((16 * N, 128), jnp.float32),   # y1
            pltpu.VMEM((8 * N, 256), jnp.float32),    # y2
        ],
        cost_estimate=pl.CostEstimate(flops=flops, transcendentals=0,
                                      bytes_accessed=bytes_accessed),
    )(*args)


# ----------------------------------------------------------------------------
# Pure-JAX reference (for correctness check)
# ----------------------------------------------------------------------------
def ref_forward(x_nchw, p):
    x = jnp.transpose(x_nchw, (0, 2, 3, 1)).astype(jnp.float32)

    def conv(x, w_oihw, b):
        w = jnp.transpose(w_oihw, (2, 3, 1, 0))
        y = jax.lax.conv_general_dilated(
            x, w, (1, 1), 'VALID',
            dimension_numbers=('NHWC', 'HWIO', 'NHWC'))
        return y + b

    def bn(x, g, beta, m, v):
        return (x - m) / jnp.sqrt(v + EPS) * g + beta

    def pool(x):
        N, H, W, C = x.shape
        Hp, Wp = H // 2, W // 2
        return x[:, :Hp * 2, :Wp * 2, :].reshape(N, Hp, 2, Wp, 2, C).mean((2, 4))

    y = pool(jnp.maximum(bn(conv(x, p['w1'], p['b1']),
                            p['g1'], p['be1'], p['m1'], p['v1']), 0.0))
    y = pool(jnp.maximum(bn(conv(y, p['w2'], p['b2']),
                            p['g2'], p['be2'], p['m2'], p['v2']), 0.0))
    y = conv(y, p['w3'], p['b3'])
    y = jnp.maximum(y, 0.0)
    y = bn(y, p['g3'], p['be3'], p['m3'], p['v3'])
    feat = y.mean((1, 2))
    return feat @ p['wfc'].T + p['bfc']


# ----------------------------------------------------------------------------
# Deterministic parameter init + demo
# ----------------------------------------------------------------------------
def make_params(key, num_classes=10):
    ks = iter(jax.random.split(key, 32))
    nrm = lambda shape, s=0.1: s * jax.random.normal(next(ks), shape, jnp.float32)
    uni = lambda shape: 0.5 + 0.5 * jax.random.uniform(next(ks), shape, jnp.float32)

    def bn_params(c):
        return (1.0 + nrm((c,)), nrm((c,)), nrm((c,)), uni((c,)))  # g, beta, mean, var

    p = {}
    p['w1'], p['b1'] = nrm((8, 3, 4, 4)), nrm((8,), 0.05)
    p['g1'], p['be1'], p['m1'], p['v1'] = bn_params(8)
    p['w2'], p['b2'] = nrm((32, 8, 4, 4)), nrm((32,), 0.05)
    p['g2'], p['be2'], p['m2'], p['v2'] = bn_params(32)
    p['w3'], p['b3'] = nrm((64, 32, 4, 4)), nrm((64,), 0.05)
    p['g3'], p['be3'], p['m3'], p['v3'] = bn_params(64)
    p['wfc'], p['bfc'] = nrm((num_classes, 64)), nrm((num_classes,), 0.05)
    return p


if __name__ == "__main__":
    key = jax.random.PRNGKey(0)
    k_param, k_x = jax.random.split(key)
    params = make_params(k_param, num_classes=10)
    packed = prepare_params(params, num_classes=10)   # one-time, outside jit

    # Input consistent with the module: batch=2, 3 channels, 32x32 (NCHW).
    x = jax.random.normal(k_x, (2, 3, 32, 32), jnp.float32)

    out = conv_forward(x, packed, num_classes=10)
    out = jax.block_until_ready(out)
    assert out.shape == (2, 10) and out.dtype == jnp.float32

    ref = jax.block_until_ready(ref_forward(x, params))
    assert jnp.allclose(out, ref, rtol=1e-3, atol=1e-3), (out, ref)

    print("KERNEL_OK")
</pallas_src>

<mosaic_0001>
module attributes {stable_mosaic.version = 11 : i64} {
  func.func @_fused_kernel(%arg0: memref<64x128xf32, #tpu.memory_space<vmem>>, %arg1: memref<512x256xf32, #tpu.memory_space<vmem>>, %arg2: memref<1x256xf32, #tpu.memory_space<vmem>>, %arg3: memref<512x512xf32, #tpu.memory_space<vmem>>, %arg4: memref<1x512xf32, #tpu.memory_space<vmem>>, %arg5: memref<1024x256xf32, #tpu.memory_space<vmem>>, %arg6: memref<1x256xf32, #tpu.memory_space<vmem>>, %arg7: memref<128x128xf32, #tpu.memory_space<vmem>>, %arg8: memref<1x128xf32, #tpu.memory_space<vmem>>, %arg9: memref<2x10xf32, #tpu.memory_space<vmem>>, %arg10: memref<64x512xf32, #tpu.memory_space<vmem>>, %arg11: memref<32x512xf32, #tpu.memory_space<vmem>>, %arg12: memref<16x1024xf32, #tpu.memory_space<vmem>>, %arg13: memref<32x128xf32, #tpu.memory_space<vmem>>, %arg14: memref<16x256xf32, #tpu.memory_space<vmem>>) attributes {dimension_semantics = [], scalar_prefetch = 0 : i64, scratch_operands = 5 : i64, tpu.core_type = #tpu.core_type<tc>} {
    %cst = arith.constant 0.000000e+00 : f32
    %0 = vector.broadcast %cst : f32 to vector<64x512xf32>
    %c0 = arith.constant 0 : index
    %c0_0 = arith.constant 0 : index
    %1 = vector.load %arg10[%c0, %c0_0] : memref<64x512xf32, #tpu.memory_space<vmem>>, vector<64x512xf32>
    tpu.vector_store %arg10[%c0, %c0_0], %0 {strides = array<i32>} : memref<64x512xf32, #tpu.memory_space<vmem>>, vector<64x512xf32>,
    %c0_1 = arith.constant 0 : index
    %c0_2 = arith.constant 0 : index
    %2 = tpu.strided_load %arg0[%c0_1, %c0_2] {strides = array<i32: 2, 1>} : memref<64x128xf32, #tpu.memory_space<vmem>>, vector<14x128xf32>
    %c0_3 = arith.constant 0 : index
    %c0_4 = arith.constant 0 : index
    %3 = vector.load %arg10[%c0_3, %c0_4] : memref<64x512xf32, #tpu.memory_space<vmem>>, vector<14x128xf32>
    tpu.vector_store %arg10[%c0_3, %c0_4], %2 {strides = array<i32>} : memref<64x512xf32, #tpu.memory_space<vmem>>, vector<14x128xf32>,
    %c32 = arith.constant 32 : index
    %c0_5 = arith.constant 0 : index
    %4 = tpu.strided_load %arg0[%c32, %c0_5] {strides = array<i32: 2, 1>} : memref<64x128xf32, #tpu.memory_space<vmem>>, vector<14x128xf32>
    %c16 = arith.constant 16 : index
    %c0_6 = arith.constant 0 : index
    %5 = vector.load %arg10[%c16, %c0_6] : memref<64x512xf32, #tpu.memory_space<vmem>>, vector<14x128xf32>
    tpu.vector_store %arg10[%c16, %c0_6], %4 {strides = array<i32>} : memref<64x512xf32, #tpu.memory_space<vmem>>, vector<14x128xf32>,
    %c1 = arith.constant 1 : index
    %c0_7 = arith.constant 0 : index
    %6 = tpu.strided_load %arg0[%c1, %c0_7] {strides = array<i32: 2, 1>} : memref<64x128xf32, #tpu.memory_space<vmem>>, vector<14x128xf32>
    %c32_8 = arith.constant 32 : index
    %c0_9 = arith.constant 0 : index
    %7 = vector.load %arg10[%c32_8, %c0_9] : memref<64x512xf32, #tpu.memory_space<vmem>>, vector<14x128xf32>
    tpu.vector_store %arg10[%c32_8, %c0_9], %6 {strides = array<i32>} : memref<64x512xf32, #tpu.memory_space<vmem>>, vector<14x128xf32>,
    %c33 = arith.constant 33 : index
    %c0_10 = arith.constant 0 : index
    %8 = tpu.strided_load %arg0[%c33, %c0_10] {strides = array<i32: 2, 1>} : memref<64x128xf32, #tpu.memory_space<vmem>>, vector<14x128xf32>
    %c48 = arith.constant 48 : index
    %c0_11 = arith.constant 0 : index
    %9 = vector.load %arg10[%c48, %c0_11] : memref<64x512xf32, #tpu.memory_space<vmem>>, vector<14x128xf32>
    tpu.vector_store %arg10[%c48, %c0_11], %8 {strides = array<i32>} : memref<64x512xf32, #tpu.memory_space<vmem>>, vector<14x128xf32>,
    %c1_12 = arith.constant 1 : index
    %c0_13 = arith.constant 0 : index
    %10 = tpu.strided_load %arg0[%c1_12, %c0_13] {strides = array<i32: 2, 1>} : memref<64x128xf32, #tpu.memory_space<vmem>>, vector<14x128xf32>
    %c0_14 = arith.constant 0 : index
    %c128 = arith.constant 128 : index
    %11 = vector.load %arg10[%c0_14, %c128] : memref<64x512xf32, #tpu.memory_space<vmem>>, vector<14x128xf32>
    tpu.vector_store %arg10[%c0_14, %c128], %10 {strides = array<i32>} : memref<64x512xf32, #tpu.memory_space<vmem>>, vector<14x128xf32>,
    %c33_15 = arith.constant 33 : index
    %c0_16 = arith.constant 0 : index
    %12 = tpu.strided_load %arg0[%c33_15, %c0_16] {strides = array<i32: 2, 1>} : memref<64x128xf32, #tpu.memory_space<vmem>>, vector<14x128xf32>
    %c16_17 = arith.constant 16 : index
    %c128_18 = arith.constant 128 : index
    %13 = vector.load %arg10[%c16_17, %c128_18] : memref<64x512xf32, #tpu.memory_space<vmem>>, vector<14x128xf32>
    tpu.vector_store %arg10[%c16_17, %c128_18], %12 {strides = array<i32>} : memref<64x512xf32, #tpu.memory_space<vmem>>, vector<14x128xf32>,
    %c2 = arith.constant 2 : index
    %c0_19 = arith.constant 0 : index
    %14 = tpu.strided_load %arg0[%c2, %c0_19] {strides = array<i32: 2, 1>} : memref<64x128xf32, #tpu.memory_space<vmem>>, vector<14x128xf32>
    %c32_20 = arith.constant 32 : index
    %c128_21 = arith.constant 128 : index
    %15 = vector.load %arg10[%c32_20, %c128_21] : memref<64x512xf32, #tpu.memory_space<vmem>>, vector<14x128xf32>
    tpu.vector_store %arg10[%c32_20, %c128_21], %14 {strides = array<i32>} : memref<64x512xf32, #tpu.memory_space<vmem>>, vector<14x128xf32>,
    %c34 = arith.constant 34 : index
    %c0_22 = arith.constant 0 : index
    %16 = tpu.strided_load %arg0[%c34, %c0_22] {strides = array<i32: 2, 1>} : memref<64x128xf32, #tpu.memory_space<vmem>>, vector<14x128xf32>
    %c48_23 = arith.constant 48 : index
    %c128_24 = arith.constant 128 : index
    %17 = vector.load %arg10[%c48_23, %c128_24] : memref<64x512xf32, #tpu.memory_space<vmem>>, vector<14x128xf32>
    tpu.vector_store %arg10[%c48_23, %c128_24], %16 {strides = array<i32>} : memref<64x512xf32, #tpu.memory_space<vmem>>, vector<14x128xf32>,
    %c2_25 = arith.constant 2 : index
    %c0_26 = arith.constant 0 : index
    %18 = tpu.strided_load %arg0[%c2_25, %c0_26] {strides = array<i32: 2, 1>} : memref<64x128xf32, #tpu.memory_space<vmem>>, vector<14x128xf32>
    %c0_27 = arith.constant 0 : index
    %c256 = arith.constant 256 : index
    %19 = vector.load %arg10[%c0_27, %c256] : memref<64x512xf32, #tpu.memory_space<vmem>>, vector<14x128xf32>
    tpu.vector_store %arg10[%c0_27, %c256], %18 {strides = array<i32>} : memref<64x512xf32, #tpu.memory_space<vmem>>, vector<14x128xf32>,
    %c34_28 = arith.constant 34 : index
    %c0_29 = arith.constant 0 : index
    %20 = tpu.strided_load %arg0[%c34_28, %c0_29] {strides = array<i32: 2, 1>} : memref<64x128xf32, #tpu.memory_space<vmem>>, vector<14x128xf32>
    %c16_30 = arith.constant 16 : index
    %c256_31 = arith.constant 256 : index
    %21 = vector.load %arg10[%c16_30, %c256_31] : memref<64x512xf32, #tpu.memory_space<vmem>>, vector<14x128xf32>
    tpu.vector_store %arg10[%c16_30, %c256_31], %20 {strides = array<i32>} : memref<64x512xf32, #tpu.memory_space<vmem>>, vector<14x128xf32>,
    %c3 = arith.constant 3 : index
    %c0_32 = arith.constant 0 : index
    %22 = tpu.strided_load %arg0[%c3, %c0_32] {strides = array<i32: 2, 1>} : memref<64x128xf32, #tpu.memory_space<vmem>>, vector<14x128xf32>
    %c32_33 = arith.constant 32 : index
    %c256_34 = arith.constant 256 : index
    %23 = vector.load %arg10[%c32_33, %c256_34] : memref<64x512xf32, #tpu.memory_space<vmem>>, vector<14x128xf32>
    tpu.vector_store %arg10[%c32_33, %c256_34], %22 {strides = array<i32>} : memref<64x512xf32, #tpu.memory_space<vmem>>, vector<14x128xf32>,
    %c35 = arith.constant 35 : index
    %c0_35 = arith.constant 0 : index
    %24 = tpu.strided_load %arg0[%c35, %c0_35] {strides = array<i32: 2, 1>} : memref<64x128xf32, #tpu.memory_space<vmem>>, vector<14x128xf32>
    %c48_36 = arith.constant 48 : index
    %c256_37 = arith.constant 256 : index
    %25 = vector.load %arg10[%c48_36, %c256_37] : memref<64x512xf32, #tpu.memory_space<vmem>>, vector<14x128xf32>
    tpu.vector_store %arg10[%c48_36, %c256_37], %24 {strides = array<i32>} : memref<64x512xf32, #tpu.memory_space<vmem>>, vector<14x128xf32>,
    %c3_38 = arith.constant 3 : index
    %c0_39 = arith.constant 0 : index
    %26 = tpu.strided_load %arg0[%c3_38, %c0_39] {strides = array<i32: 2, 1>} : memref<64x128xf32, #tpu.memory_space<vmem>>, vector<14x128xf32>
    %c0_40 = arith.constant 0 : index
    %c384 = arith.constant 384 : index
    %27 = vector.load %arg10[%c0_40, %c384] : memref<64x512xf32, #tpu.memory_space<vmem>>, vector<14x128xf32>
    tpu.vector_store %arg10[%c0_40, %c384], %26 {strides = array<i32>} : memref<64x512xf32, #tpu.memory_space<vmem>>, vector<14x128xf32>,
    %c35_41 = arith.constant 35 : index
    %c0_42 = arith.constant 0 : index
    %28 = tpu.strided_load %arg0[%c35_41, %c0_42] {strides = array<i32: 2, 1>} : memref<64x128xf32, #tpu.memory_space<vmem>>, vector<14x128xf32>
    %c16_43 = arith.constant 16 : index
    %c384_44 = arith.constant 384 : index
    %29 = vector.load %arg10[%c16_43, %c384_44] : memref<64x512xf32, #tpu.memory_space<vmem>>, vector<14x128xf32>
    tpu.vector_store %arg10[%c16_43, %c384_44], %28 {strides = array<i32>} : memref<64x512xf32, #tpu.memory_space<vmem>>, vector<14x128xf32>,
    %c4 = arith.constant 4 : index
    %c0_45 = arith.constant 0 : index
    %30 = tpu.strided_load %arg0[%c4, %c0_45] {strides = array<i32: 2, 1>} : memref<64x128xf32, #tpu.memory_space<vmem>>, vector<14x128xf32>
    %c32_46 = arith.constant 32 : index
    %c384_47 = arith.constant 384 : index
    %31 = vector.load %arg10[%c32_46, %c384_47] : memref<64x512xf32, #tpu.memory_space<vmem>>, vector<14x128xf32>
    tpu.vector_store %arg10[%c32_46, %c384_47], %30 {strides = array<i32>} : memref<64x512xf32, #tpu.memory_space<vmem>>, vector<14x128xf32>,
    %c36 = arith.constant 36 : index
    %c0_48 = arith.constant 0 : index
    %32 = tpu.strided_load %arg0[%c36, %c0_48] {strides = array<i32: 2, 1>} : memref<64x128xf32, #tpu.memory_space<vmem>>, vector<14x128xf32>
    %c48_49 = arith.constant 48 : index
    %c384_50 = arith.constant 384 : index
    %33 = vector.load %arg10[%c48_49, %c384_50] : memref<64x512xf32, #tpu.memory_space<vmem>>, vector<14x128xf32>
    tpu.vector_store %arg10[%c48_49, %c384_50], %32 {strides = array<i32>} : memref<64x512xf32, #tpu.memory_space<vmem>>, vector<14x128xf32>,
    %c0_51 = arith.constant 0 : index
    %c0_52 = arith.constant 0 : index
    %34 = vector.load %arg10[%c0_51, %c0_52] : memref<64x512xf32, #tpu.memory_space<vmem>>, vector<64x512xf32>
    %c0_53 = arith.constant 0 : index
    %c0_54 = arith.constant 0 : index
    %35 = vector.load %arg1[%c0_53, %c0_54] : memref<512x256xf32, #tpu.memory_space<vmem>>, vector<512x256xf32>
    %cst_55 = arith.constant dense<0.000000e+00> : vector<64x256xf32>
    %36 = tpu.matmul %34, %35, %cst_55 {dimension_numbers = #tpu.dot_dimension_numbers<[1], [0], [0], [1], [0, 0, 1, 1], [], []>} : vector<64x512xf32>, vector<512x256xf32>, vector<64x256xf32> -> vector<64x256xf32>
    %c0_56 = arith.constant 0 : index
    %c0_57 = arith.constant 0 : index
    %37 = vector.load %arg2[%c0_56, %c0_57] : memref<1x256xf32, #tpu.memory_space<vmem>>, vector<1x256xf32>
    %38 = vector.broadcast %37 : vector<1x256xf32> to vector<64x256xf32>
    %39 = arith.addf %36, %38 : vector<64x256xf32>
    %cst_58 = arith.constant 0.000000e+00 : f32
    %40 = vector.broadcast %cst_58 : f32 to vector<64x256xf32>
    %41 = arith.maximumf %39, %40 : vector<64x256xf32>
    %42 = vector.extract_strided_slice %41 {offsets = [0, 0], sizes = [32, 256], strides = [1, 1]} : vector<64x256xf32> to vector<32x256xf32>
    %43 = vector.extract_strided_slice %41 {offsets = [32, 0], sizes = [32, 256], strides = [1, 1]} : vector<64x256xf32> to vector<32x256xf32>
    %44 = arith.addf %42, %43 : vector<32x256xf32>
    %45 = vector.extract_strided_slice %44 {offsets = [0, 0], sizes = [32, 128], strides = [1, 1]} : vector<32x256xf32> to vector<32x128xf32>
    %46 = vector.extract_strided_slice %44 {offsets = [0, 128], sizes = [32, 128], strides = [1, 1]} : vector<32x256xf32> to vector<32x128xf32>
    %47 = arith.addf %45, %46 : vector<32x128xf32>
    %c0_59 = arith.constant 0 : index
    %c0_60 = arith.constant 0 : index
    %48 = vector.load %arg13[%c0_59, %c0_60] : memref<32x128xf32, #tpu.memory_space<vmem>>, vector<32x128xf32>
    tpu.vector_store %arg13[%c0_59, %c0_60], %47 {strides = array<i32>} : memref<32x128xf32, #tpu.memory_space<vmem>>, vector<32x128xf32>,
    %cst_61 = arith.constant 0.000000e+00 : f32
    %49 = vector.broadcast %cst_61 : f32 to vector<32x512xf32>
    %c0_62 = arith.constant 0 : index
    %c0_63 = arith.constant 0 : index
    %50 = vector.load %arg11[%c0_62, %c0_63] : memref<32x512xf32, #tpu.memory_space<vmem>>, vector<32x512xf32>
    tpu.vector_store %arg11[%c0_62, %c0_63], %49 {strides = array<i32>} : memref<32x512xf32, #tpu.memory_space<vmem>>, vector<32x512xf32>,
    %c0_64 = arith.constant 0 : index
    %c0_65 = arith.constant 0 : index
    %51 = tpu.strided_load %arg13[%c0_64, %c0_65] {strides = array<i32: 2, 1>} : memref<32x128xf32, #tpu.memory_space<vmem>>, vector<5x128xf32>
    %c0_66 = arith.constant 0 : index
    %c0_67 = arith.constant 0 : index
    %52 = vector.load %arg11[%c0_66, %c0_67] : memref<32x512xf32, #tpu.memory_space<vmem>>, vector<5x128xf32>
    tpu.vector_store %arg11[%c0_66, %c0_67], %51 {strides = array<i32>} : memref<32x512xf32, #tpu.memory_space<vmem>>, vector<5x128xf32>,
    %c16_68 = arith.constant 16 : index
    %c0_69 = arith.constant 0 : index
    %53 = tpu.strided_load %arg13[%c16_68, %c0_69] {strides = array<i32: 2, 1>} : memref<32x128xf32, #tpu.memory_space<vmem>>, vector<5x128xf32>
    %c8 = arith.constant 8 : index
    %c0_70 = arith.constant 0 : index
    %54 = vector.load %arg11[%c8, %c0_70] : memref<32x512xf32, #tpu.memory_space<vmem>>, vector<5x128xf32>
    tpu.vector_store %arg11[%c8, %c0_70], %53 {strides = array<i32>} : memref<32x512xf32, #tpu.memory_space<vmem>>, vector<5x128xf32>,
    %c1_71 = arith.constant 1 : index
    %c0_72 = arith.constant 0 : index
    %55 = tpu.strided_load %arg13[%c1_71, %c0_72] {strides = array<i32: 2, 1>} : memref<32x128xf32, #tpu.memory_space<vmem>>, vector<5x128xf32>
    %c16_73 = arith.constant 16 : index
    %c0_74 = arith.constant 0 : index
    %56 = vector.load %arg11[%c16_73, %c0_74] : memref<32x512xf32, #tpu.memory_space<vmem>>, vector<5x128xf32>
    tpu.vector_store %arg11[%c16_73, %c0_74], %55 {strides = array<i32>} : memref<32x512xf32, #tpu.memory_space<vmem>>, vector<5x128xf32>,
    %c17 = arith.constant 17 : index
    %c0_75 = arith.constant 0 : index
    %57 = tpu.strided_load %arg13[%c17, %c0_75] {strides = array<i32: 2, 1>} : memref<32x128xf32, #tpu.memory_space<vmem>>, vector<5x128xf32>
    %c24 = arith.constant 24 : index
    %c0_76 = arith.constant 0 : index
    %58 = vector.load %arg11[%c24, %c0_76] : memref<32x512xf32, #tpu.memory_space<vmem>>, vector<5x128xf32>
    tpu.vector_store %arg11[%c24, %c0_76], %57 {strides = array<i32>} : memref<32x512xf32, #tpu.memory_space<vmem>>, vector<5x128xf32>,
    %c1_77 = arith.constant 1 : index
    %c0_78 = arith.constant 0 : index
    %59 = tpu.strided_load %arg13[%c1_77, %c0_78] {strides = array<i32: 2, 1>} : memref<32x128xf32, #tpu.memory_space<vmem>>, vector<5x128xf32>
    %c0_79 = arith.constant 0 : index
    %c128_80 = arith.constant 128 : index
    %60 = vector.load %arg11[%c0_79, %c128_80] : memref<32x512xf32, #tpu.memory_space<vmem>>, vector<5x128xf32>
    tpu.vector_store %arg11[%c0_79, %c128_80], %59 {strides = array<i32>} : memref<32x512xf32, #tpu.memory_space<vmem>>, vector<5x128xf32>,
    %c17_81 = arith.constant 17 : index
    %c0_82 = arith.constant 0 : index
    %61 = tpu.strided_load %arg13[%c17_81, %c0_82] {strides = array<i32: 2, 1>} : memref<32x128xf32, #tpu.memory_space<vmem>>, vector<5x128xf32>
    %c8_83 = arith.constant 8 : index
    %c128_84 = arith.constant 128 : index
    %62 = vector.load %arg11[%c8_83, %c128_84] : memref<32x512xf32, #tpu.memory_space<vmem>>, vector<5x128xf32>
    tpu.vector_store %arg11[%c8_83, %c128_84], %61 {strides = array<i32>} : memref<32x512xf32, #tpu.memory_space<vmem>>, vector<5x128xf32>,
    %c2_85 = arith.constant 2 : index
    %c0_86 = arith.constant 0 : index
    %63 = tpu.strided_load %arg13[%c2_85, %c0_86] {strides = array<i32: 2, 1>} : memref<32x128xf32, #tpu.memory_space<vmem>>, vector<5x128xf32>
    %c16_87 = arith.constant 16 : index
    %c128_88 = arith.constant 128 : index
    %64 = vector.load %arg11[%c16_87, %c128_88] : memref<32x512xf32, #tpu.memory_space<vmem>>, vector<5x128xf32>
    tpu.vector_store %arg11[%c16_87, %c128_88], %63 {strides = array<i32>} : memref<32x512xf32, #tpu.memory_space<vmem>>, vector<5x128xf32>,
    %c18 = arith.constant 18 : index
    %c0_89 = arith.constant 0 : index
    %65 = tpu.strided_load %arg13[%c18, %c0_89] {strides = array<i32: 2, 1>} : memref<32x128xf32, #tpu.memory_space<vmem>>, vector<5x128xf32>
    %c24_90 = arith.constant 24 : index
    %c128_91 = arith.constant 128 : index
    %66 = vector.load %arg11[%c24_90, %c128_91] : memref<32x512xf32, #tpu.memory_space<vmem>>, vector<5x128xf32>
    tpu.vector_store %arg11[%c24_90, %c128_91], %65 {strides = array<i32>} : memref<32x512xf32, #tpu.memory_space<vmem>>, vector<5x128xf32>,
    %c2_92 = arith.constant 2 : index
    %c0_93 = arith.constant 0 : index
    %67 = tpu.strided_load %arg13[%c2_92, %c0_93] {strides = array<i32: 2, 1>} : memref<32x128xf32, #tpu.memory_space<vmem>>, vector<5x128xf32>
    %c0_94 = arith.constant 0 : index
    %c256_95 = arith.constant 256 : index
    %68 = vector.load %arg11[%c0_94, %c256_95] : memref<32x512xf32, #tpu.memory_space<vmem>>, vector<5x128xf32>
    tpu.vector_store %arg11[%c0_94, %c256_95], %67 {strides = array<i32>} : memref<32x512xf32, #tpu.memory_space<vmem>>, vector<5x128xf32>,
    %c18_96 = arith.constant 18 : index
    %c0_97 = arith.constant 0 : index
    %69 = tpu.strided_load %arg13[%c18_96, %c0_97] {strides = array<i32: 2, 1>} : memref<32x128xf32, #tpu.memory_space<vmem>>, vector<5x128xf32>
    %c8_98 = arith.constant 8 : index
    %c256_99 = arith.constant 256 : index
    %70 = vector.load %arg11[%c8_98, %c256_99] : memref<32x512xf32, #tpu.memory_space<vmem>>, vector<5x128xf32>
    tpu.vector_store %arg11[%c8_98, %c256_99], %69 {strides = array<i32>} : memref<32x512xf32, #tpu.memory_space<vmem>>, vector<5x128xf32>,
    %c3_100 = arith.constant 3 : index
    %c0_101 = arith.constant 0 : index
    %71 = tpu.strided_load %arg13[%c3_100, %c0_101] {strides = array<i32: 2, 1>} : memref<32x128xf32, #tpu.memory_space<vmem>>, vector<5x128xf32>
    %c16_102 = arith.constant 16 : index
    %c256_103 = arith.constant 256 : index
    %72 = vector.load %arg11[%c16_102, %c256_103] : memref<32x512xf32, #tpu.memory_space<vmem>>, vector<5x128xf32>
    tpu.vector_store %arg11[%c16_102, %c256_103], %71 {strides = array<i32>} : memref<32x512xf32, #tpu.memory_space<vmem>>, vector<5x128xf32>,
    %c19 = arith.constant 19 : index
    %c0_104 = arith.constant 0 : index
    %73 = tpu.strided_load %arg13[%c19, %c0_104] {strides = array<i32: 2, 1>} : memref<32x128xf32, #tpu.memory_space<vmem>>, vector<5x128xf32>
    %c24_105 = arith.constant 24 : index
    %c256_106 = arith.constant 256 : index
    %74 = vector.load %arg11[%c24_105, %c256_106] : memref<32x512xf32, #tpu.memory_space<vmem>>, vector<5x128xf32>
    tpu.vector_store %arg11[%c24_105, %c256_106], %73 {strides = array<i32>} : memref<32x512xf32, #tpu.memory_space<vmem>>, vector<5x128xf32>,
    %c3_107 = arith.constant 3 : index
    %c0_108 = arith.constant 0 : index
    %75 = tpu.strided_load %arg13[%c3_107, %c0_108] {strides = array<i32: 2, 1>} : memref<32x128xf32, #tpu.memory_space<vmem>>, vector<5x128xf32>
    %c0_109 = arith.constant 0 : index
    %c384_110 = arith.constant 384 : index
    %76 = vector.load %arg11[%c0_109, %c384_110] : memref<32x512xf32, #tpu.memory_space<vmem>>, vector<5x128xf32>
    tpu.vector_store %arg11[%c0_109, %c384_110], %75 {strides = array<i32>} : memref<32x512xf32, #tpu.memory_space<vmem>>, vector<5x128xf32>,
    %c19_111 = arith.constant 19 : index
    %c0_112 = arith.constant 0 : index
    %77 = tpu.strided_load %arg13[%c19_111, %c0_112] {strides = array<i32: 2, 1>} : memref<32x128xf32, #tpu.memory_space<vmem>>, vector<5x128xf32>
    %c8_113 = arith.constant 8 : index
    %c384_114 = arith.constant 384 : index
    %78 = vector.load %arg11[%c8_113, %c384_114] : memref<32x512xf32, #tpu.memory_space<vmem>>, vector<5x128xf32>
    tpu.vector_store %arg11[%c8_113, %c384_114], %77 {strides = array<i32>} : memref<32x512xf32, #tpu.memory_space<vmem>>, vector<5x128xf32>,
    %c4_115 = arith.constant 4 : index
    %c0_116 = arith.constant 0 : index
    %79 = tpu.strided_load %arg13[%c4_115, %c0_116] {strides = array<i32: 2, 1>} : memref<32x128xf32, #tpu.memory_space<vmem>>, vector<5x128xf32>
    %c16_117 = arith.constant 16 : index
    %c384_118 = arith.constant 384 : index
    %80 = vector.load %arg11[%c16_117, %c384_118] : memref<32x512xf32, #tpu.memory_space<vmem>>, vector<5x128xf32>
    tpu.vector_store %arg11[%c16_117, %c384_118], %79 {strides = array<i32>} : memref<32x512xf32, #tpu.memory_space<vmem>>, vector<5x128xf32>,
    %c20 = arith.constant 20 : index
    %c0_119 = arith.constant 0 : index
    %81 = tpu.strided_load %arg13[%c20, %c0_119] {strides = array<i32: 2, 1>} : memref<32x128xf32, #tpu.memory_space<vmem>>, vector<5x128xf32>
    %c24_120 = arith.constant 24 : index
    %c384_121 = arith.constant 384 : index
    %82 = vector.load %arg11[%c24_120, %c384_121] : memref<32x512xf32, #tpu.memory_space<vmem>>, vector<5x128xf32>
    tpu.vector_store %arg11[%c24_120, %c384_121], %81 {strides = array<i32>} : memref<32x512xf32, #tpu.memory_space<vmem>>, vector<5x128xf32>,
    %c0_122 = arith.constant 0 : index
    %c0_123 = arith.constant 0 : index
    %83 = vector.load %arg11[%c0_122, %c0_123] : memref<32x512xf32, #tpu.memory_space<vmem>>, vector<32x512xf32>
    %c0_124 = arith.constant 0 : index
    %c0_125 = arith.constant 0 : index
    %84 = vector.load %arg3[%c0_124, %c0_125] : memref<512x512xf32, #tpu.memory_space<vmem>>, vector<512x512xf32>
    %cst_126 = arith.constant dense<0.000000e+00> : vector<32x512xf32>
    %85 = tpu.matmul %83, %84, %cst_126 {dimension_numbers = #tpu.dot_dimension_numbers<[1], [0], [0], [1], [0, 0, 1, 1], [], []>} : vector<32x512xf32>, vector<512x512xf32>, vector<32x512xf32> -> vector<32x512xf32>
    %c0_127 = arith.constant 0 : index
    %c0_128 = arith.constant 0 : index
    %86 = vector.load %arg4[%c0_127, %c0_128] : memref<1x512xf32, #tpu.memory_space<vmem>>, vector<1x512xf32>
    %87 = vector.broadcast %86 : vector<1x512xf32> to vector<32x512xf32>
    %88 = arith.addf %85, %87 : vector<32x512xf32>
    %cst_129 = arith.constant 0.000000e+00 : f32
    %89 = vector.broadcast %cst_129 : f32 to vector<32x512xf32>
    %90 = arith.maximumf %88, %89 : vector<32x512xf32>
    %91 = vector.extract_strided_slice %90 {offsets = [0, 0], sizes = [16, 512], strides = [1, 1]} : vector<32x512xf32> to vector<16x512xf32>
    %92 = vector.extract_strided_slice %90 {offsets = [16, 0], sizes = [16, 512], strides = [1, 1]} : vector<32x512xf32> to vector<16x512xf32>
    %93 = arith.addf %91, %92 : vector<16x512xf32>
    %94 = vector.extract_strided_slice %93 {offsets = [0, 0], sizes = [16, 256], strides = [1, 1]} : vector<16x512xf32> to vector<16x256xf32>
    %95 = vector.extract_strided_slice %93 {offsets = [0, 256], sizes = [16, 256], strides = [1, 1]} : vector<16x512xf32> to vector<16x256xf32>
    %96 = arith.addf %94, %95 : vector<16x256xf32>
    %c0_130 = arith.constant 0 : index
    %c0_131 = arith.constant 0 : index
    %97 = vector.load %arg14[%c0_130, %c0_131] : memref<16x256xf32, #tpu.memory_space<vmem>>, vector<16x256xf32>
    tpu.vector_store %arg14[%c0_130, %c0_131], %96 {strides = array<i32>} : memref<16x256xf32, #tpu.memory_space<vmem>>, vector<16x256xf32>,
    %cst_132 = arith.constant 0.000000e+00 : f32
    %98 = vector.broadcast %cst_132 : f32 to vector<16x1024xf32>
    %c0_133 = arith.constant 0 : index
    %c0_134 = arith.constant 0 : index
    %99 = vector.load %arg12[%c0_133, %c0_134] : memref<16x1024xf32, #tpu.memory_space<vmem>>, vector<16x1024xf32>
    tpu.vector_store %arg12[%c0_133, %c0_134], %98 {strides = array<i32>} : memref<16x1024xf32, #tpu.memory_space<vmem>>, vector<16x1024xf32>,
    %c0_135 = arith.constant 0 : index
    %c0_136 = arith.constant 0 : index
    %100 = vector.load %arg14[%c0_135, %c0_136] : memref<16x256xf32, #tpu.memory_space<vmem>>, vector<1x256xf32>
    %c0_137 = arith.constant 0 : index
    %c0_138 = arith.constant 0 : index
    %101 = vector.load %arg12[%c0_137, %c0_138] : memref<16x1024xf32, #tpu.memory_space<vmem>>, vector<1x256xf32>
    tpu.vector_store %arg12[%c0_137, %c0_138], %100 {strides = array<i32>} : memref<16x1024xf32, #tpu.memory_space<vmem>>, vector<1x256xf32>,
    %c8_139 = arith.constant 8 : index
    %c0_140 = arith.constant 0 : index
    %102 = vector.load %arg14[%c8_139, %c0_140] : memref<16x256xf32, #tpu.memory_space<vmem>>, vector<1x256xf32>
    %c1_141 = arith.constant 1 : index
    %c0_142 = arith.constant 0 : index
    %103 = vector.load %arg12[%c1_141, %c0_142] : memref<16x1024xf32, #tpu.memory_space<vmem>>, vector<1x256xf32>
    tpu.vector_store %arg12[%c1_141, %c0_142], %102 {strides = array<i32>} : memref<16x1024xf32, #tpu.memory_space<vmem>>, vector<1x256xf32>,
    %c1_143 = arith.constant 1 : index
    %c0_144 = arith.constant 0 : index
    %104 = vector.load %arg14[%c1_143, %c0_144] : memref<16x256xf32, #tpu.memory_space<vmem>>, vector<1x256xf32>
    %c8_145 = arith.constant 8 : index
    %c0_146 = arith.constant 0 : index
    %105 = vector.load %arg12[%c8_145, %c0_146] : memref<16x1024xf32, #tpu.memory_space<vmem>>, vector<1x256xf32>
    tpu.vector_store %arg12[%c8_145, %c0_146], %104 {strides = array<i32>} : memref<16x1024xf32, #tpu.memory_space<vmem>>, vector<1x256xf32>,
    %c9 = arith.constant 9 : index
    %c0_147 = arith.constant 0 : index
    %106 = vector.load %arg14[%c9, %c0_147] : memref<16x256xf32, #tpu.memory_space<vmem>>, vector<1x256xf32>
    %c9_148 = arith.constant 9 : index
    %c0_149 = arith.constant 0 : index
    %107 = vector.load %arg12[%c9_148, %c0_149] : memref<16x1024xf32, #tpu.memory_space<vmem>>, vector<1x256xf32>
    tpu.vector_store %arg12[%c9_148, %c0_149], %106 {strides = array<i32>} : memref<16x1024xf32, #tpu.memory_space<vmem>>, vector<1x256xf32>,
    %c1_150 = arith.constant 1 : index
    %c0_151 = arith.constant 0 : index
    %108 = vector.load %arg14[%c1_150, %c0_151] : memref<16x256xf32, #tpu.memory_space<vmem>>, vector<1x256xf32>
    %c0_152 = arith.constant 0 : index
    %c256_153 = arith.constant 256 : index
    %109 = vector.load %arg12[%c0_152, %c256_153] : memref<16x1024xf32, #tpu.memory_space<vmem>>, vector<1x256xf32>
    tpu.vector_store %arg12[%c0_152, %c256_153], %108 {strides = array<i32>} : memref<16x1024xf32, #tpu.memory_space<vmem>>, vector<1x256xf32>,
    %c9_154 = arith.constant 9 : index
    %c0_155 = arith.constant 0 : index
    %110 = vector.load %arg14[%c9_154, %c0_155] : memref<16x256xf32, #tpu.memory_space<vmem>>, vector<1x256xf32>
    %c1_156 = arith.constant 1 : index
    %c256_157 = arith.constant 256 : index
    %111 = vector.load %arg12[%c1_156, %c256_157] : memref<16x1024xf32, #tpu.memory_space<vmem>>, vector<1x256xf32>
    tpu.vector_store %arg12[%c1_156, %c256_157], %110 {strides = array<i32>} : memref<16x1024xf32, #tpu.memory_space<vmem>>, vector<1x256xf32>,
    %c2_158 = arith.constant 2 : index
    %c0_159 = arith.constant 0 : index
    %112 = vector.load %arg14[%c2_158, %c0_159] : memref<16x256xf32, #tpu.memory_space<vmem>>, vector<1x256xf32>
    %c8_160 = arith.constant 8 : index
    %c256_161 = arith.constant 256 : index
    %113 = vector.load %arg12[%c8_160, %c256_161] : memref<16x1024xf32, #tpu.memory_space<vmem>>, vector<1x256xf32>
    tpu.vector_store %arg12[%c8_160, %c256_161], %112 {strides = array<i32>} : memref<16x1024xf32, #tpu.memory_space<vmem>>, vector<1x256xf32>,
    %c10 = arith.constant 10 : index
    %c0_162 = arith.constant 0 : index
    %114 = vector.load %arg14[%c10, %c0_162] : memref<16x256xf32, #tpu.memory_space<vmem>>, vector<1x256xf32>
    %c9_163 = arith.constant 9 : index
    %c256_164 = arith.constant 256 : index
    %115 = vector.load %arg12[%c9_163, %c256_164] : memref<16x1024xf32, #tpu.memory_space<vmem>>, vector<1x256xf32>
    tpu.vector_store %arg12[%c9_163, %c256_164], %114 {strides = array<i32>} : memref<16x1024xf32, #tpu.memory_space<vmem>>, vector<1x256xf32>,
    %c2_165 = arith.constant 2 : index
    %c0_166 = arith.constant 0 : index
    %116 = vector.load %arg14[%c2_165, %c0_166] : memref<16x256xf32, #tpu.memory_space<vmem>>, vector<1x256xf32>
    %c0_167 = arith.constant 0 : index
    %c512 = arith.constant 512 : index
    %117 = vector.load %arg12[%c0_167, %c512] : memref<16x1024xf32, #tpu.memory_space<vmem>>, vector<1x256xf32>
    tpu.vector_store %arg12[%c0_167, %c512], %116 {strides = array<i32>} : memref<16x1024xf32, #tpu.memory_space<vmem>>, vector<1x256xf32>,
    %c10_168 = arith.constant 10 : index
    %c0_169 = arith.constant 0 : index
    %118 = vector.load %arg14[%c10_168, %c0_169] : memref<16x256xf32, #tpu.memory_space<vmem>>, vector<1x256xf32>
    %c1_170 = arith.constant 1 : index
    %c512_171 = arith.constant 512 : index
    %119 = vector.load %arg12[%c1_170, %c512_171] : memref<16x1024xf32, #tpu.memory_space<vmem>>, vector<1x256xf32>
    tpu.vector_store %arg12[%c1_170, %c512_171], %118 {strides = array<i32>} : memref<16x1024xf32, #tpu.memory_space<vmem>>, vector<1x256xf32>,
    %c3_172 = arith.constant 3 : index
    %c0_173 = arith.constant 0 : index
    %120 = vector.load %arg14[%c3_172, %c0_173] : memref<16x256xf32, #tpu.memory_space<vmem>>, vector<1x256xf32>
    %c8_174 = arith.constant 8 : index
    %c512_175 = arith.constant 512 : index
    %121 = vector.load %arg12[%c8_174, %c512_175] : memref<16x1024xf32, #tpu.memory_space<vmem>>, vector<1x256xf32>
    tpu.vector_store %arg12[%c8_174, %c512_175], %120 {strides = array<i32>} : memref<16x1024xf32, #tpu.memory_space<vmem>>, vector<1x256xf32>,
    %c11 = arith.constant 11 : index
    %c0_176 = arith.constant 0 : index
    %122 = vector.load %arg14[%c11, %c0_176] : memref<16x256xf32, #tpu.memory_space<vmem>>, vector<1x256xf32>
    %c9_177 = arith.constant 9 : index
    %c512_178 = arith.constant 512 : index
    %123 = vector.load %arg12[%c9_177, %c512_178] : memref<16x1024xf32, #tpu.memory_space<vmem>>, vector<1x256xf32>
    tpu.vector_store %arg12[%c9_177, %c512_178], %122 {strides = array<i32>} : memref<16x1024xf32, #tpu.memory_space<vmem>>, vector<1x256xf32>,
    %c3_179 = arith.constant 3 : index
    %c0_180 = arith.constant 0 : index
    %124 = vector.load %arg14[%c3_179, %c0_180] : memref<16x256xf32, #tpu.memory_space<vmem>>, vector<1x256xf32>
    %c0_181 = arith.constant 0 : index
    %c768 = arith.constant 768 : index
    %125 = vector.load %arg12[%c0_181, %c768] : memref<16x1024xf32, #tpu.memory_space<vmem>>, vector<1x256xf32>
    tpu.vector_store %arg12[%c0_181, %c768], %124 {strides = array<i32>} : memref<16x1024xf32, #tpu.memory_space<vmem>>, vector<1x256xf32>,
    %c11_182 = arith.constant 11 : index
    %c0_183 = arith.constant 0 : index
    %126 = vector.load %arg14[%c11_182, %c0_183] : memref<16x256xf32, #tpu.memory_space<vmem>>, vector<1x256xf32>
    %c1_184 = arith.constant 1 : index
    %c768_185 = arith.constant 768 : index
    %127 = vector.load %arg12[%c1_184, %c768_185] : memref<16x1024xf32, #tpu.memory_space<vmem>>, vector<1x256xf32>
    tpu.vector_store %arg12[%c1_184, %c768_185], %126 {strides = array<i32>} : memref<16x1024xf32, #tpu.memory_space<vmem>>, vector<1x256xf32>,
    %c4_186 = arith.constant 4 : index
    %c0_187 = arith.constant 0 : index
    %128 = vector.load %arg14[%c4_186, %c0_187] : memref<16x256xf32, #tpu.memory_space<vmem>>, vector<1x256xf32>
    %c8_188 = arith.constant 8 : index
    %c768_189 = arith.constant 768 : index
    %129 = vector.load %arg12[%c8_188, %c768_189] : memref<16x1024xf32, #tpu.memory_space<vmem>>, vector<1x256xf32>
    tpu.vector_store %arg12[%c8_188, %c768_189], %128 {strides = array<i32>} : memref<16x1024xf32, #tpu.memory_space<vmem>>, vector<1x256xf32>,
    %c12 = arith.constant 12 : index
    %c0_190 = arith.constant 0 : index
    %130 = vector.load %arg14[%c12, %c0_190] : memref<16x256xf32, #tpu.memory_space<vmem>>, vector<1x256xf32>
    %c9_191 = arith.constant 9 : index
    %c768_192 = arith.constant 768 : index
    %131 = vector.load %arg12[%c9_191, %c768_192] : memref<16x1024xf32, #tpu.memory_space<vmem>>, vector<1x256xf32>
    tpu.vector_store %arg12[%c9_191, %c768_192], %130 {strides = array<i32>} : memref<16x1024xf32, #tpu.memory_space<vmem>>, vector<1x256xf32>,
    %c0_193 = arith.constant 0 : index
    %c0_194 = arith.constant 0 : index
    %132 = vector.load %arg12[%c0_193, %c0_194] : memref<16x1024xf32, #tpu.memory_space<vmem>>, vector<16x1024xf32>
    %c0_195 = arith.constant 0 : index
    %c0_196 = arith.constant 0 : index
    %133 = vector.load %arg5[%c0_195, %c0_196] : memref<1024x256xf32, #tpu.memory_space<vmem>>, vector<1024x256xf32>
    %cst_197 = arith.constant dense<0.000000e+00> : vector<16x256xf32>
    %134 = tpu.matmul %132, %133, %cst_197 {dimension_numbers = #tpu.dot_dimension_numbers<[1], [0], [0], [1], [0, 0, 1, 1], [], []>} : vector<16x1024xf32>, vector<1024x256xf32>, vector<16x256xf32> -> vector<16x256xf32>
    %c0_198 = arith.constant 0 : index
    %c0_199 = arith.constant 0 : index
    %135 = vector.load %arg6[%c0_198, %c0_199] : memref<1x256xf32, #tpu.memory_space<vmem>>, vector<1x256xf32>
    %136 = vector.broadcast %135 : vector<1x256xf32> to vector<16x256xf32>
    %137 = arith.addf %134, %136 : vector<16x256xf32>
    %cst_200 = arith.constant 0.000000e+00 : f32
    %138 = vector.broadcast %cst_200 : f32 to vector<16x256xf32>
    %139 = arith.maximumf %137, %138 : vector<16x256xf32>
    %140 = vector.extract_strided_slice %139 {offsets = [0, 0], sizes = [8, 256], strides = [1, 1]} : vector<16x256xf32> to vector<8x256xf32>
    %141 = vector.extract_strided_slice %139 {offsets = [8, 0], sizes = [8, 256], strides = [1, 1]} : vector<16x256xf32> to vector<8x256xf32>
    %142 = arith.addf %140, %141 : vector<8x256xf32>
    %143 = vector.extract_strided_slice %142 {offsets = [0, 0], sizes = [8, 128], strides = [1, 1]} : vector<8x256xf32> to vector<8x128xf32>
    %144 = vector.extract_strided_slice %142 {offsets = [0, 128], sizes = [8, 128], strides = [1, 1]} : vector<8x256xf32> to vector<8x128xf32>
    %145 = arith.addf %143, %144 : vector<8x128xf32>
    %c0_201 = arith.constant 0 : index
    %c0_202 = arith.constant 0 : index
    %146 = vector.load %arg7[%c0_201, %c0_202] : memref<128x128xf32, #tpu.memory_space<vmem>>, vector<128x128xf32>
    %cst_203 = arith.constant dense<0.000000e+00> : vector<8x128xf32>
    %147 = tpu.matmul %145, %146, %cst_203 {dimension_numbers = #tpu.dot_dimension_numbers<[1], [0], [0], [1], [0, 0, 1, 1], [], []>} : vector<8x128xf32>, vector<128x128xf32>, vector<8x128xf32> -> vector<8x128xf32>
    %c0_204 = arith.constant 0 : index
    %c0_205 = arith.constant 0 : index
    %148 = vector.load %arg8[%c0_204, %c0_205] : memref<1x128xf32, #tpu.memory_space<vmem>>, vector<1x128xf32>
    %149 = vector.broadcast %148 : vector<1x128xf32> to vector<8x128xf32>
    %150 = arith.addf %147, %149 : vector<8x128xf32>
    %151 = vector.extract_strided_slice %150 {offsets = [0, 0], sizes = [2, 10], strides = [1, 1]} : vector<8x128xf32> to vector<2x10xf32>
    %c0_206 = arith.constant 0 : index
    %c0_207 = arith.constant 0 : index
    %152 = vector.load %arg9[%c0_206, %c0_207] : memref<2x10xf32, #tpu.memory_space<vmem>>, vector<2x10xf32>
    tpu.vector_store %arg9[%c0_206, %c0_207], %151 {strides = array<i32>} : memref<2x10xf32, #tpu.memory_space<vmem>>, vector<2x10xf32>,
    return
  }
}

</mosaic_0001>

<bundles_post_ra>
// kernel: conv_forward.1
= control target key start
LH: loop header
LB: loop body
LE: loop exit
PB: predicated region body
PF: predicated region fallthrough
CT: control target
= control target key end

     0   :  { %14 = vsyncpa [#allocation8], 0  ;;  %s3605_s0 = inlined_call_operand.vmem [shape: f32[64,128], index: 0, kind: input, shape index: {}]   ;;  %s3606_s1 = inlined_call_operand.hbm [shape: f32[512,256], index: 1, kind: input, shape index: {}]   ;;  %s3607_s2 = inlined_call_operand.vmem [shape: f32[1,256], index: 2, kind: input, shape index: {}]   ;;  %s3608_s3 = inlined_call_operand.hbm [shape: f32[512,512], index: 3, kind: input, shape index: {}]   ;;  %s3609_s4 = inlined_call_operand.vmem [shape: f32[1,512], index: 4, kind: input, shape index: {}]   ;;  %s3610_s5 = inlined_call_operand.hbm [shape: f32[1024,256], index: 5, kind: input, shape index: {}]   ;;  %s3611_s6 = inlined_call_operand.vmem [shape: f32[1,256], index: 6, kind: input, shape index: {}]   ;;  %s3612_s7 = inlined_call_operand.vmem [shape: f32[128,128], index: 7, kind: input, shape index: {}]   ;;  %s3613_s8 = inlined_call_operand.vmem [shape: f32[1,128], index: 8, kind: input, shape index: {}]   ;;  %s3614_s9 = inlined_call_operand.hbm [shape: f32[2,10], index: 9, kind: output, shape index: {}]  }
   0x1   :  { %15 = vsyncpa [#allocation11], 0 }
   0x2   :  { %16 = vsyncpa [#allocation9], 0  ;;  %s3093_s30 = smov [#allocation10]   ;;  %s2999_s13 = scalar_lea.hbm %s3608_s3, 32768 }
   0x3   :  { %s38_s10 = sshll.u32 %s3093_s30, 4  ;;  %p3000_p0 = scmp.ne.s32.totalorder %s3608_s3, %s2999_s13  ;;  %s39_s10 = int_to_ptr.vmem [resolvable:$true] %s38_s10 }
   0x4   :  { %p3003_p1 = scmp.lt.u32.totalorder %s2999_s13, %s3608_s3 }
   0x6   :  { %p3005_p2 = pnand %p3003_p1, %p3000_p0 }
   0x8   :  { %3008 = shalt.err (!%p3005_p2)
}
   0x9   :  { %s3009_s18 = scalar_lea.vmem %s39_s10, 32768  ;;  %p3014_p4 = scmp.lt.s32.totalorder %s39_s10, %s39_s10 }
   0xa   :  { %p3010_p3 = scmp.ne.s32.totalorder %s39_s10, %s3009_s18  ;;  %p3015_p5 = scmp.lt.s32.totalorder %s3009_s18, %s3009_s18 }
   0xc   :  { %p3016_p6 = por %p3015_p5, %p3014_p4 }
   0xe   :  { %p3017_p7 = pnand %p3016_p6, %p3010_p3 }
  0x10   :  { %3020 = shalt.err (!%p3017_p7)
}
  0x11   :  { %s3094_s19 = smov 512   ;;  %s3095_s20 = smov 32  }
  0x12   :  { %44 = dma.hbm_to_vmem [thread:$0]  %s3608_s3, 32768, %s39_s10, [#allocation11], %s3094_s19, %s3094_s19, %s3095_s20  }
  0x13   :  { %s3096_s23 = smov [#allocation7]   ;;  %s3021_s27 = scalar_lea.hbm %s3606_s1, 16384 }
  0x14   :  { %s24_s24 = sshll.u32 %s3096_s23, 4  ;;  %p3022_p8 = scmp.ne.s32.totalorder %s3606_s1, %s3021_s27  ;;  %s25_s24 = int_to_ptr.vmem [resolvable:$true] %s24_s24 }
  0x15   :  { %p3025_p9 = scmp.lt.u32.totalorder %s3021_s27, %s3606_s1 }
  0x17   :  { %p3027_p10 = pnand %p3025_p9, %p3022_p8 }
  0x19   :  { %3030 = shalt.err (!%p3027_p10)
}
  0x1a   :  { %s3031_s12 = scalar_lea.vmem %s25_s24, 16384  ;;  %p3036_p12 = scmp.lt.s32.totalorder %s25_s24, %s25_s24 }
  0x1b   :  { %p3032_p11 = scmp.ne.s32.totalorder %s25_s24, %s3031_s12  ;;  %p3037_p13 = scmp.lt.s32.totalorder %s3031_s12, %s3031_s12 }
  0x1d   :  { %p3038_p0 = por %p3037_p13, %p3036_p12 }
  0x1f   :  { %p3039_p1 = pnand %p3038_p0, %p3032_p11 }
  0x21   :  { %3042 = shalt.err (!%p3039_p1)
}
  0x22   :  { %s3097_s3 = smov 256   ;;  %s3098_s10 = smov 16  }
  0x23   :  { %30 = dma.hbm_to_vmem [thread:$0]  %s3606_s1, 16384, %s25_s24, [#allocation8], %s3097_s3, %s3097_s3, %s3098_s10  }
  0x24   :  { %s3099_s15 = smov [#allocation12]   ;;  %s3043_s19 = scalar_lea.hbm %s3610_s5, 32768 }
  0x25   :  { %s52_s16 = sshll.u32 %s3099_s15, 4  ;;  %p3044_p2 = scmp.ne.s32.totalorder %s3610_s5, %s3043_s19  ;;  %s53_s16 = int_to_ptr.vmem [resolvable:$true] %s52_s16 }
  0x26   :  { %p3047_p3 = scmp.lt.u32.totalorder %s3043_s19, %s3610_s5 }
  0x28   :  { %p3049_p4 = pnand %p3047_p3, %p3044_p2 }
  0x2a   :  { %3052 = shalt.err (!%p3049_p4)
}
  0x2b   :  { %s3053_s25 = scalar_lea.vmem %s53_s16, 32768  ;;  %p3058_p6 = scmp.lt.s32.totalorder %s53_s16, %s53_s16 }
  0x2c   :  { %p3054_p5 = scmp.ne.s32.totalorder %s53_s16, %s3053_s25  ;;  %p3059_p7 = scmp.lt.s32.totalorder %s3053_s25, %s3053_s25 }
  0x2e   :  { %p3060_p8 = por %p3059_p7, %p3058_p6 }
  0x30   :  { %p3061_p9 = pnand %p3060_p8, %p3054_p5 }
  0x32   :  { %3064 = shalt.err (!%p3061_p9)
}
  0x33   :  { %58 = dma.hbm_to_vmem [thread:$0]  %s3610_s5, 32768, %s53_s16, [#allocation11], %s3097_s3, %s3097_s3, %s3098_s10  }
  0x34   :  { %3087 = dma.done.wait [#allocation8], 16384  }
  0x35   :  { %3088 = vsyncadd [#allocation8], 4294950912 }
  0x36   :  { %3089 = dma.done.wait [#allocation11], 65536  }
  0x37   :  { %3090 = vsyncadd [#allocation11], 4294901760  ;;  %v3100_v0 = vmov 0.0   ;;  %v222_v1 = vld [vmem:[#allocation7 + $0x8] sm:$0xff]  ;;  %v224_v2 = vld [vmem:[#allocation7 + $0x18] sm:$0xff]  ;;  %vm3102_vm1 = vmmov 0  }
  0x38   :  { %78 = vst [vmem:[#allocation2 + $0x20] sm:$0xff] %v3100_v0  ;;  %79 = vst [vmem:[#allocation2 + $0x28] sm:$0xff] %v3100_v0  ;;  %v221_v3 = vld [vmem:[#allocation7] sm:$0xff]  ;;  %v2244_v4 = vpack.c.bf16 %v224_v2, %v222_v1  ;;  %v223_v5 = vld [vmem:[#allocation7 + $0x10] sm:$0xff]  ;;  %s3103_s5 = smov [#allocation13]   ;;  %vm2142_vm2 = vcmask 74752  }
  0x39   :  { %80 = vst [vmem:[#allocation2 + $0x30] sm:$0xff] %v3100_v0  ;;  %81 = vst [vmem:[#allocation2 + $0x38] sm:$0xff] %v3100_v0  ;;  %v226_v6 = vld [vmem:[#allocation7 + $0x28] sm:$0xff]  ;;  %v228_v7 = vld [vmem:[#allocation7 + $0x38] sm:$0xff]  ;;  %v2246_v8 = vpack.c.bf16 %v223_v5, %v221_v3  ;;  %s2150_s26 = sshll.u32 %s3103_s5, 4  ;;  %s2151_s26 = int_to_ptr.vmem [resolvable:$true] %s2150_s26 }
  0x3a   :  { %86 = vst [vmem:[#allocation2 + $0x60] sm:$0xff] %v3100_v0  ;;  %87 = vst [vmem:[#allocation2 + $0x68] sm:$0xff] %v3100_v0  ;;  %v2248_v9 = vpack.c.bf16 %v228_v7, %v226_v6  ;;  %v225_v10 = vld [vmem:[#allocation7 + $0x20] sm:$0xff]  ;;  %v227_v11 = vld [vmem:[#allocation7 + $0x30] sm:$0xff]  ;;  %2245 = vmatprep.subr.bf16.mxu0 %v2244_v4  ;;  %s3065_s27 = scalar_lea.vmem %s2151_s26, 32  ;;  %p3070_p11 = scmp.lt.s32.totalorder %s2151_s26, %s2151_s26 }
  0x3b   :  { %88 = vst [vmem:[#allocation2 + $0x70] sm:$0xff] %v3100_v0  ;;  %89 = vst [vmem:[#allocation2 + $0x78] sm:$0xff] %v3100_v0  ;;  %v230_v12 = vld [vmem:[#allocation7 + $0x48] sm:$0xff]  ;;  %v232_v13 = vld [vmem:[#allocation7 + $0x58] sm:$0xff]  ;;  %2247 = vmatpush1.bf16.msra.mxu0 %v2246_v8  ;;  %v2250_v14 = vpack.c.bf16 %v227_v11, %v225_v10  ;;  %p3066_p10 = scmp.ne.s32.totalorder %s2151_s26, %s3065_s27  ;;  %p3071_p12 = scmp.lt.s32.totalorder %s3065_s27, %s3065_s27 }
  0x3c   :  { %94 = vst [vmem:[#allocation2 + $0xa0] sm:$0xff] %v3100_v0  ;;  %95 = vst [vmem:[#allocation2 + $0xa8] sm:$0xff] %v3100_v0  ;;  %2249 = vmatprep.subr.bf16.mxu0 %v2248_v9  ;;  %v2252_v15 = vpack.c.bf16 %v232_v13, %v230_v12  ;;  %v229_v16 = vld [vmem:[#allocation7 + $0x40] sm:$0xff]  ;;  %v231_v17 = vld [vmem:[#allocation7 + $0x50] sm:$0xff] }
  0x3d   :  { %96 = vst [vmem:[#allocation2 + $0xb0] sm:$0xff] %v3100_v0  ;;  %97 = vst [vmem:[#allocation2 + $0xb8] sm:$0xff] %v3100_v0  ;;  %v234_v18 = vld [vmem:[#allocation7 + $0x68] sm:$0xff]  ;;  %v236_v19 = vld [vmem:[#allocation7 + $0x78] sm:$0xff]  ;;  %v2254_v20 = vpack.c.bf16 %v231_v17, %v229_v16  ;;  %p3072_p13 = por %p3071_p12, %p3070_p11 }
  0x3e   :  { %102 = vst [vmem:[#allocation2 + $0xe0] sm:$0xff] %v3100_v0  ;;  %103 = vst [vmem:[#allocation2 + $0xe8] sm:$0xff] %v3100_v0  ;;  %v2256_v21 = vpack.c.bf16 %v236_v19, %v234_v18  ;;  %v233_v22 = vld [vmem:[#allocation7 + $0x60] sm:$0xff]  ;;  %v235_v23 = vld [vmem:[#allocation7 + $0x70] sm:$0xff] }
  0x3f   :  { %104 = vst [vmem:[#allocation2 + $0xf0] sm:$0xff] %v3100_v0  ;;  %105 = vst [vmem:[#allocation2 + $0xf8] sm:$0xff] %v3100_v0  ;;  %2251 = vmatpush1.bf16.msra.mxu0 %v2250_v14  ;;  %v238_v24 = vld [vmem:[#allocation7 + $0x88] sm:$0xff]  ;;  %v240_v25 = vld [vmem:[#allocation7 + $0x98] sm:$0xff]  ;;  %v2258_v26 = vpack.c.bf16 %v235_v23, %v233_v22  ;;  %p3073_p0 = pnand %p3072_p13, %p3066_p10 }
  0x40   :  { %619 = vst [vmem:[#allocation3] sm:$0xff] %v3100_v0  ;;  %620 = vst [vmem:[#allocation3 + $0x8] sm:$0xff] %v3100_v0  ;;  %2253 = vmatprep.subr.bf16.mxu0 %v2252_v15  ;;  %v2260_v27 = vpack.c.bf16 %v240_v25, %v238_v24  ;;  %v237_v28 = vld [vmem:[#allocation7 + $0x80] sm:$0xff]  ;;  %v239_v29 = vld [vmem:[#allocation7 + $0x90] sm:$0xff] }
  0x41   :  { %621 = vst [vmem:[#allocation3 + $0x10] sm:$0xff] %v3100_v0  ;;  %622 = vst [vmem:[#allocation3 + $0x18] sm:$0xff] %v3100_v0  ;;  %v242_v30 = vld [vmem:[#allocation7 + $0xa8] sm:$0xff]  ;;  %v244_v31 = vld [vmem:[#allocation7 + $0xb8] sm:$0xff]  ;;  %v2262_v32 = vpack.c.bf16 %v239_v29, %v237_v28 }
  0x42   :  { %623 = vst [vmem:[#allocation3 + $0x20] sm:$0xff] %v3100_v0  ;;  %624 = vst [vmem:[#allocation3 + $0x28] sm:$0xff] %v3100_v0  ;;  %v2264_v33 = vpack.c.bf16 %v244_v31, %v242_v30  ;;  %v241_v34 = vld [vmem:[#allocation7 + $0xa0] sm:$0xff]  ;;  %v243_v35 = vld [vmem:[#allocation7 + $0xb0] sm:$0xff] }
  0x43   :  { %625 = vst [vmem:[#allocation3 + $0x30] sm:$0xff] %v3100_v0  ;;  %626 = vst [vmem:[#allocation3 + $0x38] sm:$0xff] %v3100_v0  ;;  %2255 = vmatpush1.bf16.msra.mxu0 %v2254_v20  ;;  %v246_v36 = vld [vmem:[#allocation7 + $0xc8] sm:$0xff]  ;;  %v248_v37 = vld [vmem:[#allocation7 + $0xd8] sm:$0xff]  ;;  %v2266_v38 = vpack.c.bf16 %v243_v35, %v241_v34 }
  0x44   :  { %627 = vst [vmem:[#allocation3 + $0x40] sm:$0xff] %v3100_v0  ;;  %628 = vst [vmem:[#allocation3 + $0x48] sm:$0xff] %v3100_v0  ;;  %2257 = vmatprep.subr.bf16.mxu0 %v2256_v21  ;;  %v2268_v39 = vpack.c.bf16 %v248_v37, %v246_v36  ;;  %v245_v40 = vld [vmem:[#allocation7 + $0xc0] sm:$0xff]  ;;  %v247_v41 = vld [vmem:[#allocation7 + $0xd0] sm:$0xff] }
  0x45   :  { %629 = vst [vmem:[#allocation3 + $0x50] sm:$0xff] %v3100_v0  ;;  %630 = vst [vmem:[#allocation3 + $0x58] sm:$0xff] %v3100_v0  ;;  %v2167_v42 = vld [vmem:[%s3605_s0 + $0x1] ss:$2 sm:$0xff]  ;;  %v252_v44 = vld [vmem:[#allocation7 + $0xf8] sm:$0xff]  ;;  %v2270_v46 = vpack.c.bf16 %v247_v41, %v245_v40 }
  0x46   :  { %631 = vst [vmem:[#allocation3 + $0x60] sm:$0xff] %v3100_v0  ;;  %632 = vst [vmem:[#allocation3 + $0x68] sm:$0xff] %v3100_v0  ;;  %v250_v43 = vld [vmem:[#allocation7 + $0xe8] sm:$0xff]  ;;  %425 = vmatprep.mubr.f32.mxu0 %v2167_v42  ;;  %v249_v48 = vld [vmem:[#allocation7 + $0xe0] sm:$0xff] }
  0x47   :  { %633 = vst [vmem:[#allocation3 + $0x70] sm:$0xff] %v3100_v0  ;;  %634 = vst [vmem:[#allocation3 + $0x78] sm:$0xff] %v3100_v0  ;;  %2259 = vmatpush1.bf16.msra.mxu0 %v2258_v26  ;;  %v3244_v45 = vld [vmem:[%s3605_s0] ss:$2 sm:$0xff]  ;;  %v2272_v47 = vpack.c.bf16 %v252_v44, %v250_v43  ;;  %v251_v49 = vld [vmem:[#allocation7 + $0xf0] sm:$0xff] }
  0x48   :  { %1358 = vst [vmem:[#allocation4] sm:$0xff] %v3100_v0  ;;  %1359 = vst [vmem:[#allocation4 + $0x8] sm:$0xff] %v3100_v0  ;;  %2261 = vmatprep.subr.bf16.mxu0 %v2260_v27  ;;  %v254_v50 = vld [vmem:[#allocation7 + $0x108] sm:$0xff]  ;;  %v256_v51 = vld [vmem:[#allocation7 + $0x118] sm:$0xff]  ;;  %v2274_v52 = vpack.c.bf16 %v251_v49, %v249_v48 }
  0x49   :  { %1360 = vst [vmem:[#allocation4 + $0x10] sm:$0xff] %v3100_v0  ;;  %1361 = vst [vmem:[#allocation4 + $0x18] sm:$0xff] %v3100_v0  ;;  %v2276_v53 = vpack.c.bf16 %v256_v51, %v254_v50  ;;  %v253_v54 = vld [vmem:[#allocation7 + $0x100] sm:$0xff]  ;;  %v255_v55 = vld [vmem:[#allocation7 + $0x110] sm:$0xff] }
  0x4a   :  { %1362 = vst [vmem:[#allocation4 + $0x20] sm:$0xff] %v3100_v0  ;;  %1363 = vst [vmem:[#allocation4 + $0x28] sm:$0xff] %v3100_v0  ;;  %v258_v56 = vld [vmem:[#allocation7 + $0x128] sm:$0xff]  ;;  %v260_v57 = vld [vmem:[#allocation7 + $0x138] sm:$0xff]  ;;  %v2278_v58 = vpack.c.bf16 %v255_v55, %v253_v54 }
  0x4b   :  { %1364 = vst [vmem:[#allocation4 + $0x30] sm:$0xff] %v3100_v0  ;;  %1365 = vst [vmem:[#allocation4 + $0x38] sm:$0xff] %v3100_v0  ;;  %2263 = vmatpush1.bf16.msra.mxu0 %v2262_v32  ;;  %v257_v59 = vld [vmem:[#allocation7 + $0x120] sm:$0xff]  ;;  %v2280_v60 = vpack.c.bf16 %v260_v57, %v258_v56  ;;  %v259_v61 = vld [vmem:[#allocation7 + $0x130] sm:$0xff] }
  0x4c   :  { %1366 = vst [vmem:[#allocation4 + $0x40] sm:$0xff] %v3100_v0  ;;  %1367 = vst [vmem:[#allocation4 + $0x48] sm:$0xff] %v3100_v0  ;;  %2265 = vmatprep.subr.bf16.mxu0 %v2264_v33  ;;  %v262_v62 = vld [vmem:[#allocation7 + $0x148] sm:$0xff]  ;;  %v264_v63 = vld [vmem:[#allocation7 + $0x158] sm:$0xff]  ;;  %v2282_v3 = vpack.c.bf16 %v259_v61, %v257_v59 }
  0x4d   :  { %1368 = vst [vmem:[#allocation4 + $0x50] sm:$0xff] %v3100_v0  ;;  %1369 = vst [vmem:[#allocation4 + $0x58] sm:$0xff] %v3100_v0  ;;  %v2168_v1 = vld [vmem:[%s3605_s0 + $0x11] ss:$2 sm:$0x3f]  ;;  %v2284_v6 = vpack.c.bf16 %v264_v63, %v262_v62  ;;  %v261_v7 = vld [vmem:[#allocation7 + $0x140] sm:$0xff] }
  0x4e   :  { %1370 = vst [vmem:[#allocation4 + $0x60] sm:$0xff] %v3100_v0  ;;  %1371 = vst [vmem:[#allocation4 + $0x68] sm:$0xff] %v3100_v0  ;;  %v2160_v2 = vld [vmem:[%s3605_s0 + $0x10] ss:$2 sm:$0x3f]  ;;  %v266_v9 = vld [vmem:[#allocation7 + $0x168] sm:$0xff] }
  0x4f   :  { %1372 = vst [vmem:[#allocation4 + $0x70] sm:$0xff] %v3100_v0  ;;  %1373 = vst [vmem:[#allocation4 + $0x78] sm:$0xff] %v3100_v0  ;;  %2267 = vmatpush1.bf16.msra.mxu0 %v2266_v38  ;;  %v3255_v4 = vld [vmem:[%s3605_s0 + $0x21] ss:$2 sm:$0xff]  ;;  %v3260_v5 = vld [vmem:[%s3605_s0 + $0x20] ss:$2 sm:$0xff] }
  0x50   :  { %2269 = vmatprep.subr.bf16.mxu0 %v2268_v39  ;;  %132 = vst [vmem:[#allocation2 + $0x28] sm:$0x3f] %v2168_v1  ;;  %110 = vst [vmem:[#allocation2 + $0x20] sm:$0x3f] %v2160_v2  ;;  %v263_v8 = vld [vmem:[#allocation7 + $0x150] sm:$0xff]  ;;  %v268_v10 = vld [vmem:[#allocation7 + $0x178] sm:$0xff] }
  0x51   :  { %v2170_v11 = vld [vmem:[%s3605_s0 + $0x31] ss:$2 sm:$0x3f]  ;;  %v2162_v12 = vld [vmem:[%s3605_s0 + $0x30] ss:$2 sm:$0x3f]  ;;  %v2286_v13 = vpack.c.bf16 %v263_v8, %v261_v7  ;;  %v2288_v16 = vpack.c.bf16 %v268_v10, %v266_v9 }
  0x52   :  { %136 = vst [vmem:[#allocation2 + $0x68] sm:$0x3f] %v2170_v11  ;;  %116 = vst [vmem:[#allocation2 + $0x60] sm:$0x3f] %v2162_v12  ;;  %v3271_v14 = vld [vmem:[%s3605_s0 + $0x2] ss:$2 sm:$0xff] }
  0x53   :  { %2271 = vmatpush1.bf16.msra.mxu0 %v2270_v46  ;;  %v3276_v15 = vld [vmem:[%s3605_s0 + $0x1] ss:$2 sm:$0xff]  ;;  %v267_v18 = vld [vmem:[#allocation7 + $0x170] sm:$0xff]  ;;  %v272_v20 = vld [vmem:[#allocation7 + $0x198] sm:$0xff] }
  0x54   :  { %2273 = vmatprep.subr.bf16.mxu0 %v2272_v47  ;;  %v265_v17 = vld [vmem:[#allocation7 + $0x160] sm:$0xff]  ;;  %v270_v19 = vld [vmem:[#allocation7 + $0x188] sm:$0xff]  ;;  %v2172_v21 = vld [vmem:[%s3605_s0 + $0x12] ss:$2 sm:$0x3f] }
  0x55   :  { %v2164_v22 = vld [vmem:[%s3605_s0 + $0x11] ss:$2 sm:$0x3f]  ;;  %v2290_v23 = vpack.c.bf16 %v267_v18, %v265_v17  ;;  %v269_v24 = vld [vmem:[#allocation7 + $0x180] sm:$0xff]  ;;  %142 = vst [vmem:[#allocation2 + $0xa8] sm:$0x3f] %v2172_v21  ;;  %v2292_v25 = vpack.c.bf16 %v272_v20, %v270_v19 }
  0x56   :  { %122 = vst [vmem:[#allocation2 + $0xa0] sm:$0x3f] %v2164_v22  ;;  %v271_v26 = vld [vmem:[#allocation7 + $0x190] sm:$0xff]  ;;  %v3292_v28 = vld [vmem:[%s3605_s0 + $0x21] ss:$2 sm:$0xff]  ;;  %v276_v30 = vld [vmem:[#allocation7 + $0x1b8] sm:$0xff] }
  0x57   :  { %2275 = vmatpush1.bf16.msra.mxu0 %v2274_v52  ;;  %v3287_v27 = vld [vmem:[%s3605_s0 + $0x22] ss:$2 sm:$0xff]  ;;  %v2294_v31 = vpack.c.bf16 %v271_v26, %v269_v24  ;;  %v2174_v32 = vld [vmem:[%s3605_s0 + $0x32] ss:$2 sm:$0x3f] }
  0x58   :  { %2277 = vmatprep.subr.bf16.mxu0 %v2276_v53  ;;  %v274_v29 = vld [vmem:[#allocation7 + $0x1a8] sm:$0xff]  ;;  %v2166_v33 = vld [vmem:[%s3605_s0 + $0x31] ss:$2 sm:$0x3f]  ;;  %v273_v35 = vld [vmem:[#allocation7 + $0x1a0] sm:$0xff] }
  0x59   :  { %v2296_v34 = vpack.c.bf16 %v276_v30, %v274_v29  ;;  %v275_v36 = vld [vmem:[#allocation7 + $0x1b0] sm:$0xff]  ;;  %v278_v37 = vld [vmem:[#allocation7 + $0x1c8] sm:$0xff]  ;;  %148 = vst [vmem:[#allocation2 + $0xe8] sm:$0x3f] %v2174_v32  ;;  %128 = vst [vmem:[#allocation2 + $0xe0] sm:$0x3f] %v2166_v33 }
  0x5a   :  { %v280_v38 = vld [vmem:[#allocation7 + $0x1d8] sm:$0xff]  ;;  %v3303_v39 = vld [vmem:[%s3605_s0 + $0x3] ss:$2 sm:$0xff]  ;;  %v3308_v40 = vld [vmem:[%s3605_s0 + $0x2] ss:$2 sm:$0xff]  ;;  %v2298_v43 = vpack.c.bf16 %v275_v36, %v273_v35 }
  0x5b   :  { %2279 = vmatpush1.bf16.msra.mxu0 %v2278_v58  ;;  %v277_v41 = vld [vmem:[#allocation7 + $0x1c0] sm:$0xff]  ;;  %v2184_v42 = vld [vmem:[%s3605_s0 + $0x13] ss:$2 sm:$0x3f]  ;;  %v2300_v48 = vpack.c.bf16 %v280_v38, %v278_v37  ;;  %v282_v49 = vld [vmem:[#allocation7 + $0x1e8] sm:$0xff] }
  0x5c   :  { %2281 = vmatprep.subr.bf16.mxu0 %v2280_v60  ;;  %v279_v44 = vld [vmem:[#allocation7 + $0x1d0] sm:$0xff]  ;;  %172 = vst [vmem:[#allocation2 + $0x38] sm:$0x3f] %v2184_v42  ;;  %v284_v52 = vld [vmem:[#allocation7 + $0x1f8] sm:$0xff]  ;;  %v281_v55 = vld [vmem:[#allocation7 + $0x1e0] sm:$0xff] }
  0x5d   :  { %v2176_v46 = vld [vmem:[%s3605_s0 + $0x12] ss:$2 sm:$0x3f]  ;;  %v3319_v47 = vld [vmem:[%s3605_s0 + $0x23] ss:$2 sm:$0xff]  ;;  %v2302_v59 = vpack.c.bf16 %v279_v44, %v277_v41  ;;  %v2304_v63 = vpack.c.bf16 %v284_v52, %v282_v49 }
  0x5e   :  { %152 = vst [vmem:[#allocation2 + $0x30] sm:$0x3f] %v2176_v46  ;;  %v3324_v50 = vld [vmem:[%s3605_s0 + $0x22] ss:$2 sm:$0xff]  ;;  %v3340_v57 = vld [vmem:[%s3605_s0 + $0x3] ss:$2 sm:$0xff] }
  0x5f   :  { %2283 = vmatpush1.bf16.msra.mxu0 %v2282_v3  ;;  %v2186_v51 = vld [vmem:[%s3605_s0 + $0x33] ss:$2 sm:$0x3f]  ;;  %v2178_v53 = vld [vmem:[%s3605_s0 + $0x32] ss:$2 sm:$0x3f] }
  0x60   :  { %2285 = vmatprep.subr.bf16.mxu0 %v2284_v6  ;;  %176 = vst [vmem:[#allocation2 + $0x78] sm:$0x3f] %v2186_v51  ;;  %v3335_v54 = vld [vmem:[%s3605_s0 + $0x4] ss:$2 sm:$0xff]  ;;  %156 = vst [vmem:[#allocation2 + $0x70] sm:$0x3f] %v2178_v53 }
  0x61   :  { %v283_v56 = vld [vmem:[#allocation7 + $0x1f0] sm:$0xff]  ;;  %v286_v60 = vld [vmem:[#allocation7 + $0x208] sm:$0xff]  ;;  %v288_v61 = vld [vmem:[#allocation7 + $0x218] sm:$0xff] }
  0x62   :  { %v2188_v58 = vld [vmem:[%s3605_s0 + $0x14] ss:$2 sm:$0x3f]  ;;  %v2180_v62 = vld [vmem:[%s3605_s0 + $0x13] ss:$2 sm:$0x3f]  ;;  %v2306_v10 = vpack.c.bf16 %v283_v56, %v281_v55 }
  0x63   :  { %2287 = vmatpush1.bf16.msra.mxu0 %v2286_v13  ;;  %182 = vst [vmem:[#allocation2 + $0xb8] sm:$0x3f] %v2188_v58  ;;  %162 = vst [vmem:[#allocation2 + $0xb0] sm:$0x3f] %v2180_v62  ;;  %v3351_v1 = vld [vmem:[%s3605_s0 + $0x24] ss:$2 sm:$0xff]  ;;  %v2308_v13 = vpack.c.bf16 %v288_v61, %v286_v60 }
  0x64   :  { %2289 = vmatprep.subr.bf16.mxu0 %v2288_v16  ;;  %v3356_v2 = vld [vmem:[%s3605_s0 + $0x23] ss:$2 sm:$0xff]  ;;  %v2190_v6 = vld [vmem:[%s3605_s0 + $0x34] ss:$2 sm:$0x3f] }
  0x65   :  { %v821_v3 = vld [vmem:[#allocation10 + $0x408] sm:$0xff]  ;;  %v2182_v7 = vld [vmem:[%s3605_s0 + $0x33] ss:$2 sm:$0x3f]  ;;  %188 = vst [vmem:[#allocation2 + $0xf8] sm:$0x3f] %v2190_v6 }
  0x66   :  { %168 = vst [vmem:[#allocation2 + $0xf0] sm:$0x3f] %v2182_v7  ;;  %v825_v8 = vld [vmem:[#allocation10 + $0x428] sm:$0xff]  ;;  %v820_v9 = vld [vmem:[#allocation10 + $0x400] sm:$0xff]  ;;  %v287_v17 = vld [vmem:[#allocation7 + $0x210] sm:$0xff] }
  0x67   :  { %2291 = vmatpush1.bf16.msra.mxu0 %v2290_v23  ;;  %v2436_v11 = vpack.c.bf16 %v825_v8, %v821_v3  ;;  %v824_v12 = vld [vmem:[#allocation10 + $0x420] sm:$0xff]  ;;  %v290_v19 = vld [vmem:[#allocation7 + $0x228] sm:$0xff]  ;;  %v292_v20 = vld [vmem:[#allocation7 + $0x238] sm:$0xff] }
  0x68   :  { %2293 = vmatprep.subr.bf16.mxu0 %v2292_v25  ;;  %v285_v16 = vld [vmem:[#allocation7 + $0x200] sm:$0xff]  ;;  %v2438_v18 = vpack.c.bf16 %v824_v12, %v820_v9  ;;  %v829_v21 = vld [vmem:[#allocation10 + $0x448] sm:$0xff]  ;;  %v2312_v29 = vpack.c.bf16 %v292_v20, %v290_v19  ;;  %v296_v35 = vld [vmem:[#allocation7 + $0x258] sm:$0xff] }
  0x69   :  { %2437 = vmatprep.subr.bf16.mxu1 %v2436_v11  ;;  %v833_v22 = vld [vmem:[#allocation10 + $0x468] sm:$0xff]  ;;  %v828_v23 = vld [vmem:[#allocation10 + $0x440] sm:$0xff]  ;;  %v2310_v24 = vpack.c.bf16 %v287_v17, %v285_v16  ;;  %v295_v44 = vld [vmem:[#allocation7 + $0x250] sm:$0xff] }
  0x6a   :  { %2439 = vmatpush1.bf16.msra.mxu1 %v2438_v18  ;;  %v2440_v25 = vpack.c.bf16 %v833_v22, %v829_v21  ;;  %v832_v26 = vld [vmem:[#allocation10 + $0x460] sm:$0xff]  ;;  %v194_v32 = vld [vmem:[#allocation2 + $0x28] sm:$0xff]  ;;  %v300_v56 = vld [vmem:[#allocation7 + $0x278] sm:$0xff] }
  0x6b   :  { %2295 = vmatpush1.bf16.msra.mxu0 %v2294_v31  ;;  %v289_v30 = vld [vmem:[#allocation7 + $0x220] sm:$0xff]  ;;  %v291_v31 = vld [vmem:[#allocation7 + $0x230] sm:$0xff]  ;;  %v2442_v33 = vpack.c.bf16 %v832_v26, %v828_v23  ;;  %v837_v36 = vld [vmem:[#allocation10 + $0x488] sm:$0xff] }
  0x6c   :  { %2297 = vmatprep.subr.bf16.mxu0 %v2296_v34  ;;  %v294_v34 = vld [vmem:[#allocation7 + $0x248] sm:$0xff]  ;;  %2441 = vmatprep.subr.bf16.mxu1 %v2440_v25  ;;  %v836_v38 = vld [vmem:[#allocation10 + $0x480] sm:$0xff]  ;;  %v2314_v42 = vpack.c.bf16 %v291_v31, %v289_v30  ;;  %v299_v7 = vld [vmem:[#allocation7 + $0x270] sm:$0xff] }
  0x6d   :  { %v841_v37 = vld [vmem:[#allocation10 + $0x4a8] sm:$0xff]  ;;  %v840_v41 = vld [vmem:[#allocation10 + $0x4a0] sm:$0xff]  ;;  %v2316_v51 = vpack.c.bf16 %v296_v35, %v294_v34  ;;  %v304_v11 = vld [vmem:[#allocation7 + $0x298] sm:$0xff] }
  0x6e   :  { %2443 = vmatpush1.bf16.msra.mxu1 %v2442_v33  ;;  %v193_v46 = vld [vmem:[#allocation2 + $0x20] sm:$0xff]  ;;  %v2446_v49 = vpack.c.bf16 %v840_v41, %v836_v38  ;;  %v298_v52 = vld [vmem:[#allocation7 + $0x268] sm:$0xff]  ;;  %v303_v17 = vld [vmem:[#allocation7 + $0x290] sm:$0xff] }
  0x6f   :  { %2299 = vmatpush1.bf16.msra.mxu0 %v2298_v43  ;;  %v293_v43 = vld [vmem:[#allocation7 + $0x240] sm:$0xff]  ;;  %v845_v53 = vld [vmem:[#allocation10 + $0x4c8] sm:$0xff]  ;;  %v2320_v3 = vpack.c.bf16 %v300_v56, %v298_v52  ;;  %v308_v19 = vld [vmem:[#allocation7 + $0x2b8] sm:$0xff] }
  0x70   :  { %2301 = vmatprep.subr.bf16.mxu0 %v2300_v48  ;;  %v2444_v48 = vpack.c.bf16 %v841_v37, %v837_v36  ;;  %v849_v55 = vld [vmem:[#allocation10 + $0x4e8] sm:$0xff]  ;;  %v844_v58 = vld [vmem:[#allocation10 + $0x4c0] sm:$0xff]  ;;  %v2318_v61 = vpack.c.bf16 %v295_v44, %v293_v43  ;;  %v307_v22 = vld [vmem:[#allocation7 + $0x2b0] sm:$0xff] }
  0x71   :  { %v853_v62 = vld [vmem:[#allocation10 + $0x508] sm:$0xff]  ;;  %v297_v6 = vld [vmem:[#allocation7 + $0x260] sm:$0xff]  ;;  %v312_v25 = vld [vmem:[#allocation7 + $0x2d8] sm:$0xff] }
  0x72   :  { %2445 = vmatprep.subr.bf16.mxu1 %v2444_v48  ;;  %v202_v8 = vld [vmem:[#allocation2 + $0x68] sm:$0xff]  ;;  %v2322_v12 = vpack.c.bf16 %v299_v7, %v297_v6  ;;  %v301_v16 = vld [vmem:[#allocation7 + $0x280] sm:$0xff]  ;;  %v316_v34 = vld [vmem:[#allocation7 + $0x2f8] sm:$0xff] }
  0x73   :  { %2303 = vmatpush1.bf16.msra.mxu0 %v2302_v59  ;;  %v848_v59 = vld [vmem:[#allocation10 + $0x4e0] sm:$0xff]  ;;  %2447 = vmatpush1.bf16.msra.mxu1 %v2446_v49  ;;  %v306_v18 = vld [vmem:[#allocation7 + $0x2a8] sm:$0xff]  ;;  %v2326_v20 = vpack.c.bf16 %v303_v17, %v301_v16  ;;  %v315_v37 = vld [vmem:[#allocation7 + $0x2f0] sm:$0xff] }
  0x74   :  { %2305 = vmatprep.subr.bf16.mxu0 %v2304_v63  ;;  %v2450_v60 = vpack.c.bf16 %v848_v59, %v844_v58  ;;  %v857_v63 = vld [vmem:[#allocation10 + $0x528] sm:$0xff]  ;;  %v2328_v21 = vpack.c.bf16 %v308_v19, %v306_v18  ;;  %v309_v31 = vld [vmem:[#allocation7 + $0x2c0] sm:$0xff]  ;;  %v320_v41 = vld [vmem:[#allocation7 + $0x318] sm:$0xff] }
  0x75   :  { %v2452_v9 = vpack.c.bf16 %v857_v63, %v853_v62  ;;  %v210_v23 = vld [vmem:[#allocation2 + $0xa8] sm:$0xff]  ;;  %v313_v36 = vld [vmem:[#allocation7 + $0x2e0] sm:$0xff]  ;;  %v319_v48 = vld [vmem:[#allocation7 + $0x310] sm:$0xff] }
  0x76   :  { %v314_v33 = vld [vmem:[#allocation7 + $0x2e8] sm:$0xff]  ;;  %v217_v43 = vld [vmem:[#allocation2 + $0xe0] sm:$0xff]  ;;  %v328_v56 = vld [vmem:[#allocation7 + $0x358] sm:$0xff] }
  0x77   :  { %2307 = vmatpush1.bf16.msra.mxu0 %v2306_v10  ;;  %v302_v10 = vld [vmem:[#allocation7 + $0x288] sm:$0xff]  ;;  %v2336_v35 = vpack.c.bf16 %v316_v34, %v314_v33  ;;  %v325_v59 = vld [vmem:[#allocation7 + $0x340] sm:$0xff]  ;;  %v332_v62 = vld [vmem:[#allocation7 + $0x378] sm:$0xff] }
  0x78   :  { %2309 = vmatprep.subr.bf16.mxu0 %v2308_v13  ;;  %v201_v13 = vld [vmem:[#allocation2 + $0x60] sm:$0xff]  ;;  %v318_v38 = vld [vmem:[#allocation7 + $0x308] sm:$0xff]  ;;  %v339_v19 = vld [vmem:[#allocation7 + $0x3b0] sm:$0xff] }
  0x79   :  { %v2340_v44 = vpack.c.bf16 %v320_v41, %v318_v38  ;;  %v322_v49 = vld [vmem:[#allocation7 + $0x328] sm:$0xff]  ;;  %v329_v6 = vld [vmem:[#allocation7 + $0x360] sm:$0xff] }
  0x7a   :  { %426 = vmatmul.mubr.f32.vlgmr.msra.gmra.mrb[0].mxu0 %v3244_v45  ;;  %v2448_v45 = vpack.c.bf16 %v849_v55, %v845_v53  ;;  %v321_v53 = vld [vmem:[#allocation7 + $0x320] sm:$0xff]  ;;  %v323_v55 = vld [vmem:[#allocation7 + $0x330] sm:$0xff]  ;;  %v334_v7 = vld [vmem:[#allocation7 + $0x388] sm:$0xff] }
  0x7b   :  { %2311 = vmatpush1.bf16.msra.mxu0 %v2310_v24  ;;  %431 = vmatprep.mubr.f32.mxu0 %v194_v32  ;;  %v310_v24 = vld [vmem:[#allocation7 + $0x2c8] sm:$0xff]  ;;  %v311_v32 = vld [vmem:[#allocation7 + $0x2d0] sm:$0xff]  ;;  %v337_v18 = vld [vmem:[#allocation7 + $0x3a0] sm:$0xff] }
  0x7c   :  { %2313 = vmatprep.subr.bf16.mxu0 %v2312_v29  ;;  %2449 = vmatprep.subr.bf16.mxu1 %v2448_v45  ;;  %v209_v29 = vld [vmem:[#allocation2 + $0xa0] sm:$0xff]  ;;  %v2332_v30 = vpack.c.bf16 %v312_v25, %v310_v24  ;;  %v2346_v45 = vpack.c.bf16 %v323_v55, %v321_v53  ;;  %v343_v24 = vld [vmem:[#allocation7 + $0x3d0] sm:$0xff]  ;;  %v346_v25 = vld [vmem:[#allocation7 + $0x3e8] sm:$0xff] }
  0x7d   :  { %2451 = vmatpush1.bf16.msra.mxu1 %v2450_v60  ;;  %v327_v60 = vld [vmem:[#allocation7 + $0x350] sm:$0xff]  ;;  %v693_v33 = vld [vmem:[#allocation10 + $0x8] sm:$0xff]  ;;  %v708_v53 = vld [vmem:[#allocation10 + $0x80] sm:$0xff] }
  0x7e   :  { %432 = vmatmul.mubr.f32.gmra.mrb[2].mxu0 %v193_v46  ;;  %2453 = vmatprep.subr.bf16.mxu1 %v2452_v9  ;;  %v317_v46 = vld [vmem:[#allocation7 + $0x300] sm:$0xff]  ;;  %v2350_v63 = vpack.c.bf16 %v327_v60, %v325_v59  ;;  %v697_v34 = vld [vmem:[#allocation10 + $0x28] sm:$0xff] }
  0x7f   :  { %2315 = vmatpush1.bf16.msra.mxu0 %v2314_v42  ;;  %437 = vmatprep.mubr.f32.mxu0 %v3255_v4  ;;  %v2324_v4 = vpack.c.bf16 %v304_v11, %v302_v10  ;;  %v2338_v42 = vpack.c.bf16 %v315_v37, %v313_v36  ;;  %v333_v11 = vld [vmem:[#allocation7 + $0x380] sm:$0xff]  ;;  %v705_v38 = vld [vmem:[#allocation10 + $0x68] sm:$0xff] }
  0x80   :  { %2317 = vmatprep.subr.bf16.mxu0 %v2316_v51  ;;  %v324_v51 = vld [vmem:[#allocation7 + $0x338] sm:$0xff]  ;;  %v692_v36 = vld [vmem:[#allocation10] sm:$0xff] }
  0x81   :  { %v2344_v52 = vpack.c.bf16 %v324_v51, %v322_v49  ;;  %v696_v37 = vld [vmem:[#allocation10 + $0x20] sm:$0xff]  ;;  %v713_v49 = vld [vmem:[#allocation10 + $0xa8] sm:$0xff]  ;;  %v195_v51 = vld [vmem:[#allocation2 + $0x30] sm:$0xff] }
  0x82   :  { %438 = vmatmul.mubr.f32.gmra.mrb[4].mxu0 %v3260_v5  ;;  %v305_v5 = vld [vmem:[#allocation7 + $0x2a0] sm:$0xff]  ;;  %v2374_v41 = vpack.c.bf16 %v696_v37, %v692_v36  ;;  %v753_v36 = vld [vmem:[#allocation10 + $0x1e8] sm:$0xff] }
  0x83   :  { %2319 = vmatpush1.bf16.msra.mxu0 %v2318_v61  ;;  %443 = vmatprep.mubr.f32.mxu0 %v202_v8  ;;  %v2330_v26 = vpack.c.bf16 %v307_v22, %v305_v5  ;;  %v330_v61 = vld [vmem:[#allocation7 + $0x368] sm:$0xff]  ;;  %v336_v8 = vld [vmem:[#allocation7 + $0x398] sm:$0xff]  ;;  %v2362_v5 = vpack.c.bf16 %v339_v19, %v337_v18  ;;  %v712_v55 = vld [vmem:[#allocation10 + $0xa0] sm:$0xff] }
  0x84   :  { %2321 = vmatprep.subr.bf16.mxu0 %v2320_v3  ;;  %v2352_v3 = vpack.c.bf16 %v332_v62, %v330_v61  ;;  %v2356_v10 = vpack.c.bf16 %v336_v8, %v334_v7  ;;  %v716_v60 = vld [vmem:[#allocation10 + $0xc0] sm:$0xff]  ;;  %v725_v61 = vld [vmem:[#allocation10 + $0x108] sm:$0xff]  ;;  %v212_v8 = vld [vmem:[#allocation2 + $0xb8] sm:$0xff] }
  0x85   :  { %v729_v62 = vld [vmem:[#allocation10 + $0x128] sm:$0xff]  ;;  %v728_v7 = vld [vmem:[#allocation10 + $0x120] sm:$0xff] }
  0x86   :  { %444 = vmatmul.mubr.f32.gmra.mrb[6].mxu0 %v201_v13  ;;  %v338_v13 = vld [vmem:[#allocation7 + $0x3a8] sm:$0xff] }
  0x87   :  { %2323 = vmatpush1.bf16.msra.mxu0 %v2322_v12  ;;  %449 = vmatprep.mubr.f32.mxu0 %v3271_v14  ;;  %v2334_v14 = vpack.c.bf16 %v311_v32, %v309_v31  ;;  %v335_v12 = vld [vmem:[#allocation7 + $0x390] sm:$0xff]  ;;  %v345_v31 = vld [vmem:[#allocation7 + $0x3e0] sm:$0xff]  ;;  %v861_v18 = vld [vmem:[#allocation10 + $0x548] sm:$0xff] }
  0x88   :  { %2325 = vmatprep.subr.bf16.mxu0 %v2324_v4  ;;  %v340_v4 = vld [vmem:[#allocation7 + $0x3b8] sm:$0xff]  ;;  %v2358_v16 = vpack.c.bf16 %v335_v12, %v333_v11  ;;  %v347_v32 = vld [vmem:[#allocation7 + $0x3f0] sm:$0xff]  ;;  %v852_v11 = vld [vmem:[#allocation10 + $0x500] sm:$0xff] }
  0x89   :  { %v2360_v17 = vpack.c.bf16 %v340_v4, %v338_v13  ;;  %v733_v13 = vld [vmem:[#allocation10 + $0x148] sm:$0xff] }
  0x8a   :  { %450 = vmatmul.mubr.f32.gmra.mrb[8].mxu0 %v3276_v15  ;;  %v218_v15 = vld [vmem:[#allocation2 + $0xe8] sm:$0xff] }
  0x8b   :  { %2327 = vmatpush1.bf16.msra.mxu0 %v2326_v20  ;;  %455 = vmatprep.mubr.f32.mxu0 %v210_v23  ;;  %v342_v20 = vld [vmem:[#allocation7 + $0x3c8] sm:$0xff]  ;;  %v341_v23 = vld [vmem:[#allocation7 + $0x3c0] sm:$0xff] }
  0x8c   :  { %2329 = vmatprep.subr.bf16.mxu0 %v2328_v21  ;;  %v344_v21 = vld [vmem:[#allocation7 + $0x3d8] sm:$0xff]  ;;  %v737_v4 = vld [vmem:[#allocation10 + $0x168] sm:$0xff] }
  0x8d   :  { %v2364_v22 = vpack.c.bf16 %v344_v21, %v342_v20  ;;  %v865_v20 = vld [vmem:[#allocation10 + $0x568] sm:$0xff]  ;;  %v860_v21 = vld [vmem:[#allocation10 + $0x540] sm:$0xff] }
  0x8e   :  { %456 = vmatmul.mubr.f32.gmra.mrb[10].mxu0 %v209_v29  ;;  %v2366_v29 = vpack.c.bf16 %v343_v24, %v341_v23  ;;  %v745_v23 = vld [vmem:[#allocation10 + $0x1a8] sm:$0xff] }
  0x8f   :  { %2331 = vmatpush1.bf16.msra.mxu0 %v2330_v26  ;;  %461 = vmatprep.mubr.f32.mxu0 %v3287_v27  ;;  %v2342_v27 = vpack.c.bf16 %v319_v48, %v317_v46  ;;  %v348_v26 = vld [vmem:[#allocation7 + $0x3f8] sm:$0xff]  ;;  %v704_v46 = vld [vmem:[#allocation10 + $0x60] sm:$0xff]  ;;  %v709_v48 = vld [vmem:[#allocation10 + $0x88] sm:$0xff] }
  0x90   :  { %2333 = vmatprep.subr.bf16.mxu0 %v2332_v30  ;;  %v2368_v30 = vpack.c.bf16 %v348_v26, %v346_v25  ;;  %v740_v25 = vld [vmem:[#allocation10 + $0x180] sm:$0xff] }
  0x91   :  { %v744_v26 = vld [vmem:[#allocation10 + $0x1a0] sm:$0xff] }
  0x92   :  { %462 = vmatmul.mubr.f32.gmra.mrb[12].mxu0 %v3292_v28  ;;  %v326_v28 = vld [vmem:[#allocation7 + $0x348] sm:$0xff] }
  0x93   :  { %2335 = vmatpush1.bf16.msra.mxu0 %v2334_v14  ;;  %467 = vmatprep.mubr.f32.mxu0 %v218_v15  ;;  %v2348_v58 = vpack.c.bf16 %v328_v56, %v326_v28  ;;  %v2370_v14 = vpack.c.bf16 %v347_v32, %v345_v31  ;;  %v701_v15 = vld [vmem:[#allocation10 + $0x48] sm:$0xff]  ;;  %v868_v32 = vld [vmem:[#allocation10 + $0x580] sm:$0xff] }
  0x94   :  { %2337 = vmatprep.subr.bf16.mxu0 %v2336_v35  ;;  %v2372_v35 = vpack.c.bf16 %v697_v34, %v693_v33  ;;  %v717_v28 = vld [vmem:[#allocation10 + $0xc8] sm:$0xff]  ;;  %v872_v33 = vld [vmem:[#allocation10 + $0x5a0] sm:$0xff] }
  0x95   :  { %v721_v56 = vld [vmem:[#allocation10 + $0xe8] sm:$0xff] }
  0x96   :  { %468 = vmatmul.mubr.f32.gmra.mrb[14].mxu0 %v217_v43  ;;  %v2376_v43 = vpack.c.bf16 %v705_v38, %v701_v15  ;;  %v2384_v59 = vpack.c.bf16 %v721_v56, %v717_v28  ;;  %v873_v31 = vld [vmem:[#allocation10 + $0x5a8] sm:$0xff]  ;;  %v748_v15 = vld [vmem:[#allocation10 + $0x1c0] sm:$0xff] }
  0x97   :  { %2339 = vmatpush1.bf16.msra.mxu0 %v2338_v42  ;;  %538 = vmatprep.mubr.f32.mxu0 %v3303_v39  ;;  %v331_v39 = vld [vmem:[#allocation7 + $0x370] sm:$0xff]  ;;  %v196_v42 = vld [vmem:[#allocation2 + $0x38] sm:$0xff]  ;;  %v752_v38 = vld [vmem:[#allocation10 + $0x1e0] sm:$0xff] }
  0x98   :  { %2341 = vmatprep.subr.bf16.mxu0 %v2340_v44  ;;  %v2354_v9 = vpack.c.bf16 %v331_v39, %v329_v6  ;;  %v700_v44 = vld [vmem:[#allocation10 + $0x40] sm:$0xff]  ;;  %v2388_v6 = vpack.c.bf16 %v729_v62, %v725_v61  ;;  %v885_v28 = vld [vmem:[#allocation10 + $0x608] sm:$0xff] }
  0x99   :  { %v724_v39 = vld [vmem:[#allocation10 + $0x100] sm:$0xff]  ;;  %v765_v61 = vld [vmem:[#allocation10 + $0x248] sm:$0xff] }
  0x9a   :  { %v769_v62 = vld [vmem:[#allocation10 + $0x268] sm:$0xff] }
  0x9b   :  { %2343 = vmatpush1.bf16.msra.mxu0 %v2342_v27  ;;  %v2378_v27 = vpack.c.bf16 %v704_v46, %v700_v44  ;;  %v876_v44 = vld [vmem:[#allocation10 + $0x5c0] sm:$0xff] }
  0x9c   :  { %2345 = vmatprep.subr.bf16.mxu0 %v2344_v52  ;;  %v2380_v52 = vpack.c.bf16 %v713_v49, %v709_v48  ;;  %v880_v46 = vld [vmem:[#allocation10 + $0x5e0] sm:$0xff] }
  0x9d   :  { %v2466_v49 = vpack.c.bf16 %v880_v46, %v876_v44  ;;  %v797_v46 = vld [vmem:[#allocation10 + $0x348] sm:$0xff] }
  0x9f   :  { %2347 = vmatpush1.bf16.msra.mxu0 %v2346_v45  ;;  %v2382_v45 = vpack.c.bf16 %v712_v55, %v708_v53  ;;  %v756_v53 = vld [vmem:[#allocation10 + $0x200] sm:$0xff] }
  0xa0   :  { %2349 = vmatprep.subr.bf16.mxu0 %v2348_v58  ;;  %v204_v58 = vld [vmem:[#allocation2 + $0x78] sm:$0xff]  ;;  %v760_v55 = vld [vmem:[#allocation10 + $0x220] sm:$0xff] }
  0xa1   :  { %v2406_v56 = vpack.c.bf16 %v760_v55, %v756_v53  ;;  %v929_v55 = vld [vmem:[#allocation10 + $0x768] sm:$0xff] }
  0xa3   :  { %2351 = vmatpush1.bf16.msra.mxu0 %v2350_v63  ;;  %v203_v63 = vld [vmem:[#allocation2 + $0x70] sm:$0xff] }
  0xa4   :  { %2353 = vmatprep.subr.bf16.mxu0 %v2352_v3 }
  0xa7   :  { %2355 = vmatpush1.bf16.msra.mxu0 %v2354_v9  ;;  %v211_v9 = vld [vmem:[#allocation2 + $0xb0] sm:$0xff] }
  0xa8   :  { %2357 = vmatprep.subr.bf16.mxu0 %v2356_v10  ;;  %v219_v10 = vld [vmem:[#allocation2 + $0xf0] sm:$0xff] }
  0xab   :  { %2359 = vmatpush1.bf16.msra.mxu0 %v2358_v16  ;;  %v2392_v16 = vpack.c.bf16 %v737_v4, %v733_v13  ;;  %v772_v13 = vld [vmem:[#allocation10 + $0x280] sm:$0xff] }
  0xac   :  { %2361 = vmatprep.subr.bf16.mxu0 %v2360_v17  ;;  %v736_v17 = vld [vmem:[#allocation10 + $0x160] sm:$0xff] }
  0xad   :  { %v776_v4 = vld [vmem:[#allocation10 + $0x2a0] sm:$0xff] }
  0xaf   :  { %2363 = vmatpush1.bf16.msra.mxu0 %v2362_v5  ;;  %v2456_v5 = vpack.c.bf16 %v865_v20, %v861_v18  ;;  %v900_v18 = vld [vmem:[#allocation10 + $0x680] sm:$0xff] }
  0xb0   :  { %2365 = vmatprep.subr.bf16.mxu0 %v2364_v22  ;;  %v741_v22 = vld [vmem:[#allocation10 + $0x188] sm:$0xff] }
  0xb1   :  { %v2396_v24 = vpack.c.bf16 %v745_v23, %v741_v22  ;;  %v780_v22 = vld [vmem:[#allocation10 + $0x2c0] sm:$0xff] }
  0xb2   :  { %v784_v23 = vld [vmem:[#allocation10 + $0x2e0] sm:$0xff] }
  0xb3   :  { %2367 = vmatpush1.bf16.msra.mxu0 %v2366_v29  ;;  %v869_v29 = vld [vmem:[#allocation10 + $0x588] sm:$0xff] }
  0xb4   :  { %2369 = vmatprep.subr.bf16.mxu0 %v2368_v30  ;;  %v2398_v30 = vpack.c.bf16 %v744_v26, %v740_v25  ;;  %v2460_v34 = vpack.c.bf16 %v873_v31, %v869_v29  ;;  %v2418_v25 = vpack.c.bf16 %v784_v23, %v780_v22  ;;  %v913_v26 = vld [vmem:[#allocation10 + $0x6e8] sm:$0xff]  ;;  %v908_v29 = vld [vmem:[#allocation10 + $0x6c0] sm:$0xff] }
  0xb7   :  { %2371 = vmatpush1.bf16.msra.mxu0 %v2370_v14  ;;  %v2462_v14 = vpack.c.bf16 %v872_v33, %v868_v32  ;;  %v789_v33 = vld [vmem:[#allocation10 + $0x308] sm:$0xff] }
  0xb8   :  { %2373 = vmatprep.subr.bf16.mxu0 %v2372_v35  ;;  %v749_v35 = vld [vmem:[#allocation10 + $0x1c8] sm:$0xff] }
  0xb9   :  { %v2400_v37 = vpack.c.bf16 %v753_v36, %v749_v35  ;;  %v788_v35 = vld [vmem:[#allocation10 + $0x300] sm:$0xff] }
  0xba   :  { %539 = vmatmul.mubr.f32.vlgmr.msra.gmra.mrb[0].mxu0 %v3308_v40  ;;  %v720_v40 = vld [vmem:[#allocation10 + $0xe0] sm:$0xff] }
  0xbb   :  { %544 = vmatprep.mubr.f32.mxu0 %v196_v42  ;;  %2375 = vmatpush1.bf16.msra.mxu0 %v2374_v41  ;;  %v2386_v3 = vpack.c.bf16 %v720_v40, %v716_v60  ;;  %v877_v41 = vld [vmem:[#allocation10 + $0x5c8] sm:$0xff]  ;;  %v2402_v42 = vpack.c.bf16 %v752_v38, %v748_v15  ;;  %v792_v36 = vld [vmem:[#allocation10 + $0x320] sm:$0xff] }
  0xbc   :  { %2377 = vmatprep.subr.bf16.mxu0 %v2376_v43  ;;  %v881_v43 = vld [vmem:[#allocation10 + $0x5e8] sm:$0xff]  ;;  %v2422_v15 = vpack.c.bf16 %v792_v36, %v788_v35 }
  0xbd   :  { %v2464_v48 = vpack.c.bf16 %v881_v43, %v877_v41  ;;  %v921_v38 = vld [vmem:[#allocation10 + $0x728] sm:$0xff]  ;;  %v916_v41 = vld [vmem:[#allocation10 + $0x700] sm:$0xff] }
  0xbe   :  { %545 = vmatmul.mubr.f32.gmra.mrb[2].mxu0 %v195_v51  ;;  %v757_v51 = vld [vmem:[#allocation10 + $0x208] sm:$0xff] }
  0xbf   :  { %550 = vmatprep.mubr.f32.mxu0 %v3319_v47  ;;  %2379 = vmatpush1.bf16.msra.mxu0 %v2378_v27  ;;  %v2390_v47 = vpack.c.bf16 %v728_v7, %v724_v39  ;;  %v761_v27 = vld [vmem:[#allocation10 + $0x228] sm:$0xff] }
  0xc0   :  { %2381 = vmatprep.subr.bf16.mxu0 %v2380_v52  ;;  %v2404_v52 = vpack.c.bf16 %v761_v27, %v757_v51  ;;  %v893_v39 = vld [vmem:[#allocation10 + $0x648] sm:$0xff]  ;;  %v796_v51 = vld [vmem:[#allocation10 + $0x340] sm:$0xff] }
  0xc1   :  { %v800_v27 = vld [vmem:[#allocation10 + $0x360] sm:$0xff] }
  0xc2   :  { %551 = vmatmul.mubr.f32.gmra.mrb[4].mxu0 %v3324_v50  ;;  %v220_v50 = vld [vmem:[#allocation2 + $0xf8] sm:$0xff]  ;;  %v2426_v53 = vpack.c.bf16 %v800_v27, %v796_v51 }
  0xc3   :  { %556 = vmatprep.mubr.f32.mxu0 %v204_v58  ;;  %2383 = vmatpush1.bf16.msra.mxu0 %v2382_v45  ;;  %v889_v45 = vld [vmem:[#allocation10 + $0x628] sm:$0xff]  ;;  %v884_v58 = vld [vmem:[#allocation10 + $0x600] sm:$0xff] }
  0xc4   :  { %2385 = vmatprep.subr.bf16.mxu0 %v2384_v59  ;;  %v888_v59 = vld [vmem:[#allocation10 + $0x620] sm:$0xff]  ;;  %v2468_v60 = vpack.c.bf16 %v889_v45, %v885_v28 }
  0xc5   :  { %v2470_v40 = vpack.c.bf16 %v888_v59, %v884_v58  ;;  %v924_v28 = vld [vmem:[#allocation10 + $0x740] sm:$0xff]  ;;  %v805_v59 = vld [vmem:[#allocation10 + $0x388] sm:$0xff] }
  0xc6   :  { %557 = vmatmul.mubr.f32.gmra.mrb[6].mxu0 %v203_v63  ;;  %v2408_v63 = vpack.c.bf16 %v769_v62, %v765_v61  ;;  %v804_v61 = vld [vmem:[#allocation10 + $0x380] sm:$0xff] }
  0xc7   :  { %562 = vmatprep.mubr.f32.mxu0 %v3335_v54  ;;  %2387 = vmatpush1.bf16.msra.mxu0 %v2386_v3  ;;  %v856_v54 = vld [vmem:[#allocation10 + $0x520] sm:$0xff] }
  0xc8   :  { %2389 = vmatprep.subr.bf16.mxu0 %v2388_v6  ;;  %v2454_v12 = vpack.c.bf16 %v856_v54, %v852_v11  ;;  %v764_v3 = vld [vmem:[#allocation10 + $0x240] sm:$0xff]  ;;  %v773_v11 = vld [vmem:[#allocation10 + $0x288] sm:$0xff] }
  0xc9   :  { %v768_v6 = vld [vmem:[#allocation10 + $0x260] sm:$0xff]  ;;  %v777_v54 = vld [vmem:[#allocation10 + $0x2a8] sm:$0xff] }
  0xca   :  { %563 = vmatmul.mubr.f32.gmra.mrb[8].mxu0 %v3340_v57  ;;  %2455 = vmatpush1.bf16.msra.mxu1 %v2454_v12  ;;  %v732_v57 = vld [vmem:[#allocation10 + $0x140] sm:$0xff]  ;;  %v2410_v7 = vpack.c.bf16 %v768_v6, %v764_v3  ;;  %v2412_v12 = vpack.c.bf16 %v777_v54, %v773_v11  ;;  %v937_v6 = vld [vmem:[#allocation10 + $0x7a8] sm:$0xff] }
  0xcb   :  { %568 = vmatprep.mubr.f32.mxu0 %v212_v8  ;;  %2391 = vmatpush1.bf16.msra.mxu0 %v2390_v47  ;;  %v2394_v19 = vpack.c.bf16 %v736_v17, %v732_v57  ;;  %v897_v47 = vld [vmem:[#allocation10 + $0x668] sm:$0xff]  ;;  %v892_v8 = vld [vmem:[#allocation10 + $0x640] sm:$0xff]  ;;  %v2414_v57 = vpack.c.bf16 %v776_v4, %v772_v13 }
  0xcc   :  { %2393 = vmatprep.subr.bf16.mxu0 %v2392_v16  ;;  %2457 = vmatprep.subr.bf16.mxu1 %v2456_v5  ;;  %v901_v16 = vld [vmem:[#allocation10 + $0x688] sm:$0xff]  ;;  %v808_v62 = vld [vmem:[#allocation10 + $0x3a0] sm:$0xff] }
  0xcd   :  { %v905_v17 = vld [vmem:[#allocation10 + $0x6a8] sm:$0xff]  ;;  %v2430_v3 = vpack.c.bf16 %v808_v62, %v804_v61  ;;  %v816_v54 = vld [vmem:[#allocation10 + $0x3e0] sm:$0xff] }
  0xce   :  { %569 = vmatmul.mubr.f32.gmra.mrb[10].mxu0 %v211_v9  ;;  %v896_v9 = vld [vmem:[#allocation10 + $0x660] sm:$0xff]  ;;  %v2476_v20 = vpack.c.bf16 %v905_v17, %v901_v16  ;;  %v785_v5 = vld [vmem:[#allocation10 + $0x2e8] sm:$0xff] }
  0xcf   :  { %574 = vmatprep.mubr.f32.mxu0 %v3351_v1  ;;  %v864_v1 = vld [vmem:[#allocation10 + $0x560] sm:$0xff]  ;;  %2395 = vmatpush1.bf16.msra.mxu0 %v2394_v19  ;;  %v945_v13 = vld [vmem:[#allocation10 + $0x7e8] sm:$0xff] }
  0xd0   :  { %2397 = vmatprep.subr.bf16.mxu0 %v2396_v24  ;;  %v904_v19 = vld [vmem:[#allocation10 + $0x6a0] sm:$0xff]  ;;  %v909_v24 = vld [vmem:[#allocation10 + $0x6c8] sm:$0xff] }
  0xd1   :  { %v2480_v31 = vpack.c.bf16 %v913_v26, %v909_v24  ;;  %v944_v17 = vld [vmem:[#allocation10 + $0x7e0] sm:$0xff] }
  0xd2   :  { %575 = vmatmul.mubr.f32.gmra.mrb[12].mxu0 %v3356_v2  ;;  %v2458_v2 = vpack.c.bf16 %v864_v1, %v860_v21  ;;  %v2478_v21 = vpack.c.bf16 %v904_v19, %v900_v18  ;;  %v781_v1 = vld [vmem:[#allocation10 + $0x2c8] sm:$0xff]  ;;  %v695_v19 = vld [vmem:[#allocation10 + $0x18] sm:$0xff]  ;;  %v349_v26 = vld [vmem:[%s3607_s2] sm:$0x3] }
  0xd3   :  { %580 = vmatprep.mubr.f32.mxu0 %v220_v50  ;;  %2399 = vmatpush1.bf16.msra.mxu0 %v2398_v30  ;;  %v2472_v50 = vpack.c.bf16 %v897_v47, %v893_v39  ;;  %v912_v30 = vld [vmem:[#allocation10 + $0x6e0] sm:$0xff] }
  0xd4   :  { %2459 = vmatpush1.bf16.msra.mxu1 %v2458_v2  ;;  %2401 = vmatprep.subr.bf16.mxu0 %v2400_v37  ;;  %v2416_v2 = vpack.c.bf16 %v785_v5, %v781_v1  ;;  %v2482_v32 = vpack.c.bf16 %v912_v30, %v908_v29  ;;  %v917_v37 = vld [vmem:[#allocation10 + $0x708] sm:$0xff]  ;;  %v932_v39 = vld [vmem:[#allocation10 + $0x780] sm:$0xff]  ;;  %v351_v1 = vlaneseq }
  0xd5   :  { %2461 = vmatprep.subr.bf16.mxu1 %v2460_v34  ;;  %v793_v34 = vld [vmem:[#allocation10 + $0x328] sm:$0xff]  ;;  %v2484_v43 = vpack.c.bf16 %v921_v38, %v917_v37 }
  0xd6   :  { %581 = vmatmul.mubr.f32.gmra.mrb[14].mxu0 %v219_v10  ;;  %v2474_v10 = vpack.c.bf16 %v896_v9, %v892_v8  ;;  %v813_v9 = vld [vmem:[#allocation10 + $0x3c8] sm:$0xff]  ;;  %v3380_v22 = vshrl.u32 %v351_v1, 7  ;;  %vm3492_vm0 = vcmp.lt.s32.totalorder %v351_v1, 256 }
  0xd7   :  { %2403 = vmatpush1.bf16.msra.mxu0 %v2402_v42  ;;  %v920_v42 = vld [vmem:[#allocation10 + $0x720] sm:$0xff] }
  0xd8   :  { %2463 = vmatpush1.bf16.msra.mxu1 %v2462_v14  ;;  %2405 = vmatprep.subr.bf16.mxu0 %v2404_v52  ;;  %v2420_v14 = vpack.c.bf16 %v793_v34, %v789_v33  ;;  %v2486_v44 = vpack.c.bf16 %v920_v42, %v916_v41  ;;  %v925_v52 = vld [vmem:[#allocation10 + $0x748] sm:$0xff]  ;;  %v3389_v29 = vsub.s32 1, %v3380_v22 }
  0xd9   :  { %2465 = vmatprep.subr.bf16.mxu1 %v2464_v48  ;;  %v801_v48 = vld [vmem:[#allocation10 + $0x368] sm:$0xff]  ;;  %v2488_v45 = vpack.c.bf16 %v929_v55, %v925_v52 }
  0xda   :  { %v358_v33 = vrot.slane %v349_v26, %v3389_v29 }
  0xdb   :  { %2407 = vmatpush1.bf16.msra.mxu0 %v2406_v56  ;;  %v928_v56 = vld [vmem:[#allocation10 + $0x760] sm:$0xff] }
  0xdc   :  { %2467 = vmatpush1.bf16.msra.mxu1 %v2466_v49  ;;  %2409 = vmatprep.subr.bf16.mxu0 %v2408_v63  ;;  %v2424_v49 = vpack.c.bf16 %v801_v48, %v797_v46  ;;  %v2490_v58 = vpack.c.bf16 %v928_v56, %v924_v28  ;;  %v933_v63 = vld [vmem:[#allocation10 + $0x788] sm:$0xff] }
  0xdd   :  { %2469 = vmatprep.subr.bf16.mxu1 %v2468_v60  ;;  %v809_v60 = vld [vmem:[#allocation10 + $0x3a8] sm:$0xff]  ;;  %v2492_v47 = vpack.c.bf16 %v937_v6, %v933_v63 }
  0xdf   :  { %2411 = vmatpush1.bf16.msra.mxu0 %v2410_v7  ;;  %v936_v7 = vld [vmem:[#allocation10 + $0x7a0] sm:$0xff] }
  0xe0   :  { %2471 = vmatpush1.bf16.msra.mxu1 %v2470_v40  ;;  %2413 = vmatprep.subr.bf16.mxu0 %v2412_v12  ;;  %v2428_v40 = vpack.c.bf16 %v809_v60, %v805_v59  ;;  %v2494_v8 = vpack.c.bf16 %v936_v7, %v932_v39  ;;  %v941_v12 = vld [vmem:[#allocation10 + $0x7c8] sm:$0xff] }
  0xe1   :  { %2473 = vmatprep.subr.bf16.mxu1 %v2472_v50  ;;  %v817_v50 = vld [vmem:[#allocation10 + $0x3e8] sm:$0xff]  ;;  %v2496_v16 = vpack.c.bf16 %v945_v13, %v941_v12 }
  0xe2   :  { %v2432_v11 = vpack.c.bf16 %v817_v50, %v813_v9 }
  0xe3   :  { %2415 = vmatpush1.bf16.msra.mxu0 %v2414_v57  ;;  %v940_v57 = vld [vmem:[#allocation10 + $0x7c0] sm:$0xff] }
  0xe4   :  { %2475 = vmatpush1.bf16.msra.mxu1 %v2474_v10  ;;  %2417 = vmatprep.subr.bf16.mxu0 %v2416_v2  ;;  %v812_v10 = vld [vmem:[#allocation10 + $0x3c0] sm:$0xff]  ;;  %v2498_v18 = vpack.c.bf16 %v944_v17, %v940_v57 }
  0xe5   :  { %2477 = vmatprep.subr.bf16.mxu1 %v2476_v20  ;;  %v2434_v4 = vpack.c.bf16 %v816_v54, %v812_v10  ;;  %v699_v20 = vld [vmem:[#allocation10 + $0x38] sm:$0xff] }
  0xe7   :  { %2419 = vmatpush1.bf16.msra.mxu0 %v2418_v25  ;;  %v3383_v25 = vsub.s32 0, %v3380_v22 }
  0xe8   :  { %2479 = vmatpush1.bf16.msra.mxu1 %v2478_v21  ;;  %2421 = vmatprep.subr.bf16.mxu0 %v2420_v14  ;;  %v2500_v21 = vpack.c.bf16 %v699_v20, %v695_v19 }
  0xe9   :  { %2481 = vmatprep.subr.bf16.mxu1 %v2480_v31 }
  0xeb   :  { %2423 = vmatpush1.bf16.msra.mxu0 %v2422_v15 }
  0xec   :  { %2483 = vmatpush1.bf16.msra.mxu1 %v2482_v32  ;;  %2425 = vmatprep.subr.bf16.mxu0 %v2424_v49  ;;  %v354_v32 = vrot.slane %v349_v26, %v3383_v25 }
  0xed   :  { %2485 = vmatprep.subr.bf16.mxu1 %v2484_v43 }
  0xef   :  { %2427 = vmatpush1.bf16.msra.mxu0 %v2426_v53 }
  0xf0   :  { %2487 = vmatpush1.bf16.msra.mxu1 %v2486_v44  ;;  %2429 = vmatprep.subr.bf16.mxu0 %v2428_v40 }
  0xf1   :  { %2489 = vmatprep.subr.bf16.mxu1 %v2488_v45 }
  0xf3   :  { %2431 = vmatpush1.bf16.msra.mxu0 %v2430_v3 }
  0xf4   :  { %2491 = vmatpush1.bf16.msra.mxu1 %v2490_v58  ;;  %2433 = vmatprep.subr.bf16.mxu0 %v2432_v11 }
  0xf5   :  { %2493 = vmatprep.subr.bf16.mxu1 %v2492_v47 }
  0xf7   :  { %2435 = vmatpush1.bf16.msra.mxu0 %v2434_v4 }
  0xf8   :  { %2495 = vmatpush1.bf16.msra.mxu1 %v2494_v8  ;;  %2501 = vmatprep.subr.bf16.mxu0 %v2500_v21 }
  0xf9   :  { %2497 = vmatprep.subr.bf16.mxu1 %v2496_v16 }
  0xfc   :  { %2499 = vmatpush1.bf16.msra.mxu1 %v2498_v18 }
 0x18d   :  { %v540_v5 = vpop.f32.mrb[0].mxu0 }
 0x18e   :  { %v542_v2 = vpop.f32.mrb[1].mxu0  ;;  %v2908_v35 = vadd.f32 %v540_v5, %v354_v32 }
 0x18f   :  { %v2909_v36 = vadd.f32 %v542_v2, %v358_v33 }
 0x190   :  { %v587_v42 = vmax.f32 %v2908_v35, 0.0 }
 0x191   :  { %v546_v23 = vpop.f32.mrb[2].mxu0  ;;  %v588_v46 = vmax.f32 %v2909_v36, 0.0  ;;  %v694_v36 = vld [vmem:[#allocation10 + $0x10] sm:$0xff] }
 0x192   :  { %v548_v24 = vpop.f32.mrb[3].mxu0  ;;  %v2910_v43 = vadd.f32 %v546_v23, %v354_v32 }
 0x193   :  { %v2911_v48 = vadd.f32 %v548_v24, %v358_v33 }
 0x194   :  { %v589_v56 = vmax.f32 %v2910_v43, 0.0  ;;  %v706_v43 = vld [vmem:[#allocation10 + $0x70] sm:$0xff] }
 0x195   :  { %v552_v30 = vpop.f32.mrb[4].mxu0  ;;  %v590_v59 = vmax.f32 %v2911_v48, 0.0 }
 0x196   :  { %v554_v31 = vpop.f32.mrb[5].mxu0  ;;  %v2912_v45 = vadd.f32 %v552_v30, %v354_v32 }
 0x197   :  { %v2913_v60 = vadd.f32 %v554_v31, %v358_v33 }
 0x198   :  { %v591_v47 = vmax.f32 %v2912_v45, 0.0 }
 0x199   :  { %v558_v34 = vpop.f32.mrb[6].mxu0  ;;  %v592_v50 = vmax.f32 %v2913_v60, 0.0  ;;  %v714_v60 = vld [vmem:[#allocation10 + $0xb0] sm:$0xff] }
 0x19a   :  { %v560_v14 = vpop.f32.mrb[7].mxu0  ;;  %v2914_v8 = vadd.f32 %v558_v34, %v354_v32 }
 0x19b   :  { %v2915_v10 = vadd.f32 %v560_v14, %v358_v33 }
 0x19c   :  { %v593_v18 = vmax.f32 %v2914_v8, 0.0 }
 0x19d   :  { %v564_v37 = vpop.f32.mrb[8].mxu0  ;;  %v594_v20 = vmax.f32 %v2915_v10, 0.0  ;;  %v727_v10 = vld [vmem:[#allocation10 + $0x118] sm:$0xff] }
 0x19e   :  { %v2916_v15 = vadd.f32 %v564_v37, %v354_v32  ;;  %v566_v38 = vpop.f32.mrb[9].mxu0  ;;  %v698_v37 = vld [vmem:[#allocation10 + $0x30] sm:$0xff] }
 0x19f   :  { %v2917_v41 = vadd.f32 %v566_v38, %v358_v33  ;;  %v707_v38 = vld [vmem:[#allocation10 + $0x78] sm:$0xff] }
 0x1a0   :  { %v595_v44 = vmax.f32 %v2916_v15, 0.0  ;;  %v703_v15 = vld [vmem:[#allocation10 + $0x58] sm:$0xff] }
 0x1a1   :  { %v596_v49 = vmax.f32 %v2917_v41, 0.0  ;;  %v570_v51 = vpop.f32.mrb[10].mxu0  ;;  %v702_v41 = vld [vmem:[#allocation10 + $0x50] sm:$0xff] }
 0x1a2   :  { %v603_v27 = vadd.f32 %v595_v44, %v587_v42  ;;  %v2918_v52 = vadd.f32 %v570_v51, %v354_v32  ;;  %v572_v53 = vpop.f32.mrb[11].mxu0  ;;  %v2502_v42 = vpack.c.bf16 %v698_v37, %v694_v36  ;;  %v711_v44 = vld [vmem:[#allocation10 + $0x98] sm:$0xff]  ;;  %v2504_v51 = vpack.c.bf16 %v707_v38, %v703_v15  ;;  %v742_v37 = vld [vmem:[#allocation10 + $0x190] sm:$0xff] }
 0x1a3   :  { %v604_v55 = vadd.f32 %v596_v49, %v588_v46  ;;  %v2919_v28 = vadd.f32 %v572_v53, %v358_v33  ;;  %v715_v46 = vld [vmem:[#allocation10 + $0xb8] sm:$0xff]  ;;  %v2506_v45 = vpack.c.bf16 %v706_v43, %v702_v41  ;;  %v746_v15 = vld [vmem:[#allocation10 + $0x1b0] sm:$0xff] }
 0x1a4   :  { %v597_v58 = vmax.f32 %v2918_v52, 0.0  ;;  %v751_v38 = vld [vmem:[#allocation10 + $0x1d8] sm:$0xff] }
 0x1a5   :  { %v611_v40 = vadd.f32 %v604_v55, %v603_v27  ;;  %v598_v61 = vmax.f32 %v2919_v28, 0.0  ;;  %v576_v62 = vpop.f32.mrb[12].mxu0  ;;  %v755_v41 = vld [vmem:[#allocation10 + $0x1f8] sm:$0xff] }
 0x1a6   :  { %v605_v63 = vadd.f32 %v597_v58, %v589_v56  ;;  %v2920_v3 = vadd.f32 %v576_v62, %v354_v32  ;;  %v578_v6 = vpop.f32.mrb[13].mxu0  ;;  %v2508_v58 = vpack.c.bf16 %v715_v46, %v711_v44  ;;  %v2528_v43 = vpack.c.bf16 %v755_v41, %v751_v38  ;;  %v750_v44 = vld [vmem:[#allocation10 + $0x1d0] sm:$0xff] }
 0x1a7   :  { %615 = vst [vmem:[#allocation5] sm:$0xff] %v611_v40  ;;  %v606_v39 = vadd.f32 %v598_v61, %v590_v59  ;;  %v2921_v7 = vadd.f32 %v578_v6, %v358_v33  ;;  %v710_v59 = vld [vmem:[#allocation10 + $0x90] sm:$0xff] }
 0x1a8   :  { %v599_v9 = vmax.f32 %v2920_v3, 0.0  ;;  %v723_v3 = vld [vmem:[#allocation10 + $0xf8] sm:$0xff]  ;;  %v754_v46 = vld [vmem:[#allocation10 + $0x1f0] sm:$0xff] }
 0x1a9   :  { %v612_v11 = vadd.f32 %v606_v39, %v605_v63  ;;  %v600_v54 = vmax.f32 %v2921_v7, 0.0  ;;  %v582_v12 = vpop.f32.mrb[14].mxu0  ;;  %v719_v63 = vld [vmem:[#allocation10 + $0xd8] sm:$0xff]  ;;  %v2510_v7 = vpack.c.bf16 %v714_v60, %v710_v59 }
 0x1aa   :  { %v607_v13 = vadd.f32 %v599_v9, %v591_v47  ;;  %v2922_v4 = vadd.f32 %v582_v12, %v354_v32  ;;  %v584_v16 = vpop.f32.mrb[15].mxu0  ;;  %v718_v47 = vld [vmem:[#allocation10 + $0xd0] sm:$0xff]  ;;  %v2512_v9 = vpack.c.bf16 %v723_v3, %v719_v63  ;;  %v731_v12 = vld [vmem:[#allocation10 + $0x138] sm:$0xff] }
 0x1ab   :  { %616 = vst [vmem:[#allocation5 + $0x8] sm:$0xff] %v612_v11  ;;  %v608_v57 = vadd.f32 %v600_v54, %v592_v50  ;;  %v2923_v17 = vadd.f32 %v584_v16, %v358_v33  ;;  %v722_v50 = vld [vmem:[#allocation10 + $0xf0] sm:$0xff]  ;;  %v779_v63 = vld [vmem:[#allocation10 + $0x2b8] sm:$0xff] }
 0x1ac   :  { %v601_v19 = vmax.f32 %v2922_v4, 0.0  ;;  %v2514_v16 = vpack.c.bf16 %v722_v50, %v718_v47  ;;  %v778_v47 = vld [vmem:[#allocation10 + $0x2b0] sm:$0xff]  ;;  %v787_v50 = vld [vmem:[#allocation10 + $0x2f8] sm:$0xff] }
 0x1ad   :  { %v613_v21 = vadd.f32 %v608_v57, %v607_v13  ;;  %v602_v5 = vmax.f32 %v2923_v17, 0.0  ;;  %v2516_v57 = vpack.c.bf16 %v731_v12, %v727_v10  ;;  %v726_v17 = vld [vmem:[#allocation10 + $0x110] sm:$0xff] }
 0x1ae   :  { %v609_v2 = vadd.f32 %v601_v19, %v593_v18  ;;  %v730_v18 = vld [vmem:[#allocation10 + $0x130] sm:$0xff]  ;;  %v735_v19 = vld [vmem:[#allocation10 + $0x158] sm:$0xff] }
 0x1af   :  { %617 = vst [vmem:[#allocation5 + $0x10] sm:$0xff] %v613_v21  ;;  %v610_v23 = vadd.f32 %v602_v5, %v594_v20  ;;  %v739_v5 = vld [vmem:[#allocation10 + $0x178] sm:$0xff] }
 0x1b1   :  { %v614_v24 = vadd.f32 %v610_v23, %v609_v2 }
 0x1b2   :  { %v635_v26 = vld [vmem:[#allocation5] ss:$2 sm:$0x1f]  ;;  %v646_v30 = vld [vmem:[#allocation5 + $0x1] ss:$2 sm:$0x1f] }
 0x1b3   :  { %636 = vst [vmem:[#allocation3] sm:$0x1f] %v635_v26  ;;  %618 = vst [vmem:[#allocation5 + $0x18] sm:$0xff] %v614_v24  ;;  %v666_v31 = vld [vmem:[#allocation5 + $0x3] ss:$2 sm:$0x1f]  ;;  %v2518_v24 = vpack.c.bf16 %v730_v18, %v726_v17  ;;  %v2520_v26 = vpack.c.bf16 %v739_v5, %v735_v19 }
 0x1b4   :  { %647 = vst [vmem:[#allocation3 + $0x8] sm:$0x1f] %v646_v30  ;;  %v656_v32 = vld [vmem:[#allocation5 + $0x2] ss:$2 sm:$0x1f]  ;;  %v734_v30 = vld [vmem:[#allocation10 + $0x150] sm:$0xff] }
 0x1b5   :  { %667 = vst [vmem:[#allocation3 + $0x18] sm:$0x1f] %v666_v31  ;;  %657 = vst [vmem:[#allocation3 + $0x10] sm:$0x1f] %v656_v32  ;;  %v738_v31 = vld [vmem:[#allocation10 + $0x170] sm:$0xff]  ;;  %v743_v32 = vld [vmem:[#allocation10 + $0x198] sm:$0xff] }
 0x1b6   :  { %v651_v34 = vld [vmem:[#allocation5 + $0x2] ss:$2 sm:$0x1f]  ;;  %v641_v14 = vld [vmem:[#allocation5 + $0x1] ss:$2 sm:$0x1f] }
 0x1b7   :  { %v671_v33 = vld [vmem:[#allocation5 + $0x4] ss:$2 sm:$0x1f]  ;;  %652 = vst [vmem:[#allocation3 + $0x48] sm:$0x1f] %v651_v34  ;;  %v791_v17 = vld [vmem:[#allocation10 + $0x318] sm:$0xff] }
 0x1b8   :  { %672 = vst [vmem:[#allocation3 + $0x58] sm:$0x1f] %v671_v33  ;;  %v661_v35 = vld [vmem:[#allocation5 + $0x3] ss:$2 sm:$0x1f]  ;;  %v795_v18 = vld [vmem:[#allocation10 + $0x338] sm:$0xff] }
 0x1b9   :  { %642 = vst [vmem:[#allocation3 + $0x40] sm:$0x1f] %v641_v14  ;;  %662 = vst [vmem:[#allocation3 + $0x50] sm:$0x1f] %v661_v35  ;;  %v747_v14 = vld [vmem:[#allocation10 + $0x1b8] sm:$0xff]  ;;  %v2522_v35 = vpack.c.bf16 %v738_v31, %v734_v30  ;;  %v2548_v5 = vpack.c.bf16 %v795_v18, %v791_v17 }
 0x1ba   :  { %v3395_v49 = vld [vmem:[#allocation3] sm:$0xff]  ;;  %v648_v27 = vld [vmem:[#allocation5 + $0x11] ss:$2 sm:$0x1f]  ;;  %v2524_v36 = vpack.c.bf16 %v747_v14, %v743_v32 }
 0x1bb   :  { %v3393_v48 = vld [vmem:[#allocation3 + $0x8] sm:$0xff]  ;;  %649 = vst [vmem:[#allocation3 + $0x28] sm:$0x1f] %v648_v27  ;;  %v668_v55 = vld [vmem:[#allocation5 + $0x13] ss:$2 sm:$0x1f] }
 0x1bc   :  { %1034 = vmatprep.mubr.f32.mxu0 %v3393_v48  ;;  %v3398_v52 = vld [vmem:[#allocation3 + $0x18] sm:$0xff]  ;;  %v3400_v53 = vld [vmem:[#allocation3 + $0x10] sm:$0xff]  ;;  %669 = vst [vmem:[#allocation3 + $0x38] sm:$0x1f] %v668_v55  ;;  %v2530_v55 = vpack.c.bf16 %v754_v46, %v750_v44 }
 0x1bd   :  { %1123 = vmatprep.mubr.f32.mxu1 %v3398_v52  ;;  %1035 = vmatmul.mubr.f32.vlgmr.msra.gmra.mrb[16].mxu0 %v3395_v49  ;;  %v638_v28 = vld [vmem:[#allocation5 + $0x10] ss:$2 sm:$0x1f]  ;;  %v644_v62 = vld [vmem:[#allocation5 + $0x11] ss:$2 sm:$0x1f] }
 0x1be   :  { %v658_v56 = vld [vmem:[#allocation5 + $0x12] ss:$2 sm:$0x1f]  ;;  %1124 = vmatmul.mubr.f32.vlgmr.msra.gmra.mrb[0].mxu1 %v3400_v53  ;;  %2503 = vmatpush1.bf16.msra.mxu0 %v2502_v42  ;;  %639 = vst [vmem:[#allocation3 + $0x20] sm:$0x1f] %v638_v28  ;;  %v3417_v13 = vld [vmem:[#allocation3 + $0x48] sm:$0xff]  ;;  %v2526_v42 = vpack.c.bf16 %v746_v15, %v742_v37 }
 0x1bf   :  { %659 = vst [vmem:[#allocation3 + $0x30] sm:$0x1f] %v658_v56  ;;  %2505 = vmatprep.subr.bf16.mxu0 %v2504_v51  ;;  %v654_v40 = vld [vmem:[#allocation5 + $0x12] ss:$2 sm:$0x1f] }
 0x1c0   :  { %655 = vst [vmem:[#allocation3 + $0x68] sm:$0x1f] %v654_v40  ;;  %v674_v61 = vld [vmem:[#allocation5 + $0x14] ss:$2 sm:$0x1f]  ;;  %v3423_v20 = vld [vmem:[#allocation3 + $0x40] sm:$0xff] }
 0x1c1   :  { %675 = vst [vmem:[#allocation3 + $0x78] sm:$0x1f] %v674_v61  ;;  %645 = vst [vmem:[#allocation3 + $0x60] sm:$0x1f] %v644_v62  ;;  %v3420_v4 = vld [vmem:[#allocation3 + $0x58] sm:$0xff]  ;;  %v3425_v21 = vld [vmem:[#allocation3 + $0x50] sm:$0xff] }
 0x1c2   :  { %v664_v6 = vld [vmem:[#allocation5 + $0x13] ss:$2 sm:$0x1f]  ;;  %2507 = vmatpush1.bf16.msra.mxu0 %v2506_v45  ;;  %v3405_v39 = vld [vmem:[#allocation3 + $0x28] sm:$0xff] }
 0x1c3   :  { %665 = vst [vmem:[#allocation3 + $0x70] sm:$0x1f] %v664_v6  ;;  %2509 = vmatprep.subr.bf16.mxu0 %v2508_v58  ;;  %1040 = vmatprep.mubr.f32.mxu0 %v3405_v39  ;;  %v3408_v8 = vld [vmem:[#allocation3 + $0x38] sm:$0xff]  ;;  %v762_v56 = vld [vmem:[#allocation10 + $0x230] sm:$0xff] }
 0x1c4   :  { %1129 = vmatprep.mubr.f32.mxu1 %v3408_v8  ;;  %v759_v51 = vld [vmem:[#allocation10 + $0x218] sm:$0xff]  ;;  %v766_v40 = vld [vmem:[#allocation10 + $0x250] sm:$0xff] }
 0x1c5   :  { %v3411_v11 = vld [vmem:[#allocation3 + $0x20] sm:$0xff]  ;;  %v763_v27 = vld [vmem:[#allocation10 + $0x238] sm:$0xff]  ;;  %v770_v61 = vld [vmem:[#allocation10 + $0x270] sm:$0xff] }
 0x1c6   :  { %v3413_v54 = vld [vmem:[#allocation3 + $0x30] sm:$0xff]  ;;  %1041 = vmatmul.mubr.f32.gmra.mrb[18].mxu0 %v3411_v11  ;;  %v2532_v28 = vpack.c.bf16 %v763_v27, %v759_v51  ;;  %v767_v45 = vld [vmem:[#allocation10 + $0x258] sm:$0xff]  ;;  %v2538_v3 = vpack.c.bf16 %v770_v61, %v766_v40 }
 0x1c7   :  { %1130 = vmatmul.mubr.f32.gmra.mrb[2].mxu1 %v3413_v54  ;;  %2511 = vmatpush1.bf16.msra.mxu0 %v2510_v7  ;;  %v3429_v2 = vld [vmem:[#allocation3 + $0x68] sm:$0xff]  ;;  %v771_v58 = vld [vmem:[#allocation10 + $0x278] sm:$0xff]  ;;  %v774_v7 = vld [vmem:[#allocation10 + $0x290] sm:$0xff] }
 0x1c8   :  { %1046 = vmatprep.mubr.f32.mxu0 %v3417_v13  ;;  %1135 = vmatprep.mubr.f32.mxu1 %v3420_v4  ;;  %v3432_v23 = vld [vmem:[#allocation3 + $0x78] sm:$0xff]  ;;  %v3435_v34 = vld [vmem:[#allocation3 + $0x60] sm:$0xff]  ;;  %v2536_v60 = vpack.c.bf16 %v771_v58, %v767_v45  ;;  %v2542_v10 = vpack.c.bf16 %v778_v47, %v774_v7 }
 0x1c9   :  { %2513 = vmatprep.subr.bf16.mxu0 %v2512_v9  ;;  %v775_v62 = vld [vmem:[#allocation10 + $0x298] sm:$0xff] }
 0x1ca   :  { %1047 = vmatmul.mubr.f32.gmra.mrb[20].mxu0 %v3423_v20  ;;  %v3437_v33 = vld [vmem:[#allocation3 + $0x70] sm:$0xff]  ;;  %v2540_v6 = vpack.c.bf16 %v779_v63, %v775_v62  ;;  %v783_v9 = vld [vmem:[#allocation10 + $0x2d8] sm:$0xff] }
 0x1cb   :  { %1136 = vmatmul.mubr.f32.gmra.mrb[4].mxu1 %v3425_v21  ;;  %2515 = vmatpush1.bf16.msra.mxu0 %v2514_v16  ;;  %v2544_v12 = vpack.c.bf16 %v787_v50, %v783_v9  ;;  %v782_v16 = vld [vmem:[#allocation10 + $0x2d0] sm:$0xff]  ;;  %v799_v30 = vld [vmem:[#allocation10 + $0x358] sm:$0xff] }
 0x1cc   :  { %1052 = vmatprep.mubr.f32.mxu0 %v3429_v2  ;;  %1141 = vmatprep.mubr.f32.mxu1 %v3432_v23  ;;  %v803_v31 = vld [vmem:[#allocation10 + $0x378] sm:$0xff] }
 0x1cd   :  { %2517 = vmatprep.subr.bf16.mxu0 %v2516_v57  ;;  %v786_v57 = vld [vmem:[#allocation10 + $0x2f0] sm:$0xff]  ;;  %v2552_v14 = vpack.c.bf16 %v803_v31, %v799_v30  ;;  %v807_v37 = vld [vmem:[#allocation10 + $0x398] sm:$0xff] }
 0x1ce   :  { %1053 = vmatmul.mubr.f32.gmra.mrb[22].mxu0 %v3435_v34  ;;  %v2546_v19 = vpack.c.bf16 %v786_v57, %v782_v16  ;;  %v811_v15 = vld [vmem:[#allocation10 + $0x3b8] sm:$0xff]  ;;  %v854_v30 = vld [vmem:[#allocation10 + $0x510] sm:$0xff] }
 0x1cf   :  { %1142 = vmatmul.mubr.f32.gmra.mrb[6].mxu1 %v3437_v33  ;;  %2519 = vmatpush1.bf16.msra.mxu0 %v2518_v24  ;;  %v790_v24 = vld [vmem:[#allocation10 + $0x310] sm:$0xff]  ;;  %v2556_v41 = vpack.c.bf16 %v811_v15, %v807_v37  ;;  %v815_v44 = vld [vmem:[#allocation10 + $0x3d8] sm:$0xff] }
 0x1d0   :  { %1212 = vmatprep.mubr.f32.mxu0 %v3393_v48  ;;  %2521 = vmatprep.subr.bf16.mxu0 %v2520_v26  ;;  %v758_v48 = vld [vmem:[#allocation10 + $0x210] sm:$0xff]  ;;  %v819_v46 = vld [vmem:[#allocation10 + $0x3f8] sm:$0xff] }
 0x1d1   :  { %v2534_v59 = vpack.c.bf16 %v762_v56, %v758_v48  ;;  %v794_v26 = vld [vmem:[#allocation10 + $0x330] sm:$0xff]  ;;  %v2560_v27 = vpack.c.bf16 %v819_v46, %v815_v44  ;;  %v823_v48 = vld [vmem:[#allocation10 + $0x418] sm:$0xff] }
 0x1d2   :  { %v2550_v32 = vpack.c.bf16 %v794_v26, %v790_v24  ;;  %v827_v56 = vld [vmem:[#allocation10 + $0x438] sm:$0xff]  ;;  %v882_v46 = vld [vmem:[#allocation10 + $0x5f0] sm:$0xff] }
 0x1d3   :  { %2523 = vmatpush1.bf16.msra.mxu0 %v2522_v35  ;;  %v798_v35 = vld [vmem:[#allocation10 + $0x350] sm:$0xff]  ;;  %v2564_v58 = vpack.c.bf16 %v827_v56, %v823_v48  ;;  %v831_v40 = vld [vmem:[#allocation10 + $0x458] sm:$0xff] }
 0x1d4   :  { %2525 = vmatprep.subr.bf16.mxu0 %v2524_v36  ;;  %v802_v36 = vld [vmem:[#allocation10 + $0x370] sm:$0xff]  ;;  %v835_v61 = vld [vmem:[#allocation10 + $0x478] sm:$0xff] }
 0x1d5   :  { %v2554_v38 = vpack.c.bf16 %v802_v36, %v798_v35  ;;  %v2568_v63 = vpack.c.bf16 %v835_v61, %v831_v40  ;;  %v839_v7 = vld [vmem:[#allocation10 + $0x498] sm:$0xff]  ;;  %v862_v35 = vld [vmem:[#allocation10 + $0x550] sm:$0xff] }
 0x1d6   :  { %v843_v47 = vld [vmem:[#allocation10 + $0x4b8] sm:$0xff]  ;;  %v886_v48 = vld [vmem:[#allocation10 + $0x610] sm:$0xff] }
 0x1d7   :  { %2527 = vmatpush1.bf16.msra.mxu0 %v2526_v42  ;;  %v806_v42 = vld [vmem:[#allocation10 + $0x390] sm:$0xff]  ;;  %v2572_v50 = vpack.c.bf16 %v843_v47, %v839_v7  ;;  %v847_v16 = vld [vmem:[#allocation10 + $0x4d8] sm:$0xff] }
 0x1d8   :  { %2529 = vmatprep.subr.bf16.mxu0 %v2528_v43  ;;  %v810_v43 = vld [vmem:[#allocation10 + $0x3b0] sm:$0xff]  ;;  %v851_v57 = vld [vmem:[#allocation10 + $0x4f8] sm:$0xff] }
 0x1d9   :  { %v2558_v51 = vpack.c.bf16 %v810_v43, %v806_v42  ;;  %v2576_v18 = vpack.c.bf16 %v851_v57, %v847_v16  ;;  %v863_v31 = vld [vmem:[#allocation10 + $0x558] sm:$0xff]  ;;  %v890_v56 = vld [vmem:[#allocation10 + $0x630] sm:$0xff] }
 0x1da   :  { %v871_v36 = vld [vmem:[#allocation10 + $0x598] sm:$0xff]  ;;  %v894_v40 = vld [vmem:[#allocation10 + $0x650] sm:$0xff] }
 0x1db   :  { %2531 = vmatpush1.bf16.msra.mxu0 %v2530_v55  ;;  %v814_v55 = vld [vmem:[#allocation10 + $0x3d0] sm:$0xff]  ;;  %v879_v42 = vld [vmem:[#allocation10 + $0x5d8] sm:$0xff] }
 0x1dc   :  { %2533 = vmatprep.subr.bf16.mxu0 %v2532_v28  ;;  %v818_v28 = vld [vmem:[#allocation10 + $0x3f0] sm:$0xff]  ;;  %v883_v43 = vld [vmem:[#allocation10 + $0x5f8] sm:$0xff] }
 0x1dd   :  { %v2562_v45 = vpack.c.bf16 %v818_v28, %v814_v55  ;;  %v2592_v44 = vpack.c.bf16 %v883_v43, %v879_v42  ;;  %v898_v61 = vld [vmem:[#allocation10 + $0x670] sm:$0xff] }
 0x1de   :  { %v902_v7 = vld [vmem:[#allocation10 + $0x690] sm:$0xff] }
 0x1df   :  { %2535 = vmatpush1.bf16.msra.mxu0 %v2534_v59  ;;  %v822_v59 = vld [vmem:[#allocation10 + $0x410] sm:$0xff] }
 0x1e0   :  { %2537 = vmatprep.subr.bf16.mxu0 %v2536_v60  ;;  %v826_v60 = vld [vmem:[#allocation10 + $0x430] sm:$0xff] }
 0x1e1   :  { %v2566_v62 = vpack.c.bf16 %v826_v60, %v822_v59  ;;  %v2598_v59 = vpack.c.bf16 %v890_v56, %v886_v48  ;;  %v906_v47 = vld [vmem:[#allocation10 + $0x6b0] sm:$0xff]  ;;  %v1479_v48 = vld [vmem:[#allocation12 + $0x68] sm:$0xff]  ;;  %v1481_v56 = vld [vmem:[#allocation12 + $0x78] sm:$0xff] }
 0x1e2   :  { %v910_v16 = vld [vmem:[#allocation10 + $0x6d0] sm:$0xff] }
 0x1e3   :  { %2539 = vmatpush1.bf16.msra.mxu0 %v2538_v3  ;;  %v830_v3 = vld [vmem:[#allocation10 + $0x450] sm:$0xff] }
 0x1e4   :  { %2541 = vmatprep.subr.bf16.mxu0 %v2540_v6  ;;  %v834_v6 = vld [vmem:[#allocation10 + $0x470] sm:$0xff] }
 0x1e5   :  { %v2570_v9 = vpack.c.bf16 %v834_v6, %v830_v3  ;;  %v2602_v3 = vpack.c.bf16 %v898_v61, %v894_v40  ;;  %v914_v57 = vld [vmem:[#allocation10 + $0x6f0] sm:$0xff]  ;;  %v947_v40 = vld [vmem:[#allocation10 + $0x7f8] sm:$0xff] }
 0x1e6   :  { %v926_v42 = vld [vmem:[#allocation10 + $0x750] sm:$0xff] }
 0x1e7   :  { %2543 = vmatpush1.bf16.msra.mxu0 %v2542_v10  ;;  %v838_v10 = vld [vmem:[#allocation10 + $0x490] sm:$0xff] }
 0x1e8   :  { %2545 = vmatprep.subr.bf16.mxu0 %v2544_v12  ;;  %v842_v12 = vld [vmem:[#allocation10 + $0x4b0] sm:$0xff] }
 0x1e9   :  { %v2574_v17 = vpack.c.bf16 %v842_v12, %v838_v10  ;;  %v2606_v10 = vpack.c.bf16 %v906_v47, %v902_v7  ;;  %v930_v43 = vld [vmem:[#allocation10 + $0x770] sm:$0xff]  ;;  %v1483_v7 = vld [vmem:[#allocation12 + $0x88] sm:$0xff]  ;;  %v1485_v47 = vld [vmem:[#allocation12 + $0x98] sm:$0xff] }
 0x1eb   :  { %2547 = vmatpush1.bf16.msra.mxu0 %v2546_v19  ;;  %v846_v19 = vld [vmem:[#allocation10 + $0x4d0] sm:$0xff] }
 0x1ec   :  { %2549 = vmatprep.subr.bf16.mxu0 %v2548_v5  ;;  %v855_v5 = vld [vmem:[#allocation10 + $0x518] sm:$0xff] }
 0x1ef   :  { %2551 = vmatpush1.bf16.msra.mxu0 %v2550_v32 }
 0x1f0   :  { %2553 = vmatprep.subr.bf16.mxu0 %v2552_v14 }
 0x1f3   :  { %2555 = vmatpush1.bf16.msra.mxu0 %v2554_v38  ;;  %v870_v38 = vld [vmem:[#allocation10 + $0x590] sm:$0xff] }
 0x1f4   :  { %2557 = vmatprep.subr.bf16.mxu0 %v2556_v41  ;;  %v874_v41 = vld [vmem:[#allocation10 + $0x5b0] sm:$0xff] }
 0x1f7   :  { %2559 = vmatpush1.bf16.msra.mxu0 %v2558_v51  ;;  %v887_v51 = vld [vmem:[#allocation10 + $0x618] sm:$0xff] }
 0x1f8   :  { %2561 = vmatprep.subr.bf16.mxu0 %v2560_v27  ;;  %v891_v27 = vld [vmem:[#allocation10 + $0x638] sm:$0xff] }
 0x1f9   :  { %v2596_v28 = vpack.c.bf16 %v891_v27, %v887_v51  ;;  %v1474_v27 = vld [vmem:[#allocation12 + $0x40] sm:$0xff] }
 0x1fb   :  { %2563 = vmatpush1.bf16.msra.mxu0 %v2562_v45  ;;  %v895_v45 = vld [vmem:[#allocation10 + $0x658] sm:$0xff] }
 0x1fc   :  { %2565 = vmatprep.subr.bf16.mxu0 %v2564_v58  ;;  %v899_v58 = vld [vmem:[#allocation10 + $0x678] sm:$0xff] }
 0x1fd   :  { %v2600_v60 = vpack.c.bf16 %v899_v58, %v895_v45  ;;  %v934_v58 = vld [vmem:[#allocation10 + $0x790] sm:$0xff] }
 0x1fe   :  { %1213 = vmatmul.mubr.f32.vlgmr.msra.gmra.mrb[24].mxu0 %v3395_v49  ;;  %v850_v49 = vld [vmem:[#allocation10 + $0x4f0] sm:$0xff] }
 0x1ff   :  { %1218 = vmatprep.mubr.f32.mxu0 %v3405_v39  ;;  %2567 = vmatpush1.bf16.msra.mxu0 %v2566_v62  ;;  %v859_v39 = vld [vmem:[#allocation10 + $0x538] sm:$0xff]  ;;  %v2578_v24 = vpack.c.bf16 %v850_v49, %v846_v19  ;;  %v2610_v19 = vpack.c.bf16 %v914_v57, %v910_v16  ;;  %v918_v49 = vld [vmem:[#allocation10 + $0x710] sm:$0xff]  ;;  %v2644_v16 = vpack.c.bf16 %v1485_v47, %v1483_v7  ;;  %v1482_v57 = vld [vmem:[#allocation12 + $0x80] sm:$0xff] }
 0x200   :  { %2569 = vmatprep.subr.bf16.mxu0 %v2568_v63  ;;  %v2580_v26 = vpack.c.bf16 %v859_v39, %v855_v5  ;;  %v903_v62 = vld [vmem:[#allocation10 + $0x698] sm:$0xff]  ;;  %v922_v39 = vld [vmem:[#allocation10 + $0x730] sm:$0xff]  ;;  %v1502_v7 = vld [vmem:[#allocation12 + $0x120] sm:$0xff] }
 0x201   :  { %v907_v63 = vld [vmem:[#allocation10 + $0x6b8] sm:$0xff]  ;;  %v1504_v47 = vld [vmem:[#allocation12 + $0x130] sm:$0xff] }
 0x202   :  { %1219 = vmatmul.mubr.f32.gmra.mrb[26].mxu0 %v3411_v11  ;;  %v858_v11 = vld [vmem:[#allocation10 + $0x530] sm:$0xff]  ;;  %v2604_v6 = vpack.c.bf16 %v907_v63, %v903_v62  ;;  %v2640_v62 = vpack.c.bf16 %v1481_v56, %v1479_v48  ;;  %v1478_v63 = vld [vmem:[#allocation12 + $0x60] sm:$0xff] }
 0x203   :  { %1224 = vmatprep.mubr.f32.mxu0 %v3417_v13  ;;  %2571 = vmatpush1.bf16.msra.mxu0 %v2570_v9  ;;  %v867_v13 = vld [vmem:[#allocation10 + $0x578] sm:$0xff]  ;;  %v2582_v32 = vpack.c.bf16 %v858_v11, %v854_v30  ;;  %v1467_v30 = vld [vmem:[#allocation12 + $0x8] sm:$0xff] }
 0x204   :  { %2573 = vmatprep.subr.bf16.mxu0 %v2572_v50  ;;  %v2584_v14 = vpack.c.bf16 %v867_v13, %v863_v31  ;;  %v911_v9 = vld [vmem:[#allocation10 + $0x6d8] sm:$0xff]  ;;  %v1466_v31 = vld [vmem:[#allocation12] sm:$0xff] }
 0x205   :  { %v915_v50 = vld [vmem:[#allocation10 + $0x6f8] sm:$0xff] }
 0x206   :  { %1225 = vmatmul.mubr.f32.gmra.mrb[28].mxu0 %v3423_v20  ;;  %v866_v20 = vld [vmem:[#allocation10 + $0x570] sm:$0xff]  ;;  %v2608_v12 = vpack.c.bf16 %v915_v50, %v911_v9  ;;  %v1469_v11 = vld [vmem:[#allocation12 + $0x18] sm:$0xff] }
 0x207   :  { %1230 = vmatprep.mubr.f32.mxu0 %v3429_v2  ;;  %2575 = vmatpush1.bf16.msra.mxu0 %v2574_v17  ;;  %v875_v2 = vld [vmem:[#allocation10 + $0x5b8] sm:$0xff]  ;;  %v2586_v37 = vpack.c.bf16 %v866_v20, %v862_v35  ;;  %v2628_v13 = vpack.c.bf16 %v1469_v11, %v1467_v30  ;;  %v2614_v20 = vpack.c.bf16 %v922_v39, %v918_v49  ;;  %v942_v50 = vld [vmem:[#allocation10 + $0x7d0] sm:$0xff]  ;;  %v1491_v30 = vld [vmem:[#allocation12 + $0xc8] sm:$0xff] }
 0x208   :  { %2577 = vmatprep.subr.bf16.mxu0 %v2576_v18  ;;  %v2588_v15 = vpack.c.bf16 %v875_v2, %v871_v36  ;;  %v919_v17 = vld [vmem:[#allocation10 + $0x718] sm:$0xff] }
 0x209   :  { %v923_v18 = vld [vmem:[#allocation10 + $0x738] sm:$0xff]  ;;  %2629 = vmatprep.subr.bf16.mxu1 %v2628_v13 }
 0x20a   :  { %1231 = vmatmul.mubr.f32.gmra.mrb[30].mxu0 %v3435_v34  ;;  %v2590_v34 = vpack.c.bf16 %v874_v41, %v870_v38  ;;  %v2612_v5 = vpack.c.bf16 %v923_v18, %v919_v17  ;;  %v1473_v35 = vld [vmem:[#allocation12 + $0x38] sm:$0xff]  ;;  %v1475_v38 = vld [vmem:[#allocation12 + $0x48] sm:$0xff]  ;;  %v1484_v17 = vld [vmem:[#allocation12 + $0x90] sm:$0xff] }
 0x20b   :  { %2579 = vmatpush1.bf16.msra.mxu0 %v2578_v24  ;;  %1301 = vmatprep.mubr.f32.mxu0 %v3398_v52  ;;  %v878_v52 = vld [vmem:[#allocation10 + $0x5d0] sm:$0xff]  ;;  %v927_v24 = vld [vmem:[#allocation10 + $0x758] sm:$0xff] }
 0x20c   :  { %2581 = vmatprep.subr.bf16.mxu0 %v2580_v26  ;;  %v2594_v55 = vpack.c.bf16 %v882_v46, %v878_v52  ;;  %v931_v26 = vld [vmem:[#allocation10 + $0x778] sm:$0xff] }
 0x20d   :  { %v2616_v41 = vpack.c.bf16 %v931_v26, %v927_v24  ;;  %v939_v52 = vld [vmem:[#allocation10 + $0x7b8] sm:$0xff]  ;;  %v1486_v24 = vld [vmem:[#allocation12 + $0xa0] sm:$0xff]  ;;  %v1488_v26 = vld [vmem:[#allocation12 + $0xb0] sm:$0xff] }
 0x20e   :  { %v1489_v49 = vld [vmem:[#allocation12 + $0xb8] sm:$0xff] }
 0x20f   :  { %2583 = vmatpush1.bf16.msra.mxu0 %v2582_v32  ;;  %v1468_v32 = vld [vmem:[#allocation12 + $0x10] sm:$0xff]  ;;  %v1493_v11 = vld [vmem:[#allocation12 + $0xd8] sm:$0xff] }
 0x210   :  { %2585 = vmatprep.subr.bf16.mxu0 %v2584_v14  ;;  %v1471_v14 = vld [vmem:[#allocation12 + $0x28] sm:$0xff]  ;;  %v2630_v36 = vpack.c.bf16 %v1468_v32, %v1466_v31  ;;  %v2650_v31 = vpack.c.bf16 %v1488_v26, %v1486_v24  ;;  %v2652_v13 = vpack.c.bf16 %v1493_v11, %v1491_v30  ;;  %v1490_v32 = vld [vmem:[#allocation12 + $0xc0] sm:$0xff]  ;;  %v1508_v26 = vld [vmem:[#allocation12 + $0x150] sm:$0xff] }
 0x211   :  { %v2632_v2 = vpack.c.bf16 %v1473_v35, %v1471_v14  ;;  %v1492_v14 = vld [vmem:[#allocation12 + $0xd0] sm:$0xff]  ;;  %v1506_v24 = vld [vmem:[#allocation12 + $0x140] sm:$0xff] }
 0x212   :  { %2631 = vmatpush1.bf16.msra.mxu1 %v2630_v36  ;;  %v2654_v35 = vpack.c.bf16 %v1492_v14, %v1490_v32  ;;  %v2670_v14 = vpack.c.bf16 %v1508_v26, %v1506_v24 }
 0x213   :  { %2587 = vmatpush1.bf16.msra.mxu0 %v2586_v37  ;;  %v1470_v37 = vld [vmem:[#allocation12 + $0x20] sm:$0xff]  ;;  %2633 = vmatprep.subr.bf16.mxu1 %v2632_v2 }
 0x214   :  { %2589 = vmatprep.subr.bf16.mxu0 %v2588_v15  ;;  %v1472_v15 = vld [vmem:[#allocation12 + $0x30] sm:$0xff] }
 0x215   :  { %v2634_v46 = vpack.c.bf16 %v1472_v15, %v1470_v37  ;;  %v1495_v15 = vld [vmem:[#allocation12 + $0xe8] sm:$0xff] }
 0x217   :  { %2591 = vmatpush1.bf16.msra.mxu0 %v2590_v34  ;;  %v1477_v34 = vld [vmem:[#allocation12 + $0x58] sm:$0xff]  ;;  %2635 = vmatpush1.bf16.msra.mxu1 %v2634_v46 }
 0x218   :  { %2593 = vmatprep.subr.bf16.mxu0 %v2592_v44  ;;  %v935_v44 = vld [vmem:[#allocation10 + $0x798] sm:$0xff]  ;;  %v2636_v51 = vpack.c.bf16 %v1477_v34, %v1475_v38 }
 0x219   :  { %v2620_v45 = vpack.c.bf16 %v939_v52, %v935_v44  ;;  %v1497_v38 = vld [vmem:[#allocation12 + $0xf8] sm:$0xff]  ;;  %v1499_v44 = vld [vmem:[#allocation12 + $0x108] sm:$0xff] }
 0x21a   :  { %2637 = vmatprep.subr.bf16.mxu1 %v2636_v51  ;;  %v1501_v52 = vld [vmem:[#allocation12 + $0x118] sm:$0xff] }
 0x21b   :  { %2595 = vmatpush1.bf16.msra.mxu0 %v2594_v55  ;;  %v1476_v55 = vld [vmem:[#allocation12 + $0x50] sm:$0xff] }
 0x21c   :  { %2597 = vmatprep.subr.bf16.mxu0 %v2596_v28  ;;  %v2618_v28 = vpack.c.bf16 %v930_v43, %v926_v42  ;;  %v2638_v61 = vpack.c.bf16 %v1476_v55, %v1474_v27  ;;  %v1494_v42 = vld [vmem:[#allocation12 + $0xe0] sm:$0xff]  ;;  %v1496_v43 = vld [vmem:[#allocation12 + $0xf0] sm:$0xff]  ;;  %v2660_v27 = vpack.c.bf16 %v1501_v52, %v1499_v44  ;;  %v1515_v52 = vld [vmem:[#allocation12 + $0x188] sm:$0xff] }
 0x21d   :  { %v2658_v34 = vpack.c.bf16 %v1496_v43, %v1494_v42  ;;  %v1498_v55 = vld [vmem:[#allocation12 + $0x100] sm:$0xff] }
 0x21e   :  { %2639 = vmatpush1.bf16.msra.mxu1 %v2638_v61  ;;  %v1505_v61 = vld [vmem:[#allocation12 + $0x138] sm:$0xff] }
 0x21f   :  { %2599 = vmatpush1.bf16.msra.mxu0 %v2598_v59  ;;  %v938_v59 = vld [vmem:[#allocation10 + $0x7b0] sm:$0xff]  ;;  %2641 = vmatprep.subr.bf16.mxu1 %v2640_v62 }
 0x220   :  { %2601 = vmatprep.subr.bf16.mxu0 %v2600_v60  ;;  %v943_v60 = vld [vmem:[#allocation10 + $0x7d8] sm:$0xff] }
 0x221   :  { %v2624_v9 = vpack.c.bf16 %v947_v40, %v943_v60  ;;  %v1503_v40 = vld [vmem:[#allocation12 + $0x128] sm:$0xff] }
 0x223   :  { %2603 = vmatpush1.bf16.msra.mxu0 %v2602_v3  ;;  %v1480_v3 = vld [vmem:[#allocation12 + $0x70] sm:$0xff] }
 0x224   :  { %2605 = vmatprep.subr.bf16.mxu0 %v2604_v6  ;;  %v2622_v6 = vpack.c.bf16 %v938_v59, %v934_v58 }
 0x227   :  { %2607 = vmatpush1.bf16.msra.mxu0 %v2606_v10  ;;  %v946_v10 = vld [vmem:[#allocation10 + $0x7f0] sm:$0xff] }
 0x228   :  { %2609 = vmatprep.subr.bf16.mxu0 %v2608_v12  ;;  %v2642_v12 = vpack.c.bf16 %v1480_v3, %v1478_v63  ;;  %v2626_v18 = vpack.c.bf16 %v946_v10, %v942_v50 }
 0x22a   :  { %2643 = vmatpush1.bf16.msra.mxu1 %v2642_v12  ;;  %v2666_v12 = vpack.c.bf16 %v1504_v47, %v1502_v7  ;;  %v1527_v47 = vld [vmem:[#allocation12 + $0x1e8] sm:$0xff] }
 0x22b   :  { %2611 = vmatpush1.bf16.msra.mxu0 %v2610_v19  ;;  %v1487_v19 = vld [vmem:[#allocation12 + $0xa8] sm:$0xff]  ;;  %2645 = vmatprep.subr.bf16.mxu1 %v2644_v16 }
 0x22c   :  { %2613 = vmatprep.subr.bf16.mxu0 %v2612_v5  ;;  %v2646_v5 = vpack.c.bf16 %v1484_v17, %v1482_v57  ;;  %v2648_v39 = vpack.c.bf16 %v1489_v49, %v1487_v19  ;;  %v1507_v17 = vld [vmem:[#allocation12 + $0x148] sm:$0xff] }
 0x22e   :  { %2647 = vmatpush1.bf16.msra.mxu1 %v2646_v5 }
 0x22f   :  { %2615 = vmatpush1.bf16.msra.mxu0 %v2614_v20  ;;  %2649 = vmatprep.subr.bf16.mxu1 %v2648_v39 }
 0x230   :  { %2617 = vmatprep.subr.bf16.mxu0 %v2616_v41  ;;  %v2656_v41 = vpack.c.bf16 %v1497_v38, %v1495_v15 }
 0x232   :  { %2651 = vmatpush1.bf16.msra.mxu1 %v2650_v31 }
 0x233   :  { %2619 = vmatpush1.bf16.msra.mxu0 %v2618_v28  ;;  %2653 = vmatprep.subr.bf16.mxu1 %v2652_v13  ;;  %v1500_v28 = vld [vmem:[#allocation12 + $0x110] sm:$0xff] }
 0x234   :  { %2621 = vmatprep.subr.bf16.mxu0 %v2620_v45  ;;  %v2662_v58 = vpack.c.bf16 %v1500_v28, %v1498_v55  ;;  %v1514_v55 = vld [vmem:[#allocation12 + $0x180] sm:$0xff]  ;;  %v1516_v28 = vld [vmem:[#allocation12 + $0x190] sm:$0xff] }
 0x236   :  { %2655 = vmatpush1.bf16.msra.mxu1 %v2654_v35 }
 0x237   :  { %2623 = vmatpush1.bf16.msra.mxu0 %v2622_v6  ;;  %2657 = vmatprep.subr.bf16.mxu1 %v2656_v41  ;;  %v2664_v6 = vpack.c.bf16 %v1505_v61, %v1503_v40  ;;  %v1512_v41 = vld [vmem:[#allocation12 + $0x170] sm:$0xff]  ;;  %v1523_v61 = vld [vmem:[#allocation12 + $0x1c8] sm:$0xff] }
 0x238   :  { %2625 = vmatprep.subr.bf16.mxu0 %v2624_v9 }
 0x23a   :  { %2659 = vmatpush1.bf16.msra.mxu1 %v2658_v34 }
 0x23b   :  { %2627 = vmatpush1.bf16.msra.mxu0 %v2626_v18  ;;  %2661 = vmatprep.subr.bf16.mxu1 %v2660_v27  ;;  %v1509_v18 = vld [vmem:[#allocation12 + $0x158] sm:$0xff] }
 0x23c   :  { %v2668_v39 = vpack.c.bf16 %v1509_v18, %v1507_v17  ;;  %v1533_v17 = vld [vmem:[#allocation12 + $0x218] sm:$0xff] }
 0x23e   :  { %1302 = vmatmul.mubr.f32.vlgmr.msra.gmra.mrb[24].mxu0 %v3400_v53  ;;  %v3460_v53 = vld [vmem:[%s3609_s4] sm:$0xf]  ;;  %2663 = vmatpush1.bf16.msra.mxu1 %v2662_v58 }
 0x23f   :  { %1307 = vmatprep.mubr.f32.mxu0 %v3408_v8  ;;  %v953_v8 = vrot.slane %v3460_v53, %v3383_v25  ;;  %2665 = vmatprep.subr.bf16.mxu1 %v2664_v6  ;;  %v1524_v6 = vld [vmem:[#allocation12 + $0x1d0] sm:$0xff] }
 0x242   :  { %1308 = vmatmul.mubr.f32.gmra.mrb[26].mxu0 %v3413_v54  ;;  %v3466_v54 = vrot.slane %v3460_v53, %v3389_v29  ;;  %2667 = vmatpush1.bf16.msra.mxu1 %v2666_v12  ;;  %v1528_v12 = vld [vmem:[#allocation12 + $0x1f0] sm:$0xff] }
 0x243   :  { %1313 = vmatprep.mubr.f32.mxu0 %v3420_v4  ;;  %2669 = vmatprep.subr.bf16.mxu1 %v2668_v39 }
 0x246   :  { %1314 = vmatmul.mubr.f32.gmra.mrb[28].mxu0 %v3425_v21  ;;  %2671 = vmatpush1.bf16.msra.mxu1 %v2670_v14 }
 0x247   :  { %1319 = vmatprep.mubr.f32.mxu0 %v3432_v23 }
 0x24a   :  { %1320 = vmatmul.mubr.f32.gmra.mrb[30].mxu0 %v3437_v33 }
 0x24b   :  { %2241 = vmatprep.mubr.msk.f32.mxu0 %vm3102_vm1, %v3100_v0 }
 0x290   :  { %v1036_v4 = vpop.f32.mrb[16].mxu0 }
 0x291   :  { %v1037_v20 = vadd.f32 %v1036_v4, %v953_v8  ;;  %v1125_v36 = vpop.f32.mrb[0].mxu1  ;;  %v1038_v21 = vpop.f32.mrb[17].mxu0 }
 0x292   :  { %v1039_v23 = vadd.f32 %v1038_v21, %v3466_v54  ;;  %v1127_v2 = vpop.f32.mrb[1].mxu1 }
 0x293   :  { %v1126_v33 = vadd.f32 %v1125_v36, %v1037_v20 }
 0x294   :  { %v3469_v37 = vadd.f32 %v1127_v2, %v1039_v23  ;;  %v1511_v23 = vld [vmem:[#allocation12 + $0x168] sm:$0xff]  ;;  %v1513_v2 = vld [vmem:[#allocation12 + $0x178] sm:$0xff] }
 0x295   :  { %v1326_v30 = vmax.f32 %v1126_v33, 0.0  ;;  %v2672_v38 = vpack.c.bf16 %v1513_v2, %v1511_v23 }
 0x296   :  { %v1327_v35 = vmax.f32 %v3469_v37, 0.0 }
 0x297   :  { %2673 = vmatprep.subr.bf16.mxu1 %v2672_v38 }
 0x299   :  { %v1042_v46 = vpop.f32.mrb[18].mxu0 }
 0x29a   :  { %v1131_v51 = vpop.f32.mrb[2].mxu1  ;;  %v1043_v48 = vadd.f32 %v1042_v46, %v953_v8  ;;  %v1044_v56 = vpop.f32.mrb[19].mxu0  ;;  %v1517_v46 = vld [vmem:[#allocation12 + $0x198] sm:$0xff] }
 0x29b   :  { %v1133_v45 = vpop.f32.mrb[3].mxu1  ;;  %v1045_v59 = vadd.f32 %v1044_v56, %v3466_v54  ;;  %v2676_v27 = vpack.c.bf16 %v1517_v46, %v1515_v52  ;;  %v1519_v56 = vld [vmem:[#allocation12 + $0x1a8] sm:$0xff] }
 0x29c   :  { %v1132_v60 = vadd.f32 %v1131_v51, %v1043_v48  ;;  %v2678_v48 = vpack.c.bf16 %v1516_v28, %v1514_v55 }
 0x29d   :  { %v1134_v62 = vadd.f32 %v1133_v45, %v1045_v59  ;;  %v1048_v63 = vpop.f32.mrb[20].mxu0  ;;  %v1521_v45 = vld [vmem:[#allocation12 + $0x1b8] sm:$0xff]  ;;  %v1518_v59 = vld [vmem:[#allocation12 + $0x1a0] sm:$0xff] }
 0x29e   :  { %v1137_v3 = vpop.f32.mrb[4].mxu1  ;;  %v1049_v9 = vadd.f32 %v1048_v63, %v953_v8  ;;  %v1050_v50 = vpop.f32.mrb[21].mxu0  ;;  %v1330_v42 = vmax.f32 %v1132_v60, 0.0  ;;  %v2680_v58 = vpack.c.bf16 %v1521_v45, %v1519_v56  ;;  %v1520_v60 = vld [vmem:[#allocation12 + $0x1b0] sm:$0xff]  ;;  %v1561_v45 = vld [vmem:[#allocation12 + $0x2f8] sm:$0xff] }
 0x29f   :  { %v1139_v10 = vpop.f32.mrb[5].mxu1  ;;  %v1051_v16 = vadd.f32 %v1050_v50, %v3466_v54  ;;  %v1331_v37 = vmax.f32 %v1134_v62, 0.0  ;;  %v2682_v40 = vpack.c.bf16 %v1520_v60, %v1518_v59  ;;  %v1525_v62 = vld [vmem:[#allocation12 + $0x1d8] sm:$0xff]  ;;  %v1526_v50 = vld [vmem:[#allocation12 + $0x1e0] sm:$0xff] }
 0x2a0   :  { %v1138_v57 = vadd.f32 %v1137_v3, %v1049_v9  ;;  %v2684_v63 = vpack.c.bf16 %v1525_v62, %v1523_v61  ;;  %v1522_v3 = vld [vmem:[#allocation12 + $0x1c0] sm:$0xff]  ;;  %v1529_v9 = vld [vmem:[#allocation12 + $0x1f8] sm:$0xff] }
 0x2a1   :  { %v1140_v19 = vadd.f32 %v1139_v10, %v1051_v16  ;;  %v1054_v49 = vpop.f32.mrb[22].mxu0  ;;  %v2686_v7 = vpack.c.bf16 %v1524_v6, %v1522_v3  ;;  %v2688_v10 = vpack.c.bf16 %v1529_v9, %v1527_v47  ;;  %v2690_v16 = vpack.c.bf16 %v1528_v12, %v1526_v50  ;;  %v1530_v9 = vld [vmem:[#allocation12 + $0x200] sm:$0xff]  ;;  %v1532_v50 = vld [vmem:[#allocation12 + $0x210] sm:$0xff]  ;;  %v1537_v12 = vld [vmem:[#allocation12 + $0x238] sm:$0xff] }
 0x2a2   :  { %v1143_v5 = vpop.f32.mrb[6].mxu1  ;;  %v1334_v11 = vmax.f32 %v1138_v57, 0.0  ;;  %v1055_v31 = vadd.f32 %v1054_v49, %v953_v8  ;;  %v1056_v13 = vpop.f32.mrb[23].mxu0  ;;  %v1510_v8 = vld [vmem:[#allocation12 + $0x160] sm:$0xff]  ;;  %v1531_v57 = vld [vmem:[#allocation12 + $0x208] sm:$0xff] }
 0x2a3   :  { %v1145_v32 = vpop.f32.mrb[7].mxu1  ;;  %v1335_v4 = vmax.f32 %v1140_v19, 0.0  ;;  %v1057_v20 = vadd.f32 %v1056_v13, %v3466_v54  ;;  %v2674_v34 = vpack.c.bf16 %v1512_v41, %v1510_v8  ;;  %v2692_v18 = vpack.c.bf16 %v1533_v17, %v1531_v57  ;;  %v1534_v57 = vld [vmem:[#allocation12 + $0x220] sm:$0xff] }
 0x2a4   :  { %v3475_v36 = vadd.f32 %v1334_v11, %v1326_v30  ;;  %v1144_v21 = vadd.f32 %v1143_v5, %v1055_v31  ;;  %v960_v19 = vsub.s32 2, %v3380_v22  ;;  %v964_v5 = vsub.s32 3, %v3380_v22 }
 0x2a5   :  { %v3477_v15 = vadd.f32 %v1335_v4, %v1327_v35  ;;  %v1146_v33 = vadd.f32 %v1145_v32, %v1057_v20  ;;  %2675 = vmatpush1.bf16.msra.mxu1 %v2674_v34 }
 0x2a6   :  { %v1338_v43 = vmax.f32 %v1144_v21, 0.0  ;;  %2677 = vmatprep.subr.bf16.mxu1 %v2676_v27  ;;  %v961_v24 = vrot.slane %v3460_v53, %v960_v19  ;;  %v965_v26 = vrot.slane %v3460_v53, %v964_v5  ;;  %v1539_v5 = vld [vmem:[#allocation12 + $0x248] sm:$0xff] }
 0x2a7   :  { %v1339_v44 = vmax.f32 %v1146_v33, 0.0 }
 0x2a8   :  { %v3479_v54 = vadd.f32 %v1338_v43, %v1330_v42 }
 0x2a9   :  { %v3481_v51 = vadd.f32 %v1339_v44, %v1331_v37  ;;  %2679 = vmatpush1.bf16.msra.mxu1 %v2678_v48 }
 0x2aa   :  { %2681 = vmatprep.subr.bf16.mxu1 %v2680_v58 }
 0x2ad   :  { %2683 = vmatpush1.bf16.msra.mxu1 %v2682_v40 }
 0x2ae   :  { %2685 = vmatprep.subr.bf16.mxu1 %v2684_v63 }
 0x2b1   :  { %2687 = vmatpush1.bf16.msra.mxu1 %v2686_v7 }
 0x2b2   :  { %2689 = vmatprep.subr.bf16.mxu1 %v2688_v10  ;;  %v1535_v10 = vld [vmem:[#allocation12 + $0x228] sm:$0xff] }
 0x2b3   :  { %v2696_v19 = vpack.c.bf16 %v1537_v12, %v1535_v10 }
 0x2b5   :  { %2691 = vmatpush1.bf16.msra.mxu1 %v2690_v16  ;;  %v2694_v16 = vpack.c.bf16 %v1532_v50, %v1530_v9  ;;  %v1571_v9 = vld [vmem:[#allocation12 + $0x348] sm:$0xff]  ;;  %v1573_v50 = vld [vmem:[#allocation12 + $0x358] sm:$0xff] }
 0x2b6   :  { %2693 = vmatprep.subr.bf16.mxu1 %v2692_v18  ;;  %v2732_v12 = vpack.c.bf16 %v1573_v50, %v1571_v9  ;;  %v2050_v9 = vld [vmem:[%s3612_s7 + $0x8] sm:$0xff]  ;;  %v2051_v50 = vld [vmem:[%s3612_s7 + $0x10] sm:$0xff] }
 0x311   :  { %v1303_v49 = vpop.f32.mrb[24].mxu0 }
 0x312   :  { %v1305_v39 = vpop.f32.mrb[25].mxu0  ;;  %v2940_v31 = vadd.f32 %v1303_v49, %v961_v24  ;;  %v1536_v49 = vld [vmem:[#allocation12 + $0x230] sm:$0xff] }
 0x313   :  { %v2941_v13 = vadd.f32 %v1305_v39, %v965_v26  ;;  %v1541_v39 = vld [vmem:[#allocation12 + $0x258] sm:$0xff] }
 0x314   :  { %v1328_v20 = vmax.f32 %v2940_v31, 0.0  ;;  %v1540_v31 = vld [vmem:[#allocation12 + $0x250] sm:$0xff] }
 0x315   :  { %v1309_v30 = vpop.f32.mrb[26].mxu0  ;;  %v1329_v2 = vmax.f32 %v2941_v13, 0.0 }
 0x316   :  { %v1311_v11 = vpop.f32.mrb[27].mxu0  ;;  %v2942_v21 = vadd.f32 %v1309_v30, %v961_v24  ;;  %v2700_v30 = vpack.c.bf16 %v1541_v39, %v1539_v5  ;;  %v1574_v5 = vld [vmem:[#allocation12 + $0x360] sm:$0xff]  ;;  %v1576_v39 = vld [vmem:[#allocation12 + $0x370] sm:$0xff] }
 0x317   :  { %v2943_v33 = vadd.f32 %v1311_v11, %v965_v26  ;;  %v1538_v11 = vld [vmem:[#allocation12 + $0x240] sm:$0xff] }
 0x318   :  { %v1332_v34 = vmax.f32 %v2942_v21, 0.0  ;;  %v1542_v21 = vld [vmem:[#allocation12 + $0x260] sm:$0xff] }
 0x319   :  { %v1315_v32 = vpop.f32.mrb[28].mxu0  ;;  %v1333_v52 = vmax.f32 %v2943_v33, 0.0  ;;  %v1549_v33 = vld [vmem:[#allocation12 + $0x298] sm:$0xff] }
 0x31a   :  { %v2944_v14 = vadd.f32 %v1315_v32, %v961_v24  ;;  %v1317_v35 = vpop.f32.mrb[29].mxu0  ;;  %v1543_v32 = vld [vmem:[#allocation12 + $0x268] sm:$0xff] }
 0x31b   :  { %v2945_v4 = vadd.f32 %v1317_v35, %v965_v26 }
 0x31c   :  { %v1336_v23 = vmax.f32 %v2944_v14, 0.0  ;;  %v1545_v14 = vld [vmem:[#allocation12 + $0x278] sm:$0xff] }
 0x31d   :  { %v1337_v38 = vmax.f32 %v2945_v4, 0.0  ;;  %v1321_v22 = vpop.f32.mrb[30].mxu0  ;;  %v2702_v4 = vpack.c.bf16 %v1540_v31, %v1538_v11  ;;  %v1578_v31 = vld [vmem:[#allocation12 + $0x380] sm:$0xff] }
 0x31e   :  { %v1344_v8 = vadd.f32 %v1336_v23, %v1328_v20  ;;  %v2946_v41 = vadd.f32 %v1321_v22, %v961_v24  ;;  %v1323_v42 = vpop.f32.mrb[31].mxu0  ;;  %v2704_v20 = vpack.c.bf16 %v1545_v14, %v1543_v32  ;;  %v1544_v23 = vld [vmem:[#allocation12 + $0x270] sm:$0xff]  ;;  %v1583_v32 = vld [vmem:[#allocation12 + $0x3a8] sm:$0xff]  ;;  %v1585_v14 = vld [vmem:[#allocation12 + $0x3b8] sm:$0xff] }
 0x31f   :  { %v1345_v43 = vadd.f32 %v1337_v38, %v1329_v2  ;;  %v2947_v53 = vadd.f32 %v1323_v42, %v965_v26  ;;  %v2698_v26 = vpack.c.bf16 %v1536_v49, %v1534_v57  ;;  %v1547_v2 = vld [vmem:[#allocation12 + $0x288] sm:$0xff]  ;;  %v2706_v38 = vpack.c.bf16 %v1544_v23, %v1542_v21  ;;  %v1572_v57 = vld [vmem:[#allocation12 + $0x350] sm:$0xff] }
 0x320   :  { %v1350_v37 = vadd.f32 %v1344_v8, %v3475_v36  ;;  %v1340_v44 = vmax.f32 %v2946_v41, 0.0  ;;  %v2708_v22 = vpack.c.bf16 %v1549_v33, %v1547_v2  ;;  %v1546_v8 = vld [vmem:[#allocation12 + $0x280] sm:$0xff]  ;;  %v1548_v41 = vld [vmem:[#allocation12 + $0x290] sm:$0xff]  ;;  %v1551_v42 = vld [vmem:[#allocation12 + $0x2a8] sm:$0xff] }
 0x321   :  { %v1351_v46 = vadd.f32 %v1345_v43, %v3477_v15  ;;  %v1341_v27 = vmax.f32 %v2947_v53, 0.0  ;;  %v1553_v43 = vld [vmem:[#allocation12 + $0x2b8] sm:$0xff]  ;;  %v2710_v53 = vpack.c.bf16 %v1548_v41, %v1546_v8  ;;  %v1584_v21 = vld [vmem:[#allocation12 + $0x3b0] sm:$0xff]  ;;  %v1587_v23 = vld [vmem:[#allocation12 + $0x3c8] sm:$0xff] }
 0x322   :  { %1354 = vst [vmem:[#allocation6] sm:$0xff] %v1350_v37  ;;  %v1348_v55 = vadd.f32 %v1340_v44, %v1332_v34  ;;  %v2712_v34 = vpack.c.bf16 %v1553_v43, %v1551_v42  ;;  %v1550_v37 = vld [vmem:[#allocation12 + $0x2a0] sm:$0xff]  ;;  %v1552_v44 = vld [vmem:[#allocation12 + $0x2b0] sm:$0xff]  ;;  %v1589_v2 = vld [vmem:[#allocation12 + $0x3d8] sm:$0xff] }
 0x323   :  { %1355 = vst [vmem:[#allocation6 + $0x8] sm:$0xff] %v1351_v46  ;;  %v1349_v28 = vadd.f32 %v1341_v27, %v1333_v52  ;;  %v1555_v52 = vld [vmem:[#allocation12 + $0x2c8] sm:$0xff]  ;;  %v1557_v46 = vld [vmem:[#allocation12 + $0x2d8] sm:$0xff]  ;;  %v2714_v27 = vpack.c.bf16 %v1552_v44, %v1550_v37  ;;  %v1588_v8 = vld [vmem:[#allocation12 + $0x3d0] sm:$0xff] }
 0x324   :  { %v1352_v48 = vadd.f32 %v1348_v55, %v3479_v54  ;;  %v2716_v55 = vpack.c.bf16 %v1557_v46, %v1555_v52  ;;  %v1591_v41 = vld [vmem:[#allocation12 + $0x3e8] sm:$0xff]  ;;  %v1593_v42 = vld [vmem:[#allocation12 + $0x3f8] sm:$0xff]  ;;  %v1592_v37 = vld [vmem:[#allocation12 + $0x3f0] sm:$0xff] }
 0x325   :  { %v1353_v56 = vadd.f32 %v1349_v28, %v3481_v51  ;;  %v1554_v28 = vld [vmem:[#allocation12 + $0x2c0] sm:$0xff]  ;;  %v1595_v44 = vld [vmem:[#allocation12 + $0x408] sm:$0xff]  ;;  %v1597_v52 = vld [vmem:[#allocation12 + $0x418] sm:$0xff] }
 0x326   :  { %1356 = vst [vmem:[#allocation6 + $0x10] sm:$0xff] %v1352_v48  ;;  %v1556_v48 = vld [vmem:[#allocation12 + $0x2d0] sm:$0xff] }
 0x327   :  { %1357 = vst [vmem:[#allocation6 + $0x18] sm:$0xff] %v1353_v56  ;;  %v1559_v56 = vld [vmem:[#allocation12 + $0x2e8] sm:$0xff] }
 0x32a   :  { %v1374_v36 = vld [vmem:[#allocation6] ss:$8 sm:$0x3]  ;;  %v1387_v58 = vld [vmem:[#allocation6 + $0x1] ss:$8 sm:$0x3] }
 0x32b   :  { %v1396_v59 = vld [vmem:[#allocation6 + $0x1] ss:$8 sm:$0x3]  ;;  %v1405_v15 = vld [vmem:[#allocation6 + $0x2] ss:$8 sm:$0x3] }
 0x32c   :  { %1379 = vst.msk [vmem:[#allocation4] ss:$8 sm:$0x3] %vm3492_vm0, %v1374_v36  ;;  %1389 = vst.msk [vmem:[#allocation4 + $0x40] ss:$8 sm:$0x3] %vm3492_vm0, %v1387_v58  ;;  %v2718_v36 = vpack.c.bf16 %v1556_v48, %v1554_v28  ;;  %v2720_v58 = vpack.c.bf16 %v1561_v45, %v1559_v56 }
 0x32d   :  { %v1414_v54 = vld [vmem:[#allocation6 + $0x2] ss:$8 sm:$0x3]  ;;  %v1423_v60 = vld [vmem:[#allocation6 + $0x3] ss:$8 sm:$0x3] }
 0x32e   :  { %1398 = vst.msk [vmem:[#allocation4 + $0x10] ss:$8 sm:$0x3] %vm3492_vm0, %v1396_v59  ;;  %1407 = vst.msk [vmem:[#allocation4 + $0x50] ss:$8 sm:$0x3] %vm3492_vm0, %v1405_v15 }
 0x32f   :  { %v1432_v1 = vld [vmem:[#allocation6 + $0x3] ss:$8 sm:$0x3]  ;;  %v1441_v51 = vld [vmem:[#allocation6 + $0x4] ss:$8 sm:$0x3] }
 0x330   :  { %1416 = vst.msk [vmem:[#allocation4 + $0x20] ss:$8 sm:$0x3] %vm3492_vm0, %v1414_v54  ;;  %1425 = vst.msk [vmem:[#allocation4 + $0x60] ss:$8 sm:$0x3] %vm3492_vm0, %v1423_v60 }
 0x331   :  { %1434 = vst.msk [vmem:[#allocation4 + $0x30] ss:$8 sm:$0x3] %vm3492_vm0, %v1432_v1  ;;  %1443 = vst.msk [vmem:[#allocation4 + $0x70] ss:$8 sm:$0x3] %vm3492_vm0, %v1441_v51 }
 0x332   :  { %v1382_v40 = vld [vmem:[#allocation6 + $0x10] ss:$8 sm:$0x3]  ;;  %v1392_v61 = vld [vmem:[#allocation6 + $0x11] ss:$8 sm:$0x3] }
 0x333   :  { %v1400_v62 = vld [vmem:[#allocation6 + $0x11] ss:$8 sm:$0x3]  ;;  %v1410_v63 = vld [vmem:[#allocation6 + $0x12] ss:$8 sm:$0x3] }
 0x334   :  { %1384 = vst.msk [vmem:[#allocation4 + $0x1] ss:$8 sm:$0x3] %vm3492_vm0, %v1382_v40  ;;  %1394 = vst.msk [vmem:[#allocation4 + $0x41] ss:$8 sm:$0x3] %vm3492_vm0, %v1392_v61 }
 0x335   :  { %v1418_v3 = vld [vmem:[#allocation6 + $0x12] ss:$8 sm:$0x3]  ;;  %v1428_v6 = vld [vmem:[#allocation6 + $0x13] ss:$8 sm:$0x3] }
 0x336   :  { %1402 = vst.msk [vmem:[#allocation4 + $0x11] ss:$8 sm:$0x3] %vm3492_vm0, %v1400_v62  ;;  %1412 = vst.msk [vmem:[#allocation4 + $0x51] ss:$8 sm:$0x3] %vm3492_vm0, %v1410_v63 }
 0x337   :  { %v1436_v7 = vld [vmem:[#allocation6 + $0x13] ss:$8 sm:$0x3]  ;;  %v1446_v47 = vld [vmem:[#allocation6 + $0x14] ss:$8 sm:$0x3] }
 0x338   :  { %1420 = vst.msk [vmem:[#allocation4 + $0x21] ss:$8 sm:$0x3] %vm3492_vm0, %v1418_v3  ;;  %1430 = vst.msk [vmem:[#allocation4 + $0x61] ss:$8 sm:$0x3] %vm3492_vm0, %v1428_v6 }
 0x339   :  { %1438 = vst.msk [vmem:[#allocation4 + $0x31] ss:$8 sm:$0x3] %vm3492_vm0, %v1436_v7  ;;  %1448 = vst.msk [vmem:[#allocation4 + $0x71] ss:$8 sm:$0x3] %vm3492_vm0, %v1446_v47 }
 0x33a   :  { %v1558_v59 = vld [vmem:[#allocation12 + $0x2e0] sm:$0xff]  ;;  %v1560_v15 = vld [vmem:[#allocation12 + $0x2f0] sm:$0xff]  ;;  %v1563_v54 = vld [vmem:[#allocation12 + $0x308] sm:$0xff] }
 0x33b   :  { %v1451_v17 = vld [vmem:[#allocation4 + $0x8] sm:$0xff]  ;;  %v1450_v18 = vld [vmem:[#allocation4] sm:$0xff]  ;;  %v1565_v60 = vld [vmem:[#allocation12 + $0x318] sm:$0xff]  ;;  %v2722_v1 = vpack.c.bf16 %v1560_v15, %v1558_v59 }
 0x33c   :  { %1798 = vmatprep.mubr.f32.mxu1 %v1451_v17  ;;  %v1459_v24 = vld [vmem:[#allocation4 + $0x48] sm:$0xff]  ;;  %v1458_v13 = vld [vmem:[#allocation4 + $0x40] sm:$0xff]  ;;  %v2724_v51 = vpack.c.bf16 %v1565_v60, %v1563_v54  ;;  %v1564_v61 = vld [vmem:[#allocation12 + $0x310] sm:$0xff] }
 0x33d   :  { %1799 = vmatmul.mubr.f32.vlgmr.msra.gmra.mrb[8].mxu1 %v1450_v18  ;;  %v1453_v35 = vld [vmem:[#allocation4 + $0x18] sm:$0xff]  ;;  %v1562_v40 = vld [vmem:[#allocation12 + $0x300] sm:$0xff]  ;;  %v1567_v62 = vld [vmem:[#allocation12 + $0x328] sm:$0xff] }
 0x33e   :  { %2695 = vmatpush1.bf16.msra.mxu1 %v2694_v16  ;;  %1804 = vmatprep.mubr.f32.mxu1 %v1459_v24  ;;  %v1569_v63 = vld [vmem:[#allocation12 + $0x338] sm:$0xff]  ;;  %v2726_v3 = vpack.c.bf16 %v1564_v61, %v1562_v40  ;;  %v1566_v7 = vld [vmem:[#allocation12 + $0x320] sm:$0xff]  ;;  %v1568_v47 = vld [vmem:[#allocation12 + $0x330] sm:$0xff] }
 0x33f   :  { %2697 = vmatprep.subr.bf16.mxu1 %v2696_v19  ;;  %v2728_v6 = vpack.c.bf16 %v1569_v63, %v1567_v62  ;;  %v2730_v10 = vpack.c.bf16 %v1568_v47, %v1566_v7  ;;  %v1570_v16 = vld [vmem:[#allocation12 + $0x340] sm:$0xff]  ;;  %v1575_v17 = vld [vmem:[#allocation12 + $0x368] sm:$0xff]  ;;  %v1577_v18 = vld [vmem:[#allocation12 + $0x378] sm:$0xff] }
 0x340   :  { %v2734_v19 = vpack.c.bf16 %v1572_v57, %v1570_v16  ;;  %v2736_v49 = vpack.c.bf16 %v1577_v18, %v1575_v17  ;;  %v1579_v24 = vld [vmem:[#allocation12 + $0x388] sm:$0xff]  ;;  %v1596_v28 = vld [vmem:[#allocation12 + $0x410] sm:$0xff]  ;;  %v1601_v56 = vld [vmem:[#allocation12 + $0x438] sm:$0xff] }
 0x341   :  { %1805 = vmatmul.mubr.f32.gmra.mrb[10].mxu1 %v1458_v13  ;;  %v1580_v13 = vld [vmem:[#allocation12 + $0x390] sm:$0xff]  ;;  %v1599_v48 = vld [vmem:[#allocation12 + $0x428] sm:$0xff]  ;;  %v1605_v60 = vld [vmem:[#allocation12 + $0x458] sm:$0xff] }
 0x342   :  { %2699 = vmatpush1.bf16.msra.mxu1 %v2698_v26  ;;  %1875 = vmatprep.mubr.f32.mxu1 %v1453_v35  ;;  %v1581_v26 = vld [vmem:[#allocation12 + $0x398] sm:$0xff]  ;;  %v2742_v35 = vpack.c.bf16 %v1580_v13, %v1578_v31  ;;  %v1600_v59 = vld [vmem:[#allocation12 + $0x430] sm:$0xff]  ;;  %v1603_v54 = vld [vmem:[#allocation12 + $0x448] sm:$0xff] }
 0x343   :  { %2701 = vmatprep.subr.bf16.mxu1 %v2700_v30  ;;  %v2738_v30 = vpack.c.bf16 %v1576_v39, %v1574_v5  ;;  %v2740_v11 = vpack.c.bf16 %v1581_v26, %v1579_v24  ;;  %v1452_v15 = vld [vmem:[#allocation4 + $0x10] sm:$0xff]  ;;  %v2764_v40 = vpack.c.bf16 %v1605_v60, %v1603_v54  ;;  %v1602_v61 = vld [vmem:[#allocation12 + $0x440] sm:$0xff]  ;;  %v1607_v63 = vld [vmem:[#allocation12 + $0x468] sm:$0xff] }
 0x344   :  { %v1604_v62 = vld [vmem:[#allocation12 + $0x450] sm:$0xff]  ;;  %v1609_v7 = vld [vmem:[#allocation12 + $0x478] sm:$0xff]  ;;  %v2049_v47 = vld [vmem:[%s3612_s7] sm:$0xff] }
 0x345   :  { %v2052_v16 = vld [vmem:[%s3612_s7 + $0x18] sm:$0xff]  ;;  %v2768_v57 = vpack.c.bf16 %v1609_v7, %v1607_v63  ;;  %v1606_v17 = vld [vmem:[#allocation12 + $0x460] sm:$0xff]  ;;  %v1608_v18 = vld [vmem:[#allocation12 + $0x470] sm:$0xff] }
 0x346   :  { %2703 = vmatpush1.bf16.msra.mxu1 %v2702_v4  ;;  %v2744_v4 = vpack.c.bf16 %v1585_v14, %v1583_v32  ;;  %v1613_v5 = vld [vmem:[#allocation12 + $0x498] sm:$0xff]  ;;  %v2888_v39 = vpack.c.bf16 %v2052_v16, %v2051_v50  ;;  %v2053_v24 = vld [vmem:[%s3612_s7 + $0x20] sm:$0xff]  ;;  %v2054_v26 = vld [vmem:[%s3612_s7 + $0x28] sm:$0xff] }
 0x347   :  { %2705 = vmatprep.subr.bf16.mxu1 %v2704_v20  ;;  %v1582_v20 = vld [vmem:[#allocation12 + $0x3a0] sm:$0xff]  ;;  %v1612_v13 = vld [vmem:[#allocation12 + $0x490] sm:$0xff]  ;;  %v1615_v32 = vld [vmem:[#allocation12 + $0x4a8] sm:$0xff] }
 0x348   :  { %v2746_v33 = vpack.c.bf16 %v1584_v21, %v1582_v20  ;;  %v1610_v31 = vld [vmem:[#allocation12 + $0x480] sm:$0xff]  ;;  %v1617_v14 = vld [vmem:[#allocation12 + $0x4b8] sm:$0xff]  ;;  %v1631_v54 = vld [vmem:[#allocation12 + $0x528] sm:$0xff] }
 0x349   :  { %v2056_v20 = vld [vmem:[%s3612_s7 + $0x38] sm:$0xff]  ;;  %v2774_v21 = vpack.c.bf16 %v1612_v13, %v1610_v31  ;;  %v1634_v7 = vld [vmem:[#allocation12 + $0x540] sm:$0xff] }
 0x34a   :  { %2707 = vmatpush1.bf16.msra.mxu1 %v2706_v38  ;;  %v2748_v38 = vpack.c.bf16 %v1589_v2, %v1587_v23  ;;  %v2776_v23 = vpack.c.bf16 %v1617_v14, %v1615_v32  ;;  %v1614_v2 = vld [vmem:[#allocation12 + $0x4a0] sm:$0xff]  ;;  %v1633_v60 = vld [vmem:[#allocation12 + $0x538] sm:$0xff]  ;;  %v1648_v32 = vld [vmem:[#allocation12 + $0x5b0] sm:$0xff] }
 0x34b   :  { %2709 = vmatprep.subr.bf16.mxu1 %v2708_v22  ;;  %v1586_v22 = vld [vmem:[#allocation12 + $0x3c0] sm:$0xff]  ;;  %v1637_v63 = vld [vmem:[#allocation12 + $0x558] sm:$0xff]  ;;  %v1651_v14 = vld [vmem:[#allocation12 + $0x5c8] sm:$0xff] }
 0x34c   :  { %v2750_v43 = vpack.c.bf16 %v1588_v8, %v1586_v22  ;;  %v1621_v22 = vld [vmem:[#allocation12 + $0x4d8] sm:$0xff]  ;;  %v1638_v16 = vld [vmem:[#allocation12 + $0x560] sm:$0xff] }
 0x34d   :  { %v1641_v50 = vld [vmem:[#allocation12 + $0x578] sm:$0xff]  ;;  %v1646_v13 = vld [vmem:[#allocation12 + $0x5a0] sm:$0xff] }
 0x34e   :  { %2711 = vmatpush1.bf16.msra.mxu1 %v2710_v53  ;;  %v2752_v53 = vpack.c.bf16 %v1593_v42, %v1591_v41  ;;  %v2057_v41 = vld [vmem:[%s3612_s7 + $0x40] sm:$0xff]  ;;  %v2058_v42 = vld [vmem:[%s3612_s7 + $0x48] sm:$0xff] }
 0x34f   :  { %2713 = vmatprep.subr.bf16.mxu1 %v2712_v34  ;;  %v1590_v34 = vld [vmem:[#allocation12 + $0x3e0] sm:$0xff] }
 0x350   :  { %v2754_v46 = vpack.c.bf16 %v1592_v37, %v1590_v34  ;;  %v1618_v34 = vld [vmem:[#allocation12 + $0x4c0] sm:$0xff]  ;;  %v1620_v37 = vld [vmem:[#allocation12 + $0x4d0] sm:$0xff] }
 0x352   :  { %2715 = vmatpush1.bf16.msra.mxu1 %v2714_v27  ;;  %v2756_v27 = vpack.c.bf16 %v1597_v52, %v1595_v44  ;;  %v1623_v44 = vld [vmem:[#allocation12 + $0x4e8] sm:$0xff]  ;;  %v1625_v52 = vld [vmem:[#allocation12 + $0x4f8] sm:$0xff] }
 0x353   :  { %2717 = vmatprep.subr.bf16.mxu1 %v2716_v55  ;;  %v1594_v55 = vld [vmem:[#allocation12 + $0x400] sm:$0xff] }
 0x354   :  { %v2758_v45 = vpack.c.bf16 %v1596_v28, %v1594_v55  ;;  %v2784_v55 = vpack.c.bf16 %v1625_v52, %v1623_v44  ;;  %v1622_v28 = vld [vmem:[#allocation12 + $0x4e0] sm:$0xff]  ;;  %v1660_v44 = vld [vmem:[#allocation12 + $0x610] sm:$0xff]  ;;  %v1663_v52 = vld [vmem:[#allocation12 + $0x628] sm:$0xff] }
 0x356   :  { %2719 = vmatpush1.bf16.msra.mxu1 %v2718_v36  ;;  %v2760_v36 = vpack.c.bf16 %v1601_v56, %v1599_v48  ;;  %v1624_v48 = vld [vmem:[#allocation12 + $0x4f0] sm:$0xff]  ;;  %v1627_v56 = vld [vmem:[#allocation12 + $0x508] sm:$0xff] }
 0x357   :  { %2721 = vmatprep.subr.bf16.mxu1 %v2720_v58  ;;  %v1598_v58 = vld [vmem:[#allocation12 + $0x420] sm:$0xff] }
 0x35a   :  { %2723 = vmatpush1.bf16.msra.mxu1 %v2722_v1  ;;  %v1461_v1 = vld [vmem:[#allocation4 + $0x58] sm:$0xff] }
 0x35b   :  { %2725 = vmatprep.subr.bf16.mxu1 %v2724_v51  ;;  %v2762_v51 = vpack.c.bf16 %v1600_v59, %v1598_v58  ;;  %v1626_v59 = vld [vmem:[#allocation12 + $0x500] sm:$0xff] }
 0x35e   :  { %2727 = vmatpush1.bf16.msra.mxu1 %v2726_v3  ;;  %v1460_v3 = vld [vmem:[#allocation4 + $0x50] sm:$0xff] }
 0x35f   :  { %2729 = vmatprep.subr.bf16.mxu1 %v2728_v6  ;;  %v1455_v6 = vld [vmem:[#allocation4 + $0x28] sm:$0xff] }
 0x362   :  { %2731 = vmatpush1.bf16.msra.mxu1 %v2730_v10  ;;  %v2766_v10 = vpack.c.bf16 %v1604_v62, %v1602_v61  ;;  %v1632_v61 = vld [vmem:[#allocation12 + $0x530] sm:$0xff]  ;;  %v1635_v62 = vld [vmem:[#allocation12 + $0x548] sm:$0xff] }
 0x363   :  { %2733 = vmatprep.subr.bf16.mxu1 %v2732_v12  ;;  %v2885_v12 = vpack.c.bf16 %v2050_v9, %v2049_v47  ;;  %v1636_v47 = vld [vmem:[#allocation12 + $0x550] sm:$0xff]  ;;  %v1639_v9 = vld [vmem:[#allocation12 + $0x568] sm:$0xff] }
 0x366   :  { %2735 = vmatpush1.bf16.msra.mxu1 %v2734_v19  ;;  %v3101_v19 = vmov 0.0|0.0  }
 0x367   :  { %2737 = vmatprep.subr.bf16.mxu1 %v2736_v49  ;;  %2884 = vmatprep.subr.bf16.mxu0 %v3101_v19  ;;  %v1611_v49 = vld [vmem:[#allocation12 + $0x488] sm:$0xff] }
 0x368   :  { %2886 = vmatpush3.bf16.msra.mxu0 %v2885_v12  ;;  %v2800_v12 = vpack.c.bf16 %v1641_v50, %v1639_v9 }
 0x369   :  { %2887 = vmatprep.subr.bf16.mxu0 %v3101_v19 }
 0x36a   :  { %2739 = vmatpush1.bf16.msra.mxu1 %v2738_v30  ;;  %v2770_v30 = vpack.c.bf16 %v1608_v18, %v1606_v17  ;;  %v1643_v17 = vld [vmem:[#allocation12 + $0x588] sm:$0xff]  ;;  %v1645_v18 = vld [vmem:[#allocation12 + $0x598] sm:$0xff] }
 0x36b   :  { %2741 = vmatprep.subr.bf16.mxu1 %v2740_v11  ;;  %v2772_v11 = vpack.c.bf16 %v1613_v5, %v1611_v49  ;;  %v2804_v5 = vpack.c.bf16 %v1645_v18, %v1643_v17 }
 0x36c   :  { %2889 = vmatpush3.bf16.msra.mxu0 %v2888_v39  ;;  %v1642_v39 = vld [vmem:[#allocation12 + $0x580] sm:$0xff] }
 0x36d   :  { %2890 = vmatprep.subr.bf16.mxu0 %v3101_v19 }
 0x36e   :  { %2743 = vmatpush1.bf16.msra.mxu1 %v2742_v35  ;;  %v2891_v35 = vpack.c.bf16 %v2054_v26, %v2053_v24  ;;  %v1644_v24 = vld [vmem:[#allocation12 + $0x590] sm:$0xff]  ;;  %v1647_v26 = vld [vmem:[#allocation12 + $0x5a8] sm:$0xff] }
 0x36f   :  { %2745 = vmatprep.subr.bf16.mxu1 %v2744_v4  ;;  %v2055_v4 = vld [vmem:[%s3612_s7 + $0x30] sm:$0xff] }
 0x370   :  { %2892 = vmatpush3.bf16.msra.mxu0 %v2891_v35  ;;  %v2894_v8 = vpack.c.bf16 %v2056_v20, %v2055_v4  ;;  %v1653_v35 = vld [vmem:[#allocation12 + $0x5d8] sm:$0xff]  ;;  %v2810_v4 = vpack.c.bf16 %v1648_v32, %v1646_v13  ;;  %v1687_v13 = vld [vmem:[#allocation12 + $0x6e8] sm:$0xff] }
 0x371   :  { %2893 = vmatprep.subr.bf16.mxu0 %v3101_v19  ;;  %v2812_v20 = vpack.c.bf16 %v1653_v35, %v1651_v14  ;;  %v1689_v32 = vld [vmem:[#allocation12 + $0x6f8] sm:$0xff] }
 0x372   :  { %2747 = vmatpush1.bf16.msra.mxu1 %v2746_v33  ;;  %v1616_v33 = vld [vmem:[#allocation12 + $0x4b0] sm:$0xff]  ;;  %v2848_v35 = vpack.c.bf16 %v1689_v32, %v1687_v13  ;;  %v2061_v32 = vld [vmem:[%s3612_s7 + $0x60] sm:$0xff] }
 0x373   :  { %2749 = vmatprep.subr.bf16.mxu1 %v2748_v38  ;;  %v1619_v38 = vld [vmem:[#allocation12 + $0x4c8] sm:$0xff] }
 0x374   :  { %2895 = vmatpush3.bf16.msra.mxu0 %v2894_v8  ;;  %v1654_v8 = vld [vmem:[#allocation12 + $0x5e0] sm:$0xff] }
 0x375   :  { %2896 = vmatprep.subr.bf16.mxu0 %v3101_v19 }
 0x376   :  { %2751 = vmatpush1.bf16.msra.mxu1 %v2750_v43  ;;  %v2778_v43 = vpack.c.bf16 %v1616_v33, %v1614_v2  ;;  %v1655_v2 = vld [vmem:[#allocation12 + $0x5e8] sm:$0xff]  ;;  %v1657_v33 = vld [vmem:[#allocation12 + $0x5f8] sm:$0xff] }
 0x377   :  { %2753 = vmatprep.subr.bf16.mxu1 %v2752_v53  ;;  %v2780_v53 = vpack.c.bf16 %v1621_v22, %v1619_v38  ;;  %v2816_v22 = vpack.c.bf16 %v1657_v33, %v1655_v2 }
 0x37a   :  { %2755 = vmatpush1.bf16.msra.mxu1 %v2754_v46  ;;  %v2897_v46 = vpack.c.bf16 %v2058_v42, %v2057_v41  ;;  %v1656_v41 = vld [vmem:[#allocation12 + $0x5f0] sm:$0xff]  ;;  %v1659_v42 = vld [vmem:[#allocation12 + $0x608] sm:$0xff] }
 0x37b   :  { %2757 = vmatprep.subr.bf16.mxu1 %v2756_v27  ;;  %v2782_v27 = vpack.c.bf16 %v1620_v37, %v1618_v34  ;;  %v1658_v37 = vld [vmem:[#allocation12 + $0x600] sm:$0xff] }
 0x37c   :  { %2898 = vmatpush3.bf16.msra.mxu0 %v2897_v46  ;;  %v1665_v46 = vld [vmem:[#allocation12 + $0x638] sm:$0xff] }
 0x37d   :  { %1876 = vmatmul.mubr.f32.vlgmr.msra.gmra.mrb[8].mxu1 %v1452_v15  ;;  %2899 = vmatprep.subr.bf16.mxu0 %v3101_v19  ;;  %v1628_v15 = vld [vmem:[#allocation12 + $0x510] sm:$0xff] }
 0x37e   :  { %1881 = vmatprep.mubr.f32.mxu1 %v1461_v1  ;;  %2759 = vmatpush1.bf16.msra.mxu1 %v2758_v45  ;;  %v1629_v45 = vld [vmem:[#allocation12 + $0x518] sm:$0xff]  ;;  %v2790_v1 = vpack.c.bf16 %v1628_v15, %v1626_v59 }
 0x37f   :  { %2761 = vmatprep.subr.bf16.mxu1 %v2760_v36  ;;  %v2786_v36 = vpack.c.bf16 %v1624_v48, %v1622_v28  ;;  %v2788_v58 = vpack.c.bf16 %v1629_v45, %v1627_v56  ;;  %v1662_v28 = vld [vmem:[#allocation12 + $0x620] sm:$0xff]  ;;  %v1664_v48 = vld [vmem:[#allocation12 + $0x630] sm:$0xff]  ;;  %v1667_v45 = vld [vmem:[#allocation12 + $0x648] sm:$0xff] }
 0x380   :  { %v1454_v56 = vld [vmem:[#allocation4 + $0x20] sm:$0xff]  ;;  %v2826_v59 = vpack.c.bf16 %v1664_v48, %v1662_v28  ;;  %v1703_v28 = vld [vmem:[#allocation12 + $0x768] sm:$0xff]  ;;  %v1705_v48 = vld [vmem:[#allocation12 + $0x778] sm:$0xff] }
 0x381   :  { %1882 = vmatmul.mubr.f32.gmra.mrb[10].mxu1 %v1460_v3 }
 0x382   :  { %2763 = vmatpush1.bf16.msra.mxu1 %v2762_v51  ;;  %1952 = vmatprep.mubr.f32.mxu1 %v1455_v6  ;;  %v2792_v51 = vpack.c.bf16 %v1633_v60, %v1631_v54  ;;  %v2796_v6 = vpack.c.bf16 %v1637_v63, %v1635_v62  ;;  %v1666_v54 = vld [vmem:[#allocation12 + $0x640] sm:$0xff]  ;;  %v1668_v60 = vld [vmem:[#allocation12 + $0x650] sm:$0xff] }
 0x383   :  { %2765 = vmatprep.subr.bf16.mxu1 %v2764_v40  ;;  %v1630_v40 = vld [vmem:[#allocation12 + $0x520] sm:$0xff]  ;;  %v2830_v62 = vpack.c.bf16 %v1668_v60, %v1666_v54 }
 0x384   :  { %v2794_v3 = vpack.c.bf16 %v1632_v61, %v1630_v40  ;;  %v1673_v40 = vld [vmem:[#allocation12 + $0x678] sm:$0xff] }
 0x385   :  { %v1457_v61 = vld [vmem:[#allocation4 + $0x38] sm:$0xff] }
 0x386   :  { %2767 = vmatpush1.bf16.msra.mxu1 %v2766_v10  ;;  %v2798_v10 = vpack.c.bf16 %v1636_v47, %v1634_v7  ;;  %v1675_v7 = vld [vmem:[#allocation12 + $0x688] sm:$0xff]  ;;  %v1677_v47 = vld [vmem:[#allocation12 + $0x698] sm:$0xff] }
 0x387   :  { %2769 = vmatprep.subr.bf16.mxu1 %v2768_v57  ;;  %v1640_v57 = vld [vmem:[#allocation12 + $0x570] sm:$0xff]  ;;  %v2836_v50 = vpack.c.bf16 %v1677_v47, %v1675_v7  ;;  %v1715_v7 = vld [vmem:[#allocation12 + $0x7c8] sm:$0xff]  ;;  %v1717_v47 = vld [vmem:[#allocation12 + $0x7d8] sm:$0xff] }
 0x388   :  { %v2802_v49 = vpack.c.bf16 %v1640_v57, %v1638_v16  ;;  %v1679_v16 = vld [vmem:[#allocation12 + $0x6a8] sm:$0xff]  ;;  %v1681_v57 = vld [vmem:[#allocation12 + $0x6b8] sm:$0xff] }
 0x389   :  { %v2840_v18 = vpack.c.bf16 %v1681_v57, %v1679_v16  ;;  %v1719_v16 = vld [vmem:[#allocation12 + $0x7e8] sm:$0xff]  ;;  %v1721_v57 = vld [vmem:[#allocation12 + $0x7f8] sm:$0xff] }
 0x38a   :  { %2771 = vmatpush1.bf16.msra.mxu1 %v2770_v30  ;;  %v1649_v30 = vld [vmem:[#allocation12 + $0x5b8] sm:$0xff] }
 0x38b   :  { %2773 = vmatprep.subr.bf16.mxu1 %v2772_v11  ;;  %v2806_v11 = vpack.c.bf16 %v1644_v24, %v1642_v39  ;;  %v2808_v31 = vpack.c.bf16 %v1649_v30, %v1647_v26  ;;  %v1683_v39 = vld [vmem:[#allocation12 + $0x6c8] sm:$0xff]  ;;  %v1685_v24 = vld [vmem:[#allocation12 + $0x6d8] sm:$0xff] }
 0x38c   :  { %v2844_v30 = vpack.c.bf16 %v1685_v24, %v1683_v39  ;;  %v1456_v24 = vld [vmem:[#allocation4 + $0x30] sm:$0xff] }
 0x38e   :  { %2775 = vmatpush1.bf16.msra.mxu1 %v2774_v21  ;;  %v1650_v21 = vld [vmem:[#allocation12 + $0x5c0] sm:$0xff] }
 0x38f   :  { %2777 = vmatprep.subr.bf16.mxu1 %v2776_v23  ;;  %v1652_v23 = vld [vmem:[#allocation12 + $0x5d0] sm:$0xff] }
 0x390   :  { %v2814_v38 = vpack.c.bf16 %v1652_v23, %v1650_v21  ;;  %v1691_v21 = vld [vmem:[#allocation12 + $0x708] sm:$0xff]  ;;  %v1693_v23 = vld [vmem:[#allocation12 + $0x718] sm:$0xff] }
 0x391   :  { %v2852_v33 = vpack.c.bf16 %v1693_v23, %v1691_v21  ;;  %v1722_v23 = vld [vmem:[%s3611_s6] sm:$0x3] }
 0x392   :  { %2779 = vmatpush1.bf16.msra.mxu1 %v2778_v43  ;;  %v1661_v43 = vld [vmem:[#allocation12 + $0x618] sm:$0xff] }
 0x393   :  { %2781 = vmatprep.subr.bf16.mxu1 %v2780_v53  ;;  %v2818_v53 = vpack.c.bf16 %v1656_v41, %v1654_v8  ;;  %v2820_v34 = vpack.c.bf16 %v1661_v43, %v1659_v42  ;;  %v1695_v8 = vld [vmem:[#allocation12 + $0x728] sm:$0xff]  ;;  %v1697_v41 = vld [vmem:[#allocation12 + $0x738] sm:$0xff] }
 0x394   :  { %v2856_v43 = vpack.c.bf16 %v1697_v41, %v1695_v8 }
 0x396   :  { %2783 = vmatpush1.bf16.msra.mxu1 %v2782_v27  ;;  %v2822_v27 = vpack.c.bf16 %v1660_v44, %v1658_v37  ;;  %v1699_v37 = vld [vmem:[#allocation12 + $0x748] sm:$0xff]  ;;  %v1701_v44 = vld [vmem:[#allocation12 + $0x758] sm:$0xff] }
 0x397   :  { %2785 = vmatprep.subr.bf16.mxu1 %v2784_v55  ;;  %v2824_v55 = vpack.c.bf16 %v1665_v46, %v1663_v52  ;;  %v2860_v46 = vpack.c.bf16 %v1701_v44, %v1699_v37 }
 0x39a   :  { %2787 = vmatpush1.bf16.msra.mxu1 %v2786_v36  ;;  %v1669_v36 = vld [vmem:[#allocation12 + $0x658] sm:$0xff] }
 0x39b   :  { %2789 = vmatprep.subr.bf16.mxu1 %v2788_v58  ;;  %v1463_v58 = vld [vmem:[#allocation4 + $0x68] sm:$0xff]  ;;  %v2828_v15 = vpack.c.bf16 %v1669_v36, %v1667_v45  ;;  %v2864_v45 = vpack.c.bf16 %v1705_v48, %v1703_v28  ;;  %v1702_v36 = vld [vmem:[#allocation12 + $0x760] sm:$0xff] }
 0x39e   :  { %2791 = vmatpush1.bf16.msra.mxu1 %v2790_v1  ;;  %v1462_v1 = vld [vmem:[#allocation4 + $0x60] sm:$0xff] }
 0x39f   :  { %2793 = vmatprep.subr.bf16.mxu1 %v2792_v51  ;;  %v1671_v51 = vld [vmem:[#allocation12 + $0x668] sm:$0xff] }
 0x3a0   :  { %v2832_v63 = vpack.c.bf16 %v1673_v40, %v1671_v51  ;;  %v1708_v51 = vld [vmem:[#allocation12 + $0x790] sm:$0xff]  ;;  %v1711_v40 = vld [vmem:[#allocation12 + $0x7a8] sm:$0xff] }
 0x3a2   :  { %2795 = vmatpush1.bf16.msra.mxu1 %v2794_v3  ;;  %v1670_v3 = vld [vmem:[#allocation12 + $0x660] sm:$0xff] }
 0x3a3   :  { %2797 = vmatprep.subr.bf16.mxu1 %v2796_v6  ;;  %v1672_v6 = vld [vmem:[#allocation12 + $0x670] sm:$0xff] }
 0x3a4   :  { %v2834_v9 = vpack.c.bf16 %v1672_v6, %v1670_v3  ;;  %v1710_v3 = vld [vmem:[#allocation12 + $0x7a0] sm:$0xff]  ;;  %v1712_v6 = vld [vmem:[#allocation12 + $0x7b0] sm:$0xff] }
 0x3a6   :  { %2799 = vmatpush1.bf16.msra.mxu1 %v2798_v10  ;;  %v1674_v10 = vld [vmem:[#allocation12 + $0x680] sm:$0xff] }
 0x3a7   :  { %2801 = vmatprep.subr.bf16.mxu1 %v2800_v12  ;;  %v1676_v12 = vld [vmem:[#allocation12 + $0x690] sm:$0xff] }
 0x3a8   :  { %v2838_v17 = vpack.c.bf16 %v1676_v12, %v1674_v10  ;;  %v1714_v10 = vld [vmem:[#allocation12 + $0x7c0] sm:$0xff]  ;;  %v1716_v12 = vld [vmem:[#allocation12 + $0x7d0] sm:$0xff] }
 0x3aa   :  { %2803 = vmatpush1.bf16.msra.mxu1 %v2802_v49  ;;  %v1678_v49 = vld [vmem:[#allocation12 + $0x6a0] sm:$0xff] }
 0x3ab   :  { %2805 = vmatprep.subr.bf16.mxu1 %v2804_v5  ;;  %v1680_v5 = vld [vmem:[#allocation12 + $0x6b0] sm:$0xff] }
 0x3ac   :  { %v2842_v26 = vpack.c.bf16 %v1680_v5, %v1678_v49  ;;  %v1718_v49 = vld [vmem:[#allocation12 + $0x7e0] sm:$0xff]  ;;  %v1720_v5 = vld [vmem:[#allocation12 + $0x7f0] sm:$0xff] }
 0x3ad   :  { %v2882_v39 = vpack.c.bf16 %v1720_v5, %v1718_v49 }
 0x3ae   :  { %2807 = vmatpush1.bf16.msra.mxu1 %v2806_v11  ;;  %v1682_v11 = vld [vmem:[#allocation12 + $0x6c0] sm:$0xff] }
 0x3af   :  { %2809 = vmatprep.subr.bf16.mxu1 %v2808_v31  ;;  %v1684_v31 = vld [vmem:[#allocation12 + $0x6d0] sm:$0xff] }
 0x3b0   :  { %v2846_v14 = vpack.c.bf16 %v1684_v31, %v1682_v11  ;;  %v2059_v11 = vld [vmem:[%s3612_s7 + $0x50] sm:$0xff]  ;;  %v2060_v31 = vld [vmem:[%s3612_s7 + $0x58] sm:$0xff] }
 0x3b1   :  { %v2900_v13 = vpack.c.bf16 %v2060_v31, %v2059_v11 }
 0x3b2   :  { %2811 = vmatpush1.bf16.msra.mxu1 %v2810_v4  ;;  %v1686_v4 = vld [vmem:[#allocation12 + $0x6e0] sm:$0xff] }
 0x3b3   :  { %2813 = vmatprep.subr.bf16.mxu1 %v2812_v20  ;;  %v1688_v20 = vld [vmem:[#allocation12 + $0x6f0] sm:$0xff]  ;;  %2901 = vmatpush3.bf16.msra.mxu0 %v2900_v13 }
 0x3b4   :  { %v2850_v2 = vpack.c.bf16 %v1688_v20, %v1686_v4  ;;  %2902 = vmatprep.subr.bf16.mxu0 %v3101_v19  ;;  %v2064_v20 = vld [vmem:[%s3612_s7 + $0x78] sm:$0xff] }
 0x3b6   :  { %2815 = vmatpush1.bf16.msra.mxu1 %v2814_v38  ;;  %v1690_v38 = vld [vmem:[#allocation12 + $0x700] sm:$0xff] }
 0x3b7   :  { %2817 = vmatprep.subr.bf16.mxu1 %v2816_v22  ;;  %v1692_v22 = vld [vmem:[#allocation12 + $0x710] sm:$0xff] }
 0x3b8   :  { %v2854_v42 = vpack.c.bf16 %v1692_v22, %v1690_v38  ;;  %v1731_v38 = vrot.slane %v1722_v23, %v3389_v29 }
 0x3ba   :  { %2819 = vmatpush1.bf16.msra.mxu1 %v2818_v53  ;;  %v1694_v53 = vld [vmem:[#allocation12 + $0x720] sm:$0xff] }
 0x3bb   :  { %2821 = vmatprep.subr.bf16.mxu1 %v2820_v34  ;;  %v1696_v34 = vld [vmem:[#allocation12 + $0x730] sm:$0xff] }
 0x3bc   :  { %v2858_v52 = vpack.c.bf16 %v1696_v34, %v1694_v53 }
 0x3bd   :  { %1953 = vmatmul.mubr.f32.vlgmr.msra.gmra.mrb[8].mxu1 %v1454_v56 }
 0x3be   :  { %1958 = vmatprep.mubr.f32.mxu1 %v1463_v58  ;;  %2823 = vmatpush1.bf16.msra.mxu1 %v2822_v27  ;;  %v1698_v27 = vld [vmem:[#allocation12 + $0x740] sm:$0xff]  ;;  %v1704_v58 = vld [vmem:[#allocation12 + $0x770] sm:$0xff] }
 0x3bf   :  { %2825 = vmatprep.subr.bf16.mxu1 %v2824_v55  ;;  %v1700_v55 = vld [vmem:[#allocation12 + $0x750] sm:$0xff]  ;;  %v2866_v54 = vpack.c.bf16 %v1704_v58, %v1702_v36 }
 0x3c0   :  { %v2862_v56 = vpack.c.bf16 %v1700_v55, %v1698_v27 }
 0x3c1   :  { %1959 = vmatmul.mubr.f32.gmra.mrb[10].mxu1 %v1462_v1  ;;  %v1706_v1 = vld [vmem:[#allocation12 + $0x780] sm:$0xff] }
 0x3c2   :  { %2827 = vmatpush1.bf16.msra.mxu1 %v2826_v59  ;;  %2029 = vmatprep.mubr.f32.mxu1 %v1457_v61  ;;  %v1707_v59 = vld [vmem:[#allocation12 + $0x788] sm:$0xff]  ;;  %v1713_v61 = vld [vmem:[#allocation12 + $0x7b8] sm:$0xff] }
 0x3c3   :  { %2829 = vmatprep.subr.bf16.mxu1 %v2828_v15  ;;  %v1709_v15 = vld [vmem:[#allocation12 + $0x798] sm:$0xff] }
 0x3c4   :  { %v2868_v60 = vpack.c.bf16 %v1709_v15, %v1707_v59 }
 0x3c6   :  { %2831 = vmatpush1.bf16.msra.mxu1 %v2830_v62  ;;  %v2870_v62 = vpack.c.bf16 %v1708_v51, %v1706_v1 }
 0x3c7   :  { %2833 = vmatprep.subr.bf16.mxu1 %v2832_v63  ;;  %v2872_v63 = vpack.c.bf16 %v1713_v61, %v1711_v40 }
 0x3ca   :  { %2835 = vmatpush1.bf16.msra.mxu1 %v2834_v9  ;;  %v2874_v9 = vpack.c.bf16 %v1712_v6, %v1710_v3 }
 0x3cb   :  { %2837 = vmatprep.subr.bf16.mxu1 %v2836_v50  ;;  %v2876_v50 = vpack.c.bf16 %v1717_v47, %v1715_v7 }
 0x3ce   :  { %2839 = vmatpush1.bf16.msra.mxu1 %v2838_v17  ;;  %v2878_v17 = vpack.c.bf16 %v1716_v12, %v1714_v10 }
 0x3cf   :  { %2841 = vmatprep.subr.bf16.mxu1 %v2840_v18  ;;  %v2880_v18 = vpack.c.bf16 %v1721_v57, %v1719_v16 }
 0x3d2   :  { %2843 = vmatpush1.bf16.msra.mxu1 %v2842_v26  ;;  %v1465_v26 = vld [vmem:[#allocation4 + $0x78] sm:$0xff] }
 0x3d3   :  { %2845 = vmatprep.subr.bf16.mxu1 %v2844_v30  ;;  %v1464_v30 = vld [vmem:[#allocation4 + $0x70] sm:$0xff] }
 0x3d6   :  { %2847 = vmatpush1.bf16.msra.mxu1 %v2846_v14  ;;  %v2062_v14 = vld [vmem:[%s3612_s7 + $0x68] sm:$0xff] }
 0x3d7   :  { %2849 = vmatprep.subr.bf16.mxu1 %v2848_v35  ;;  %v2063_v35 = vld [vmem:[%s3612_s7 + $0x70] sm:$0xff]  ;;  %v2903_v4 = vpack.c.bf16 %v2062_v14, %v2061_v32 }
 0x3d8   :  { %v2906_v21 = vpack.c.bf16 %v2064_v20, %v2063_v35 }
 0x3d9   :  { %2904 = vmatpush3.bf16.msra.mxu0 %v2903_v4 }
 0x3da   :  { %2851 = vmatpush1.bf16.msra.mxu1 %v2850_v2  ;;  %2905 = vmatprep.subr.bf16.mxu0 %v3101_v19  ;;  %v1727_v2 = vrot.slane %v1722_v23, %v3383_v25  ;;  %v2191_v25 = vld [vmem:[%s3613_s8] ss:$0 sm:$0xff] }
 0x3db   :  { %2853 = vmatprep.subr.bf16.mxu1 %v2852_v33 }
 0x3dd   :  { %2907 = vmatpush3.bf16.msra.mxu0 %v2906_v21 }
 0x3de   :  { %2855 = vmatpush1.bf16.msra.mxu1 %v2854_v42 }
 0x3df   :  { %2857 = vmatprep.subr.bf16.mxu1 %v2856_v43 }
 0x3e2   :  { %2859 = vmatpush1.bf16.msra.mxu1 %v2858_v52 }
 0x3e3   :  { %2861 = vmatprep.subr.bf16.mxu1 %v2860_v46 }
 0x3e6   :  { %2863 = vmatpush1.bf16.msra.mxu1 %v2862_v56 }
 0x3e7   :  { %2865 = vmatprep.subr.bf16.mxu1 %v2864_v45 }
 0x3ea   :  { %2867 = vmatpush1.bf16.msra.mxu1 %v2866_v54 }
 0x3eb   :  { %2869 = vmatprep.subr.bf16.mxu1 %v2868_v60 }
 0x3ee   :  { %2871 = vmatpush1.bf16.msra.mxu1 %v2870_v62 }
 0x3ef   :  { %2873 = vmatprep.subr.bf16.mxu1 %v2872_v63 }
 0x3f2   :  { %2875 = vmatpush1.bf16.msra.mxu1 %v2874_v9 }
 0x3f3   :  { %2877 = vmatprep.subr.bf16.mxu1 %v2876_v50 }
 0x3f6   :  { %2879 = vmatpush1.bf16.msra.mxu1 %v2878_v17 }
 0x3f7   :  { %2881 = vmatprep.subr.bf16.mxu1 %v2880_v18 }
 0x3fa   :  { %2883 = vmatpush1.bf16.msra.mxu1 %v2882_v39 }
 0x3fd   :  { %2030 = vmatmul.mubr.f32.vlgmr.msra.gmra.mrb[8].mxu1 %v1456_v24 }
 0x3fe   :  { %2035 = vmatprep.mubr.f32.mxu1 %v1465_v26 }
 0x401   :  { %2036 = vmatmul.mubr.f32.gmra.mrb[10].mxu1 %v1464_v30 }
 0x4d0   :  { %v2031_v33 = vpop.f32.mrb[8].mxu1 }
 0x4d1   :  { %v2033_v22 = vpop.f32.mrb[9].mxu1  ;;  %v2948_v8 = vadd.f32 %v2031_v33, %v1727_v2 }
 0x4d2   :  { %v2949_v41 = vadd.f32 %v2033_v22, %v1731_v38 }
 0x4d3   :  { %v2042_v34 = vmax.f32 %v2948_v8, 0.0 }
 0x4d4   :  { %v2037_v42 = vpop.f32.mrb[10].mxu1  ;;  %v2043_v19 = vmax.f32 %v2949_v41, 0.0 }
 0x4d5   :  { %v2950_v43 = vadd.f32 %v2037_v42, %v1727_v2  ;;  %v2039_v0 = vpop.f32.mrb[11].mxu1 }
 0x4d6   :  { %v2951_v53 = vadd.f32 %v2039_v0, %v1731_v38 }
 0x4d7   :  { %v2044_v37 = vmax.f32 %v2950_v43, 0.0 }
 0x4d8   :  { %v2045_v44 = vmax.f32 %v2951_v53, 0.0 }
 0x4d9   :  { %v2046_v52 = vadd.f32 %v2044_v37, %v2042_v34 }
 0x4da   :  { %v2047_v46 = vadd.f32 %v2045_v44, %v2043_v19 }
 0x4dc   :  { %v2048_v27 = vadd.f32 %v2047_v46, %v2046_v52 }
 0x4de   :  { %2242 = vmatmul.mubr.f32.vlgmr.msra.gmra.mrb[32].mxu0 %v2048_v27 }
 0x5b1   :  { %v2138_v29 = vpop.f32.mrb[32].mxu0 }
 0x5b2   :  { %v2139_v55 = vadd.f32 %v2191_v25, %v2138_v29  ;;  %v2243_v28 = vpop.f32.mrb[33].mxu0 }
 0x5b4   :  { %2143 = vst.msk [vmem:[#allocation13] sm:$0x3] %vm2142_vm2, %v2139_v55 }
 0x5b5   :  { %3076 = shalt.err (!%p3073_p0)
}
 0x5b6   :  { %s3077_s30 = scalar_lea.hbm %s3614_s9, 32 }
 0x5b7   :  { %p3078_p1 = scmp.ne.s32.totalorder %s3614_s9, %s3077_s30  ;;  %p3081_p2 = scmp.lt.u32.totalorder %s3077_s30, %s3614_s9 }
 0x5b9   :  { %p3083_p3 = pnand %p3081_p2, %p3078_p1 }
 0x5bb   :  { %3086 = shalt.err (!%p3083_p3)
}
 0x5bc   :  { %2153 = dma.vmem_to_hbm [thread:$0]  %s2151_s26, 32, %s3614_s9, [#allocation9]  }
 0x5bd   :  { %3091 = dma.done.wait [#allocation9], 32  }
 0x5be   :  { %3092 = vsyncadd [#allocation9], 4294967264 }
 0x5bf   :  { %2157 = vsyncpa [#allocation8], 1 }
 0x5c0   :  { %2158 = vsyncpa [#allocation11], 1 }
 0x5c1   :  { %2159 = vsyncpa [#allocation9], 1 }

</bundles_post_ra>
